<compile_context>
chip_gen: v6e
topology: v6e:2x2x1
jax: 0.10.0
libtpu: 0.0.40
codegen_flags: <defaults>
</compile_context>

<pallas_src>
import jax
import jax.numpy as jnp
from jax import lax
from jax.experimental import pallas as pl
from jax.experimental.pallas import tpu as pltpu


# ----------------------------------------------------------------------------
# Pallas kernel: full Point_Transformer_Last forward for one batch sample.
# ----------------------------------------------------------------------------
def _ptl_kernel(x_ref, w1_ref, b1_ref, w2_ref, b2_ref,
                wq_ref, wv_ref, bv_ref, wt_ref, bt_ref,
                out_ref):
    bf16 = jnp.bfloat16
    x = x_ref[0]                                                     # (C, N) f32

    # conv1 (BN1 folded) -> relu     [bf16 MXU operands, f32 accumulation]
    h = jnp.dot(w1_ref[...], x.astype(bf16), preferred_element_type=jnp.float32)
    h = jnp.maximum(h + b1_ref[...], 0.0)
    # conv2 (BN2 folded) -> relu
    h = jnp.dot(w2_ref[...], h.astype(bf16), preferred_element_type=jnp.float32)
    h = jnp.maximum(h + b2_ref[...], 0.0)

    # 4 SA layers, statically unrolled.
    for l in range(4):
        hb = h.astype(bf16)

        # q/k projection (tied weights).  Kept in f32: K = C//4 is shallow for
        # the MXU anyway and it feeds exp() in the softmax.
        xq = jnp.dot(wq_ref[l], h, preferred_element_type=jnp.float32)      # (C/4, N)
        xv = (jnp.dot(wv_ref[l], hb, preferred_element_type=jnp.float32)
              + bv_ref[l])                                                  # (C, N)

        # energy[n, m] = sum_c xq[c, n] * xq[c, m]  -- contract dim 0 directly,
        # no explicit transpose of xq.
        energy = lax.dot_general(
            xq, xq, (((0,), (0,)), ((), ())),
            preferred_element_type=jnp.float32)                             # (N, N)

        # Row softmax (stable) then column-sum renorm, reciprocal-multiply form.
        m = jnp.max(energy, axis=-1, keepdims=True)
        e = jnp.exp(energy - m)
        r_row = pl.reciprocal(jnp.sum(e, axis=-1, keepdims=True), approx=True)
        att = e * r_row                                                     # (N, N)
        r_col = pl.reciprocal(1e-9 + jnp.sum(att, axis=0, keepdims=True),
                              approx=True)
        att = att * r_col

        # x_r = x_v @ att   (K = N, the FLOP-heavy matmul -> bf16 operands)
        xr = jnp.dot(xv.astype(bf16), att.astype(bf16),
                     preferred_element_type=jnp.float32)                    # (C, N)

        # trans_conv(h - xr) with BN folded into weight/bias, then relu,
        # then residual add.
        z = (jnp.dot(wt_ref[l], (h - xr).astype(bf16),
                     preferred_element_type=jnp.float32) + bt_ref[l])
        h = h + jnp.maximum(z, 0.0)

        out_ref[0, l] = h.astype(out_ref.dtype)


# ----------------------------------------------------------------------------
# Wrapper: BN folding + bf16 weight prep + pallas_call with a batch grid.
# ----------------------------------------------------------------------------
def point_transformer_last(x, params, out_dtype=jnp.float32):
    B, C, N = x.shape
    bf16 = jnp.bfloat16

    # ---- fold eval-mode BatchNorm into the preceding 1x1 convs ------------
    w1f = (params['bn1s'] * params['w1']).astype(bf16)          # (C, C)
    b1 = params['bn1b']                                         # (C, 1)
    w2f = (params['bn2s'] * params['w2']).astype(bf16)
    b2 = params['bn2b']
    wq = params['wq']                                           # (4, C//4, C) f32
    wvf = params['wv'].astype(bf16)                             # (4, C, C)
    bv = params['bv']                                           # (4, C, 1)
    wtf = (params['bns'] * params['wt']).astype(bf16)           # (4, C, C)
    btf = params['bns'] * params['bt'] + params['bnb']          # (4, C, 1)

    def full(shape):
        return pl.BlockSpec(shape, lambda b, _s=shape: (0,) * len(_s))

    # ---- VMEM budget (weights + double-buffered I/O blocks + temporaries) --
    out_bytes = jnp.dtype(out_dtype).itemsize
    est = (
        2 * C * C * 2 + 4 * (C // 4) * C * 4 + 8 * C * C * 2 + 16 * C * 4  # weights
        + 2 * C * N * 4 + 2 * 4 * C * N * out_bytes                        # in/out blocks (x2 buf)
        + 3 * N * N * 4 + 8 * C * N * 4                                    # attention + activation temps
    )
    vmem_limit = int(min(64 * 1024 * 1024, max(2 * est, 16 * 1024 * 1024)))

    out = pl.pallas_call(
        _ptl_kernel,
        out_shape=jax.ShapeDtypeStruct((B, 4, C, N), out_dtype),
        grid_spec=pltpu.PrefetchScalarGridSpec(
            num_scalar_prefetch=0,
            grid=(B,),
            in_specs=[
                pl.BlockSpec((1, C, N), lambda b: (b, 0, 0)),   # x
                full((C, C)), full((C, 1)),                     # conv1 (folded) / bias
                full((C, C)), full((C, 1)),                     # conv2 (folded) / bias
                full((4, C // 4, C)),                           # SA q/k weights (f32)
                full((4, C, C)), full((4, C, 1)),               # SA v weight (bf16) / bias
                full((4, C, C)), full((4, C, 1)),               # SA trans weight (folded bf16) / bias
            ],
            out_specs=pl.BlockSpec((1, 4, C, N), lambda b: (b, 0, 0, 0)),
        ),
        compiler_params=pltpu.CompilerParams(
            dimension_semantics=("parallel",),
            vmem_limit_bytes=vmem_limit),
    )(x, w1f, b1, w2f, b2, wq, wvf, bv, wtf, btf)

    # torch.cat((x1, x2, x3, x4), dim=1)
    return out.reshape(B, 4 * C, N)


# ----------------------------------------------------------------------------
# Deterministic parameter initialization (PyTorch-default-like init).
# ----------------------------------------------------------------------------
def init_params(key, C):
    keys = iter(jax.random.split(key, 32))

    def conv_w(k, cout, cin):
        bound = 1.0 / jnp.sqrt(jnp.float32(cin))
        return jax.random.uniform(k, (cout, cin), jnp.float32, -bound, bound)

    def conv_b(k, cout, cin):
        bound = 1.0 / jnp.sqrt(jnp.float32(cin))
        return jax.random.uniform(k, (cout, 1), jnp.float32, -bound, bound)

    def bn_affine(k, c):
        k1, k2, k3, k4 = jax.random.split(k, 4)
        gamma = jax.random.uniform(k1, (c, 1), jnp.float32, 0.5, 1.5)
        beta = 0.1 * jax.random.normal(k2, (c, 1), jnp.float32)
        mean = 0.1 * jax.random.normal(k3, (c, 1), jnp.float32)
        var = jax.random.uniform(k4, (c, 1), jnp.float32, 0.5, 1.5)
        scale = gamma / jnp.sqrt(var + 1e-5)
        bias = beta - mean * scale
        return scale, bias

    p = {}
    p['w1'] = conv_w(next(keys), C, C)
    p['bn1s'], p['bn1b'] = bn_affine(next(keys), C)
    p['w2'] = conv_w(next(keys), C, C)
    p['bn2s'], p['bn2b'] = bn_affine(next(keys), C)

    wq, wv, bv, wt, bt, bns, bnb = [], [], [], [], [], [], []
    for _ in range(4):
        wq.append(conv_w(next(keys), C // 4, C))
        wv.append(conv_w(next(keys), C, C))
        bv.append(conv_b(next(keys), C, C))
        wt.append(conv_w(next(keys), C, C))
        bt.append(conv_b(next(keys), C, C))
        s, b = bn_affine(next(keys), C)
        bns.append(s)
        bnb.append(b)
    p['wq'] = jnp.stack(wq)
    p['wv'] = jnp.stack(wv)
    p['bv'] = jnp.stack(bv)
    p['wt'] = jnp.stack(wt)
    p['bt'] = jnp.stack(bt)
    p['bns'] = jnp.stack(bns)
    p['bnb'] = jnp.stack(bnb)
    return p


# ----------------------------------------------------------------------------
# Pure-JAX f32 reference (same eval-mode BN, unfolded) for correctness check.
# ----------------------------------------------------------------------------
def reference_forward(x, p):
    P = lax.Precision.HIGHEST

    def mm(w, z):  # (O, C) @ (B, C, N) -> (B, O, N)
        return jnp.einsum('oc,bcn->bon', w, z, precision=P)

    h = mm(p['w1'], x)
    h = jax.nn.relu(h * p['bn1s'][None] + p['bn1b'][None])
    h = mm(p['w2'], h)
    h = jax.nn.relu(h * p['bn2s'][None] + p['bn2b'][None])

    outs = []
    for l in range(4):
        xq = mm(p['wq'][l], h)
        xv = mm(p['wv'][l], h) + p['bv'][l][None]
        energy = jnp.einsum('bcn,bcm->bnm', xq, xq, precision=P)
        att = jax.nn.softmax(energy, axis=-1)
        att = att / (1e-9 + jnp.sum(att, axis=1, keepdims=True))
        xr = jnp.einsum('bcn,bnm->bcm', xv, att, precision=P)
        z = mm(p['wt'][l], h - xr) + p['bt'][l][None]
        z = jax.nn.relu(z * p['bns'][l][None] + p['bnb'][l][None])
        h = h + z
        outs.append(h)
    return jnp.concatenate(outs, axis=1)


if __name__ == "__main__":
    key = jax.random.PRNGKey(0)
    kx, kp = jax.random.split(key)

    B, C, N = 2, 64, 128      # small shapes; module default is channels=256
    x = jax.random.normal(kx, (B, C, N), jnp.float32)
    params = init_params(kp, C)

    out = point_transformer_last(x, params)
    out = jax.block_until_ready(out)
    assert out.shape == (B, 4 * C, N)

    ref = reference_forward(x, params)
    diff = jnp.abs(out.astype(jnp.float32) - ref)
    err = jnp.max(diff)
    rel = err / (jnp.max(jnp.abs(ref)) + 1e-6)
    rel_l2 = jnp.linalg.norm(diff) / (jnp.linalg.norm(ref) + 1e-6)
    # bf16 MXU operands (f32 accumulation) vs. an f32 HIGHEST-precision
    # reference through 4 softmax-attention layers: tolerance widened vs. the
    # all-f32 version accordingly.
    assert rel < 3e-2, f"mismatch: max abs {err}, rel {rel}, rel_l2 {rel_l2}"
    print("KERNEL_OK")
</pallas_src>

<mosaic_0001>
module attributes {stable_mosaic.version = 11 : i64} {
  func.func @_ptl_kernel(%arg0: i32, %arg1: memref<1x64x128xf32, #tpu.memory_space<vmem>>, %arg2: memref<64x64xbf16, #tpu.memory_space<vmem>>, %arg3: memref<64x1xf32, #tpu.memory_space<vmem>>, %arg4: memref<64x64xbf16, #tpu.memory_space<vmem>>, %arg5: memref<64x1xf32, #tpu.memory_space<vmem>>, %arg6: memref<4x16x64xf32, #tpu.memory_space<vmem>>, %arg7: memref<4x64x64xbf16, #tpu.memory_space<vmem>>, %arg8: memref<4x64x1xf32, #tpu.memory_space<vmem>>, %arg9: memref<4x64x64xbf16, #tpu.memory_space<vmem>>, %arg10: memref<4x64x1xf32, #tpu.memory_space<vmem>>, %arg11: memref<1x4x64x128xf32, #tpu.memory_space<vmem>>) attributes {dimension_semantics = [#tpu.dimension_semantics<parallel>], iteration_bounds = array<i64: 2>, scalar_prefetch = 0 : i64, scratch_operands = 0 : i64, tpu.core_type = #tpu.core_type<tc>, window_params = [{transform_indices = @transform_0, window_bounds = array<i64: 1, 64, 128>}, {pipeline_mode = #tpu.pipeline_mode<synchronous>, transform_indices = @transform_1, window_bounds = array<i64: 64, 64>}, {pipeline_mode = #tpu.pipeline_mode<synchronous>, transform_indices = @transform_2, window_bounds = array<i64: 64, 1>}, {pipeline_mode = #tpu.pipeline_mode<synchronous>, transform_indices = @transform_3, window_bounds = array<i64: 64, 64>}, {pipeline_mode = #tpu.pipeline_mode<synchronous>, transform_indices = @transform_4, window_bounds = array<i64: 64, 1>}, {pipeline_mode = #tpu.pipeline_mode<synchronous>, transform_indices = @transform_5, window_bounds = array<i64: 4, 16, 64>}, {pipeline_mode = #tpu.pipeline_mode<synchronous>, transform_indices = @transform_6, window_bounds = array<i64: 4, 64, 64>}, {pipeline_mode = #tpu.pipeline_mode<synchronous>, transform_indices = @transform_7, window_bounds = array<i64: 4, 64, 1>}, {pipeline_mode = #tpu.pipeline_mode<synchronous>, transform_indices = @transform_8, window_bounds = array<i64: 4, 64, 64>}, {pipeline_mode = #tpu.pipeline_mode<synchronous>, transform_indices = @transform_9, window_bounds = array<i64: 4, 64, 1>}, {transform_indices = @transform_10, window_bounds = array<i64: 1, 4, 64, 128>}]} {
    %c0 = arith.constant 0 : index
    %c0_0 = arith.constant 0 : index
    %c0_1 = arith.constant 0 : index
    %0 = vector.load %arg1[%c0, %c0_0, %c0_1] : memref<1x64x128xf32, #tpu.memory_space<vmem>>, vector<1x64x128xf32>
    %1 = vector.shape_cast %0 : vector<1x64x128xf32> to vector<64x128xf32>
    %c0_2 = arith.constant 0 : index
    %c0_3 = arith.constant 0 : index
    %2 = vector.load %arg2[%c0_2, %c0_3] : memref<64x64xbf16, #tpu.memory_space<vmem>>, vector<64x64xbf16>
    %3 = arith.truncf %1 : vector<64x128xf32> to vector<64x128xbf16>
    %cst = arith.constant dense<0.000000e+00> : vector<64x128xf32>
    %4 = tpu.matmul %2, %3, %cst {dimension_numbers = #tpu.dot_dimension_numbers<[1], [0], [0], [1], [0, 0, 1, 1], [], []>} : vector<64x64xbf16>, vector<64x128xbf16>, vector<64x128xf32> -> vector<64x128xf32>
    %c0_4 = arith.constant 0 : index
    %c0_5 = arith.constant 0 : index
    %5 = vector.load %arg3[%c0_4, %c0_5] : memref<64x1xf32, #tpu.memory_space<vmem>>, vector<64x1xf32>
    %6 = vector.broadcast %5 : vector<64x1xf32> to vector<64x128xf32>
    %7 = arith.addf %4, %6 : vector<64x128xf32>
    %cst_6 = arith.constant 0.000000e+00 : f32
    %8 = vector.broadcast %cst_6 : f32 to vector<64x128xf32>
    %9 = arith.maximumf %7, %8 : vector<64x128xf32>
    %c0_7 = arith.constant 0 : index
    %c0_8 = arith.constant 0 : index
    %10 = vector.load %arg4[%c0_7, %c0_8] : memref<64x64xbf16, #tpu.memory_space<vmem>>, vector<64x64xbf16>
    %11 = arith.truncf %9 : vector<64x128xf32> to vector<64x128xbf16>
    %cst_9 = arith.constant dense<0.000000e+00> : vector<64x128xf32>
    %12 = tpu.matmul %10, %11, %cst_9 {dimension_numbers = #tpu.dot_dimension_numbers<[1], [0], [0], [1], [0, 0, 1, 1], [], []>} : vector<64x64xbf16>, vector<64x128xbf16>, vector<64x128xf32> -> vector<64x128xf32>
    %c0_10 = arith.constant 0 : index
    %c0_11 = arith.constant 0 : index
    %13 = vector.load %arg5[%c0_10, %c0_11] : memref<64x1xf32, #tpu.memory_space<vmem>>, vector<64x1xf32>
    %14 = vector.broadcast %13 : vector<64x1xf32> to vector<64x128xf32>
    %15 = arith.addf %12, %14 : vector<64x128xf32>
    %cst_12 = arith.constant 0.000000e+00 : f32
    %16 = vector.broadcast %cst_12 : f32 to vector<64x128xf32>
    %17 = arith.maximumf %15, %16 : vector<64x128xf32>
    %18 = arith.truncf %17 : vector<64x128xf32> to vector<64x128xbf16>
    %c0_13 = arith.constant 0 : index
    %c0_14 = arith.constant 0 : index
    %c0_15 = arith.constant 0 : index
    %19 = vector.load %arg6[%c0_13, %c0_14, %c0_15] : memref<4x16x64xf32, #tpu.memory_space<vmem>>, vector<1x16x64xf32>
    %20 = vector.shape_cast %19 : vector<1x16x64xf32> to vector<16x64xf32>
    %cst_16 = arith.constant dense<0.000000e+00> : vector<16x128xf32>
    %21 = tpu.matmul %20, %17, %cst_16 {dimension_numbers = #tpu.dot_dimension_numbers<[1], [0], [0], [1], [0, 0, 1, 1], [], []>} : vector<16x64xf32>, vector<64x128xf32>, vector<16x128xf32> -> vector<16x128xf32>
    %c0_17 = arith.constant 0 : index
    %c0_18 = arith.constant 0 : index
    %c0_19 = arith.constant 0 : index
    %22 = vector.load %arg7[%c0_17, %c0_18, %c0_19] : memref<4x64x64xbf16, #tpu.memory_space<vmem>>, vector<1x64x64xbf16>
    %23 = vector.shape_cast %22 : vector<1x64x64xbf16> to vector<64x64xbf16>
    %cst_20 = arith.constant dense<0.000000e+00> : vector<64x128xf32>
    %24 = tpu.matmul %23, %18, %cst_20 {dimension_numbers = #tpu.dot_dimension_numbers<[1], [0], [0], [1], [0, 0, 1, 1], [], []>} : vector<64x64xbf16>, vector<64x128xbf16>, vector<64x128xf32> -> vector<64x128xf32>
    %c0_21 = arith.constant 0 : index
    %c0_22 = arith.constant 0 : index
    %c0_23 = arith.constant 0 : index
    %25 = vector.load %arg8[%c0_21, %c0_22, %c0_23] : memref<4x64x1xf32, #tpu.memory_space<vmem>>, vector<1x64x1xf32>
    %26 = vector.shape_cast %25 : vector<1x64x1xf32> to vector<64x1xf32>
    %27 = vector.broadcast %26 : vector<64x1xf32> to vector<64x128xf32>
    %28 = arith.addf %24, %27 : vector<64x128xf32>
    %cst_24 = arith.constant dense<0.000000e+00> : vector<128x128xf32>
    %29 = tpu.matmul %21, %21, %cst_24 {dimension_numbers = #tpu.dot_dimension_numbers<[0], [0], [1], [1], [0, 1, 1, 1], [], []>} : vector<16x128xf32>, vector<16x128xf32>, vector<128x128xf32> -> vector<128x128xf32>
    %cst_25 = arith.constant dense<0xFF800000> : vector<128xf32>
    %30 = vector.multi_reduction <maximumf>, %29, %cst_25 [1] : vector<128x128xf32> to vector<128xf32>
    %31 = vector.shape_cast %30 : vector<128xf32> to vector<128x1xf32>
    %32 = vector.broadcast %31 : vector<128x1xf32> to vector<128x128xf32>
    %33 = arith.subf %29, %32 : vector<128x128xf32>
    %34 = math.exp %33 : vector<128x128xf32>
    %cst_26 = arith.constant dense<0.000000e+00> : vector<128xf32>
    %35 = vector.multi_reduction <add>, %34, %cst_26 [1] : vector<128x128xf32> to vector<128xf32>
    %36 = vector.shape_cast %35 : vector<128xf32> to vector<128x1xf32>
    %37 = tpu.reciprocal %36 {approx = true} : vector<128x1xf32> -> vector<128x1xf32>
    %38 = vector.broadcast %37 : vector<128x1xf32> to vector<128x128xf32>
    %39 = arith.mulf %34, %38 : vector<128x128xf32>
    %cst_27 = arith.constant dense<0.000000e+00> : vector<128xf32>
    %40 = vector.multi_reduction <add>, %39, %cst_27 [0] : vector<128x128xf32> to vector<128xf32>
    %41 = vector.shape_cast %40 : vector<128xf32> to vector<1x128xf32>
    %cst_28 = arith.constant 9.99999971E-10 : f32
    %42 = vector.broadcast %cst_28 : f32 to vector<1x128xf32>
    %43 = arith.addf %42, %41 : vector<1x128xf32>
    %44 = tpu.reciprocal %43 {approx = true} : vector<1x128xf32> -> vector<1x128xf32>
    %45 = vector.broadcast %44 : vector<1x128xf32> to vector<128x128xf32>
    %46 = arith.mulf %39, %45 : vector<128x128xf32>
    %47 = arith.truncf %28 : vector<64x128xf32> to vector<64x128xbf16>
    %48 = arith.truncf %46 : vector<128x128xf32> to vector<128x128xbf16>
    %cst_29 = arith.constant dense<0.000000e+00> : vector<64x128xf32>
    %49 = tpu.matmul %47, %48, %cst_29 {dimension_numbers = #tpu.dot_dimension_numbers<[1], [0], [0], [1], [0, 0, 1, 1], [], []>} : vector<64x128xbf16>, vector<128x128xbf16>, vector<64x128xf32> -> vector<64x128xf32>
    %c0_30 = arith.constant 0 : index
    %c0_31 = arith.constant 0 : index
    %c0_32 = arith.constant 0 : index
    %50 = vector.load %arg9[%c0_30, %c0_31, %c0_32] : memref<4x64x64xbf16, #tpu.memory_space<vmem>>, vector<1x64x64xbf16>
    %51 = vector.shape_cast %50 : vector<1x64x64xbf16> to vector<64x64xbf16>
    %52 = arith.subf %17, %49 : vector<64x128xf32>
    %53 = arith.truncf %52 : vector<64x128xf32> to vector<64x128xbf16>
    %cst_33 = arith.constant dense<0.000000e+00> : vector<64x128xf32>
    %54 = tpu.matmul %51, %53, %cst_33 {dimension_numbers = #tpu.dot_dimension_numbers<[1], [0], [0], [1], [0, 0, 1, 1], [], []>} : vector<64x64xbf16>, vector<64x128xbf16>, vector<64x128xf32> -> vector<64x128xf32>
    %c0_34 = arith.constant 0 : index
    %c0_35 = arith.constant 0 : index
    %c0_36 = arith.constant 0 : index
    %55 = vector.load %arg10[%c0_34, %c0_35, %c0_36] : memref<4x64x1xf32, #tpu.memory_space<vmem>>, vector<1x64x1xf32>
    %56 = vector.shape_cast %55 : vector<1x64x1xf32> to vector<64x1xf32>
    %57 = vector.broadcast %56 : vector<64x1xf32> to vector<64x128xf32>
    %58 = arith.addf %54, %57 : vector<64x128xf32>
    %cst_37 = arith.constant 0.000000e+00 : f32
    %59 = vector.broadcast %cst_37 : f32 to vector<64x128xf32>
    %60 = arith.maximumf %58, %59 : vector<64x128xf32>
    %61 = arith.addf %17, %60 : vector<64x128xf32>
    %c0_38 = arith.constant 0 : index
    %c0_39 = arith.constant 0 : index
    %c0_40 = arith.constant 0 : index
    %c0_41 = arith.constant 0 : index
    %62 = vector.load %arg11[%c0_38, %c0_39, %c0_40, %c0_41] : memref<1x4x64x128xf32, #tpu.memory_space<vmem>>, vector<1x1x64x128xf32>
    %63 = vector.shape_cast %62 : vector<1x1x64x128xf32> to vector<64x128xf32>
    %64 = vector.shape_cast %61 : vector<64x128xf32> to vector<1x1x64x128xf32>
    tpu.vector_store %arg11[%c0_38, %c0_39, %c0_40, %c0_41], %64 {strides = array<i32>} : memref<1x4x64x128xf32, #tpu.memory_space<vmem>>, vector<1x1x64x128xf32>,
    %65 = arith.truncf %61 : vector<64x128xf32> to vector<64x128xbf16>
    %c1 = arith.constant 1 : index
    %c0_42 = arith.constant 0 : index
    %c0_43 = arith.constant 0 : index
    %66 = vector.load %arg6[%c1, %c0_42, %c0_43] : memref<4x16x64xf32, #tpu.memory_space<vmem>>, vector<1x16x64xf32>
    %67 = vector.shape_cast %66 : vector<1x16x64xf32> to vector<16x64xf32>
    %cst_44 = arith.constant dense<0.000000e+00> : vector<16x128xf32>
    %68 = tpu.matmul %67, %61, %cst_44 {dimension_numbers = #tpu.dot_dimension_numbers<[1], [0], [0], [1], [0, 0, 1, 1], [], []>} : vector<16x64xf32>, vector<64x128xf32>, vector<16x128xf32> -> vector<16x128xf32>
    %c1_45 = arith.constant 1 : index
    %c0_46 = arith.constant 0 : index
    %c0_47 = arith.constant 0 : index
    %69 = vector.load %arg7[%c1_45, %c0_46, %c0_47] : memref<4x64x64xbf16, #tpu.memory_space<vmem>>, vector<1x64x64xbf16>
    %70 = vector.shape_cast %69 : vector<1x64x64xbf16> to vector<64x64xbf16>
    %cst_48 = arith.constant dense<0.000000e+00> : vector<64x128xf32>
    %71 = tpu.matmul %70, %65, %cst_48 {dimension_numbers = #tpu.dot_dimension_numbers<[1], [0], [0], [1], [0, 0, 1, 1], [], []>} : vector<64x64xbf16>, vector<64x128xbf16>, vector<64x128xf32> -> vector<64x128xf32>
    %c1_49 = arith.constant 1 : index
    %c0_50 = arith.constant 0 : index
    %c0_51 = arith.constant 0 : index
    %72 = vector.load %arg8[%c1_49, %c0_50, %c0_51] : memref<4x64x1xf32, #tpu.memory_space<vmem>>, vector<1x64x1xf32>
    %73 = vector.shape_cast %72 : vector<1x64x1xf32> to vector<64x1xf32>
    %74 = vector.broadcast %73 : vector<64x1xf32> to vector<64x128xf32>
    %75 = arith.addf %71, %74 : vector<64x128xf32>
    %cst_52 = arith.constant dense<0.000000e+00> : vector<128x128xf32>
    %76 = tpu.matmul %68, %68, %cst_52 {dimension_numbers = #tpu.dot_dimension_numbers<[0], [0], [1], [1], [0, 1, 1, 1], [], []>} : vector<16x128xf32>, vector<16x128xf32>, vector<128x128xf32> -> vector<128x128xf32>
    %cst_53 = arith.constant dense<0xFF800000> : vector<128xf32>
    %77 = vector.multi_reduction <maximumf>, %76, %cst_53 [1] : vector<128x128xf32> to vector<128xf32>
    %78 = vector.shape_cast %77 : vector<128xf32> to vector<128x1xf32>
    %79 = vector.broadcast %78 : vector<128x1xf32> to vector<128x128xf32>
    %80 = arith.subf %76, %79 : vector<128x128xf32>
    %81 = math.exp %80 : vector<128x128xf32>
    %cst_54 = arith.constant dense<0.000000e+00> : vector<128xf32>
    %82 = vector.multi_reduction <add>, %81, %cst_54 [1] : vector<128x128xf32> to vector<128xf32>
    %83 = vector.shape_cast %82 : vector<128xf32> to vector<128x1xf32>
    %84 = tpu.reciprocal %83 {approx = true} : vector<128x1xf32> -> vector<128x1xf32>
    %85 = vector.broadcast %84 : vector<128x1xf32> to vector<128x128xf32>
    %86 = arith.mulf %81, %85 : vector<128x128xf32>
    %cst_55 = arith.constant dense<0.000000e+00> : vector<128xf32>
    %87 = vector.multi_reduction <add>, %86, %cst_55 [0] : vector<128x128xf32> to vector<128xf32>
    %88 = vector.shape_cast %87 : vector<128xf32> to vector<1x128xf32>
    %cst_56 = arith.constant 9.99999971E-10 : f32
    %89 = vector.broadcast %cst_56 : f32 to vector<1x128xf32>
    %90 = arith.addf %89, %88 : vector<1x128xf32>
    %91 = tpu.reciprocal %90 {approx = true} : vector<1x128xf32> -> vector<1x128xf32>
    %92 = vector.broadcast %91 : vector<1x128xf32> to vector<128x128xf32>
    %93 = arith.mulf %86, %92 : vector<128x128xf32>
    %94 = arith.truncf %75 : vector<64x128xf32> to vector<64x128xbf16>
    %95 = arith.truncf %93 : vector<128x128xf32> to vector<128x128xbf16>
    %cst_57 = arith.constant dense<0.000000e+00> : vector<64x128xf32>
    %96 = tpu.matmul %94, %95, %cst_57 {dimension_numbers = #tpu.dot_dimension_numbers<[1], [0], [0], [1], [0, 0, 1, 1], [], []>} : vector<64x128xbf16>, vector<128x128xbf16>, vector<64x128xf32> -> vector<64x128xf32>
    %c1_58 = arith.constant 1 : index
    %c0_59 = arith.constant 0 : index
    %c0_60 = arith.constant 0 : index
    %97 = vector.load %arg9[%c1_58, %c0_59, %c0_60] : memref<4x64x64xbf16, #tpu.memory_space<vmem>>, vector<1x64x64xbf16>
    %98 = vector.shape_cast %97 : vector<1x64x64xbf16> to vector<64x64xbf16>
    %99 = arith.subf %61, %96 : vector<64x128xf32>
    %100 = arith.truncf %99 : vector<64x128xf32> to vector<64x128xbf16>
    %cst_61 = arith.constant dense<0.000000e+00> : vector<64x128xf32>
    %101 = tpu.matmul %98, %100, %cst_61 {dimension_numbers = #tpu.dot_dimension_numbers<[1], [0], [0], [1], [0, 0, 1, 1], [], []>} : vector<64x64xbf16>, vector<64x128xbf16>, vector<64x128xf32> -> vector<64x128xf32>
    %c1_62 = arith.constant 1 : index
    %c0_63 = arith.constant 0 : index
    %c0_64 = arith.constant 0 : index
    %102 = vector.load %arg10[%c1_62, %c0_63, %c0_64] : memref<4x64x1xf32, #tpu.memory_space<vmem>>, vector<1x64x1xf32>
    %103 = vector.shape_cast %102 : vector<1x64x1xf32> to vector<64x1xf32>
    %104 = vector.broadcast %103 : vector<64x1xf32> to vector<64x128xf32>
    %105 = arith.addf %101, %104 : vector<64x128xf32>
    %cst_65 = arith.constant 0.000000e+00 : f32
    %106 = vector.broadcast %cst_65 : f32 to vector<64x128xf32>
    %107 = arith.maximumf %105, %106 : vector<64x128xf32>
    %108 = arith.addf %61, %107 : vector<64x128xf32>
    %c0_66 = arith.constant 0 : index
    %c1_67 = arith.constant 1 : index
    %c0_68 = arith.constant 0 : index
    %c0_69 = arith.constant 0 : index
    %109 = vector.load %arg11[%c0_66, %c1_67, %c0_68, %c0_69] : memref<1x4x64x128xf32, #tpu.memory_space<vmem>>, vector<1x1x64x128xf32>
    %110 = vector.shape_cast %109 : vector<1x1x64x128xf32> to vector<64x128xf32>
    %111 = vector.shape_cast %108 : vector<64x128xf32> to vector<1x1x64x128xf32>
    tpu.vector_store %arg11[%c0_66, %c1_67, %c0_68, %c0_69], %111 {strides = array<i32>} : memref<1x4x64x128xf32, #tpu.memory_space<vmem>>, vector<1x1x64x128xf32>,
    %112 = arith.truncf %108 : vector<64x128xf32> to vector<64x128xbf16>
    %c2 = arith.constant 2 : index
    %c0_70 = arith.constant 0 : index
    %c0_71 = arith.constant 0 : index
    %113 = vector.load %arg6[%c2, %c0_70, %c0_71] : memref<4x16x64xf32, #tpu.memory_space<vmem>>, vector<1x16x64xf32>
    %114 = vector.shape_cast %113 : vector<1x16x64xf32> to vector<16x64xf32>
    %cst_72 = arith.constant dense<0.000000e+00> : vector<16x128xf32>
    %115 = tpu.matmul %114, %108, %cst_72 {dimension_numbers = #tpu.dot_dimension_numbers<[1], [0], [0], [1], [0, 0, 1, 1], [], []>} : vector<16x64xf32>, vector<64x128xf32>, vector<16x128xf32> -> vector<16x128xf32>
    %c2_73 = arith.constant 2 : index
    %c0_74 = arith.constant 0 : index
    %c0_75 = arith.constant 0 : index
    %116 = vector.load %arg7[%c2_73, %c0_74, %c0_75] : memref<4x64x64xbf16, #tpu.memory_space<vmem>>, vector<1x64x64xbf16>
    %117 = vector.shape_cast %116 : vector<1x64x64xbf16> to vector<64x64xbf16>
    %cst_76 = arith.constant dense<0.000000e+00> : vector<64x128xf32>
    %118 = tpu.matmul %117, %112, %cst_76 {dimension_numbers = #tpu.dot_dimension_numbers<[1], [0], [0], [1], [0, 0, 1, 1], [], []>} : vector<64x64xbf16>, vector<64x128xbf16>, vector<64x128xf32> -> vector<64x128xf32>
    %c2_77 = arith.constant 2 : index
    %c0_78 = arith.constant 0 : index
    %c0_79 = arith.constant 0 : index
    %119 = vector.load %arg8[%c2_77, %c0_78, %c0_79] : memref<4x64x1xf32, #tpu.memory_space<vmem>>, vector<1x64x1xf32>
    %120 = vector.shape_cast %119 : vector<1x64x1xf32> to vector<64x1xf32>
    %121 = vector.broadcast %120 : vector<64x1xf32> to vector<64x128xf32>
    %122 = arith.addf %118, %121 : vector<64x128xf32>
    %cst_80 = arith.constant dense<0.000000e+00> : vector<128x128xf32>
    %123 = tpu.matmul %115, %115, %cst_80 {dimension_numbers = #tpu.dot_dimension_numbers<[0], [0], [1], [1], [0, 1, 1, 1], [], []>} : vector<16x128xf32>, vector<16x128xf32>, vector<128x128xf32> -> vector<128x128xf32>
    %cst_81 = arith.constant dense<0xFF800000> : vector<128xf32>
    %124 = vector.multi_reduction <maximumf>, %123, %cst_81 [1] : vector<128x128xf32> to vector<128xf32>
    %125 = vector.shape_cast %124 : vector<128xf32> to vector<128x1xf32>
    %126 = vector.broadcast %125 : vector<128x1xf32> to vector<128x128xf32>
    %127 = arith.subf %123, %126 : vector<128x128xf32>
    %128 = math.exp %127 : vector<128x128xf32>
    %cst_82 = arith.constant dense<0.000000e+00> : vector<128xf32>
    %129 = vector.multi_reduction <add>, %128, %cst_82 [1] : vector<128x128xf32> to vector<128xf32>
    %130 = vector.shape_cast %129 : vector<128xf32> to vector<128x1xf32>
    %131 = tpu.reciprocal %130 {approx = true} : vector<128x1xf32> -> vector<128x1xf32>
    %132 = vector.broadcast %131 : vector<128x1xf32> to vector<128x128xf32>
    %133 = arith.mulf %128, %132 : vector<128x128xf32>
    %cst_83 = arith.constant dense<0.000000e+00> : vector<128xf32>
    %134 = vector.multi_reduction <add>, %133, %cst_83 [0] : vector<128x128xf32> to vector<128xf32>
    %135 = vector.shape_cast %134 : vector<128xf32> to vector<1x128xf32>
    %cst_84 = arith.constant 9.99999971E-10 : f32
    %136 = vector.broadcast %cst_84 : f32 to vector<1x128xf32>
    %137 = arith.addf %136, %135 : vector<1x128xf32>
    %138 = tpu.reciprocal %137 {approx = true} : vector<1x128xf32> -> vector<1x128xf32>
    %139 = vector.broadcast %138 : vector<1x128xf32> to vector<128x128xf32>
    %140 = arith.mulf %133, %139 : vector<128x128xf32>
    %141 = arith.truncf %122 : vector<64x128xf32> to vector<64x128xbf16>
    %142 = arith.truncf %140 : vector<128x128xf32> to vector<128x128xbf16>
    %cst_85 = arith.constant dense<0.000000e+00> : vector<64x128xf32>
    %143 = tpu.matmul %141, %142, %cst_85 {dimension_numbers = #tpu.dot_dimension_numbers<[1], [0], [0], [1], [0, 0, 1, 1], [], []>} : vector<64x128xbf16>, vector<128x128xbf16>, vector<64x128xf32> -> vector<64x128xf32>
    %c2_86 = arith.constant 2 : index
    %c0_87 = arith.constant 0 : index
    %c0_88 = arith.constant 0 : index
    %144 = vector.load %arg9[%c2_86, %c0_87, %c0_88] : memref<4x64x64xbf16, #tpu.memory_space<vmem>>, vector<1x64x64xbf16>
    %145 = vector.shape_cast %144 : vector<1x64x64xbf16> to vector<64x64xbf16>
    %146 = arith.subf %108, %143 : vector<64x128xf32>
    %147 = arith.truncf %146 : vector<64x128xf32> to vector<64x128xbf16>
    %cst_89 = arith.constant dense<0.000000e+00> : vector<64x128xf32>
    %148 = tpu.matmul %145, %147, %cst_89 {dimension_numbers = #tpu.dot_dimension_numbers<[1], [0], [0], [1], [0, 0, 1, 1], [], []>} : vector<64x64xbf16>, vector<64x128xbf16>, vector<64x128xf32> -> vector<64x128xf32>
    %c2_90 = arith.constant 2 : index
    %c0_91 = arith.constant 0 : index
    %c0_92 = arith.constant 0 : index
    %149 = vector.load %arg10[%c2_90, %c0_91, %c0_92] : memref<4x64x1xf32, #tpu.memory_space<vmem>>, vector<1x64x1xf32>
    %150 = vector.shape_cast %149 : vector<1x64x1xf32> to vector<64x1xf32>
    %151 = vector.broadcast %150 : vector<64x1xf32> to vector<64x128xf32>
    %152 = arith.addf %148, %151 : vector<64x128xf32>
    %cst_93 = arith.constant 0.000000e+00 : f32
    %153 = vector.broadcast %cst_93 : f32 to vector<64x128xf32>
    %154 = arith.maximumf %152, %153 : vector<64x128xf32>
    %155 = arith.addf %108, %154 : vector<64x128xf32>
    %c0_94 = arith.constant 0 : index
    %c2_95 = arith.constant 2 : index
    %c0_96 = arith.constant 0 : index
    %c0_97 = arith.constant 0 : index
    %156 = vector.load %arg11[%c0_94, %c2_95, %c0_96, %c0_97] : memref<1x4x64x128xf32, #tpu.memory_space<vmem>>, vector<1x1x64x128xf32>
    %157 = vector.shape_cast %156 : vector<1x1x64x128xf32> to vector<64x128xf32>
    %158 = vector.shape_cast %155 : vector<64x128xf32> to vector<1x1x64x128xf32>
    tpu.vector_store %arg11[%c0_94, %c2_95, %c0_96, %c0_97], %158 {strides = array<i32>} : memref<1x4x64x128xf32, #tpu.memory_space<vmem>>, vector<1x1x64x128xf32>,
    %159 = arith.truncf %155 : vector<64x128xf32> to vector<64x128xbf16>
    %c3 = arith.constant 3 : index
    %c0_98 = arith.constant 0 : index
    %c0_99 = arith.constant 0 : index
    %160 = vector.load %arg6[%c3, %c0_98, %c0_99] : memref<4x16x64xf32, #tpu.memory_space<vmem>>, vector<1x16x64xf32>
    %161 = vector.shape_cast %160 : vector<1x16x64xf32> to vector<16x64xf32>
    %cst_100 = arith.constant dense<0.000000e+00> : vector<16x128xf32>
    %162 = tpu.matmul %161, %155, %cst_100 {dimension_numbers = #tpu.dot_dimension_numbers<[1], [0], [0], [1], [0, 0, 1, 1], [], []>} : vector<16x64xf32>, vector<64x128xf32>, vector<16x128xf32> -> vector<16x128xf32>
    %c3_101 = arith.constant 3 : index
    %c0_102 = arith.constant 0 : index
    %c0_103 = arith.constant 0 : index
    %163 = vector.load %arg7[%c3_101, %c0_102, %c0_103] : memref<4x64x64xbf16, #tpu.memory_space<vmem>>, vector<1x64x64xbf16>
    %164 = vector.shape_cast %163 : vector<1x64x64xbf16> to vector<64x64xbf16>
    %cst_104 = arith.constant dense<0.000000e+00> : vector<64x128xf32>
    %165 = tpu.matmul %164, %159, %cst_104 {dimension_numbers = #tpu.dot_dimension_numbers<[1], [0], [0], [1], [0, 0, 1, 1], [], []>} : vector<64x64xbf16>, vector<64x128xbf16>, vector<64x128xf32> -> vector<64x128xf32>
    %c3_105 = arith.constant 3 : index
    %c0_106 = arith.constant 0 : index
    %c0_107 = arith.constant 0 : index
    %166 = vector.load %arg8[%c3_105, %c0_106, %c0_107] : memref<4x64x1xf32, #tpu.memory_space<vmem>>, vector<1x64x1xf32>
    %167 = vector.shape_cast %166 : vector<1x64x1xf32> to vector<64x1xf32>
    %168 = vector.broadcast %167 : vector<64x1xf32> to vector<64x128xf32>
    %169 = arith.addf %165, %168 : vector<64x128xf32>
    %cst_108 = arith.constant dense<0.000000e+00> : vector<128x128xf32>
    %170 = tpu.matmul %162, %162, %cst_108 {dimension_numbers = #tpu.dot_dimension_numbers<[0], [0], [1], [1], [0, 1, 1, 1], [], []>} : vector<16x128xf32>, vector<16x128xf32>, vector<128x128xf32> -> vector<128x128xf32>
    %cst_109 = arith.constant dense<0xFF800000> : vector<128xf32>
    %171 = vector.multi_reduction <maximumf>, %170, %cst_109 [1] : vector<128x128xf32> to vector<128xf32>
    %172 = vector.shape_cast %171 : vector<128xf32> to vector<128x1xf32>
    %173 = vector.broadcast %172 : vector<128x1xf32> to vector<128x128xf32>
    %174 = arith.subf %170, %173 : vector<128x128xf32>
    %175 = math.exp %174 : vector<128x128xf32>
    %cst_110 = arith.constant dense<0.000000e+00> : vector<128xf32>
    %176 = vector.multi_reduction <add>, %175, %cst_110 [1] : vector<128x128xf32> to vector<128xf32>
    %177 = vector.shape_cast %176 : vector<128xf32> to vector<128x1xf32>
    %178 = tpu.reciprocal %177 {approx = true} : vector<128x1xf32> -> vector<128x1xf32>
    %179 = vector.broadcast %178 : vector<128x1xf32> to vector<128x128xf32>
    %180 = arith.mulf %175, %179 : vector<128x128xf32>
    %cst_111 = arith.constant dense<0.000000e+00> : vector<128xf32>
    %181 = vector.multi_reduction <add>, %180, %cst_111 [0] : vector<128x128xf32> to vector<128xf32>
    %182 = vector.shape_cast %181 : vector<128xf32> to vector<1x128xf32>
    %cst_112 = arith.constant 9.99999971E-10 : f32
    %183 = vector.broadcast %cst_112 : f32 to vector<1x128xf32>
    %184 = arith.addf %183, %182 : vector<1x128xf32>
    %185 = tpu.reciprocal %184 {approx = true} : vector<1x128xf32> -> vector<1x128xf32>
    %186 = vector.broadcast %185 : vector<1x128xf32> to vector<128x128xf32>
    %187 = arith.mulf %180, %186 : vector<128x128xf32>
    %188 = arith.truncf %169 : vector<64x128xf32> to vector<64x128xbf16>
    %189 = arith.truncf %187 : vector<128x128xf32> to vector<128x128xbf16>
    %cst_113 = arith.constant dense<0.000000e+00> : vector<64x128xf32>
    %190 = tpu.matmul %188, %189, %cst_113 {dimension_numbers = #tpu.dot_dimension_numbers<[1], [0], [0], [1], [0, 0, 1, 1], [], []>} : vector<64x128xbf16>, vector<128x128xbf16>, vector<64x128xf32> -> vector<64x128xf32>
    %c3_114 = arith.constant 3 : index
    %c0_115 = arith.constant 0 : index
    %c0_116 = arith.constant 0 : index
    %191 = vector.load %arg9[%c3_114, %c0_115, %c0_116] : memref<4x64x64xbf16, #tpu.memory_space<vmem>>, vector<1x64x64xbf16>
    %192 = vector.shape_cast %191 : vector<1x64x64xbf16> to vector<64x64xbf16>
    %193 = arith.subf %155, %190 : vector<64x128xf32>
    %194 = arith.truncf %193 : vector<64x128xf32> to vector<64x128xbf16>
    %cst_117 = arith.constant dense<0.000000e+00> : vector<64x128xf32>
    %195 = tpu.matmul %192, %194, %cst_117 {dimension_numbers = #tpu.dot_dimension_numbers<[1], [0], [0], [1], [0, 0, 1, 1], [], []>} : vector<64x64xbf16>, vector<64x128xbf16>, vector<64x128xf32> -> vector<64x128xf32>
    %c3_118 = arith.constant 3 : index
    %c0_119 = arith.constant 0 : index
    %c0_120 = arith.constant 0 : index
    %196 = vector.load %arg10[%c3_118, %c0_119, %c0_120] : memref<4x64x1xf32, #tpu.memory_space<vmem>>, vector<1x64x1xf32>
    %197 = vector.shape_cast %196 : vector<1x64x1xf32> to vector<64x1xf32>
    %198 = vector.broadcast %197 : vector<64x1xf32> to vector<64x128xf32>
    %199 = arith.addf %195, %198 : vector<64x128xf32>
    %cst_121 = arith.constant 0.000000e+00 : f32
    %200 = vector.broadcast %cst_121 : f32 to vector<64x128xf32>
    %201 = arith.maximumf %199, %200 : vector<64x128xf32>
    %202 = arith.addf %155, %201 : vector<64x128xf32>
    %c0_122 = arith.constant 0 : index
    %c3_123 = arith.constant 3 : index
    %c0_124 = arith.constant 0 : index
    %c0_125 = arith.constant 0 : index
    %203 = vector.load %arg11[%c0_122, %c3_123, %c0_124, %c0_125] : memref<1x4x64x128xf32, #tpu.memory_space<vmem>>, vector<1x1x64x128xf32>
    %204 = vector.shape_cast %203 : vector<1x1x64x128xf32> to vector<64x128xf32>
    %205 = vector.shape_cast %202 : vector<64x128xf32> to vector<1x1x64x128xf32>
    tpu.vector_store %arg11[%c0_122, %c3_123, %c0_124, %c0_125], %205 {strides = array<i32>} : memref<1x4x64x128xf32, #tpu.memory_space<vmem>>, vector<1x1x64x128xf32>,
    return
  }
  func.func @transform_0(%arg0: i32) -> (i32, i32, i32) {
    %c0_i32 = arith.constant 0 : i32
    %c0_i32_0 = arith.constant 0 : i32
    %c0_i32_1 = arith.constant 0 : i32
    return %arg0, %c0_i32, %c0_i32_0 : i32, i32, i32
  }
  func.func @transform_1(%arg0: i32) -> (i32, i32) {
    %c0_i32 = arith.constant 0 : i32
    %c0_i32_0 = arith.constant 0 : i32
    %c0_i32_1 = arith.constant 0 : i32
    return %c0_i32, %c0_i32_0 : i32, i32
  }
  func.func @transform_2(%arg0: i32) -> (i32, i32) {
    %c0_i32 = arith.constant 0 : i32
    %c0_i32_0 = arith.constant 0 : i32
    %c0_i32_1 = arith.constant 0 : i32
    return %c0_i32, %c0_i32_0 : i32, i32
  }
  func.func @transform_3(%arg0: i32) -> (i32, i32) {
    %c0_i32 = arith.constant 0 : i32
    %c0_i32_0 = arith.constant 0 : i32
    %c0_i32_1 = arith.constant 0 : i32
    return %c0_i32, %c0_i32_0 : i32, i32
  }
  func.func @transform_4(%arg0: i32) -> (i32, i32) {
    %c0_i32 = arith.constant 0 : i32
    %c0_i32_0 = arith.constant 0 : i32
    %c0_i32_1 = arith.constant 0 : i32
    return %c0_i32, %c0_i32_0 : i32, i32
  }
  func.func @transform_5(%arg0: i32) -> (i32, i32, i32) {
    %c0_i32 = arith.constant 0 : i32
    %c0_i32_0 = arith.constant 0 : i32
    %c0_i32_1 = arith.constant 0 : i32
    %c0_i32_2 = arith.constant 0 : i32
    return %c0_i32, %c0_i32_0, %c0_i32_1 : i32, i32, i32
  }
  func.func @transform_6(%arg0: i32) -> (i32, i32, i32) {
    %c0_i32 = arith.constant 0 : i32
    %c0_i32_0 = arith.constant 0 : i32
    %c0_i32_1 = arith.constant 0 : i32
    %c0_i32_2 = arith.constant 0 : i32
    return %c0_i32, %c0_i32_0, %c0_i32_1 : i32, i32, i32
  }
  func.func @transform_7(%arg0: i32) -> (i32, i32, i32) {
    %c0_i32 = arith.constant 0 : i32
    %c0_i32_0 = arith.constant 0 : i32
    %c0_i32_1 = arith.constant 0 : i32
    %c0_i32_2 = arith.constant 0 : i32
    return %c0_i32, %c0_i32_0, %c0_i32_1 : i32, i32, i32
  }
  func.func @transform_8(%arg0: i32) -> (i32, i32, i32) {
    %c0_i32 = arith.constant 0 : i32
    %c0_i32_0 = arith.constant 0 : i32
    %c0_i32_1 = arith.constant 0 : i32
    %c0_i32_2 = arith.constant 0 : i32
    return %c0_i32, %c0_i32_0, %c0_i32_1 : i32, i32, i32
  }
  func.func @transform_9(%arg0: i32) -> (i32, i32, i32) {
    %c0_i32 = arith.constant 0 : i32
    %c0_i32_0 = arith.constant 0 : i32
    %c0_i32_1 = arith.constant 0 : i32
    %c0_i32_2 = arith.constant 0 : i32
    return %c0_i32, %c0_i32_0, %c0_i32_1 : i32, i32, i32
  }
  func.func @transform_10(%arg0: i32) -> (i32, i32, i32, i32) {
    %c0_i32 = arith.constant 0 : i32
    %c0_i32_0 = arith.constant 0 : i32
    %c0_i32_1 = arith.constant 0 : i32
    %c0_i32_2 = arith.constant 0 : i32
    return %arg0, %c0_i32, %c0_i32_0, %c0_i32_1 : i32, i32, i32, i32
  }
}

</mosaic_0001>

<bundles_post_ra>
// kernel: tpu_custom_call.1
= control target key start
LH: loop header
LB: loop body
LE: loop exit
PB: predicated region body
PF: predicated region fallthrough
CT: control target
= control target key end

     0   :  { %15 = vsyncpa [#allocation3], 0  ;;  %s7332_s0 = inlined_call_operand.vmem [shape: f32[2,64,128], index: 0, kind: input, shape index: {}]   ;;  %s7333_s1 = inlined_call_operand.vmem [shape: bf16[64,64], index: 1, kind: input, shape index: {}]   ;;  %s7334_s2 = inlined_call_operand.vmem [shape: f32[64,1], index: 2, kind: input, shape index: {}]   ;;  %s7335_s3 = inlined_call_operand.vmem [shape: bf16[64,64], index: 3, kind: input, shape index: {}]   ;;  %s7336_s4 = inlined_call_operand.vmem [shape: f32[64,1], index: 4, kind: input, shape index: {}]   ;;  %s7337_s5 = inlined_call_operand.vmem [shape: f32[4,16,64], index: 5, kind: input, shape index: {}]   ;;  %s7338_s6 = inlined_call_operand.vmem [shape: bf16[4,64,64], index: 6, kind: input, shape index: {}]   ;;  %s7339_s7 = inlined_call_operand.vmem [shape: f32[4,64,1], index: 7, kind: input, shape index: {}]   ;;  %s7340_s8 = inlined_call_operand.vmem [shape: bf16[4,64,64], index: 8, kind: input, shape index: {}]   ;;  %s7341_s9 = inlined_call_operand.vmem [shape: f32[4,64,1], index: 9, kind: input, shape index: {}]   ;;  %s7342_s10 = inlined_call_operand.hbm [shape: f32[2,4,64,128], index: 10, kind: output, shape index: {}]  }
   0x1   :  { %17 = vsyncpa [#allocation3 + $0x1], 0  ;;  %s5895_s13 = smov 0   ;;  %s5897_s14 = smov 0  }
   0x2   :  { %s5899_s15 = smov 0   ;;  %s5901_s16 = smov 0  }
   0x3 LB: > { %s5916_s17 = sadd.s32 4294967295, %s5834_s16   ;;  %s4449_s18 = sadd.s32 4294967294, %s5834_s16   ;;  %s5834_s16 = sphi %s5901_s16, %s7350_s16   ;;  %s5830_s15 = sphi %s5899_s15, %s7349_s15   ;;  %s5826_s14 = sphi %s5897_s14, %s7348_s14   ;;  %s5822_s13 = sphi %s5895_s13, %s7347_s13  }
   0x4   : > { %s5920_s19 = sadd.s32 1, %s5834_s16   ;;  %s245_s20 = sadd.s32 1, %s5830_s15 }
   0x5   : > { %s242_s21 = ssub.s32 %s5834_s16, %s5920_s19  ;;  %p255_p0 = scmp.ne.s32.totalorder %s5830_s15, %s5826_s14 }
   0x6   : > { %p243_p1 = scmp.eq.s32.totalorder %s242_s21, 0  ;;  %p256_p2 = scmp.eq.s32.totalorder %s5916_s17, 1 }
   0x7   : > { %p261_p3 = scmp.ne.s32.totalorder %s5826_s14, %s5822_s13  ;;  %p262_p4 = scmp.eq.s32.totalorder %s4449_s18, 1 }
   0x8   : > { %s5931_s22 = scalar_select %p243_p1, %s5830_s15, %s245_s20  }
   0x9   : > { %p5933_p5 = por %p256_p2, %p255_p0  ;;  %p5937_p6 = por %p262_p4, %p261_p3 }
   0xa   : > { %p4452_p7 = scmp.ge.s32.totalorder %s5834_s16, 1  ;;  %p315_p8 = scmp.lt.s32.totalorder %s5834_s16, 3 }
   0xc   : > { %p316_p9 = pnand %p4452_p7, %p315_p8 }
   0xd   : > { %p353_p10 = scmp.lt.s32.totalorder (!%p316_p9), %s5916_s17, 1  ;;  %s7343_s18 = sand.u32 (!%p316_p9), 1, %s5826_s14  }
   0xe   : > { %319 = sbr.rel (%p316_p9) target bundleno = 6122 (0x17ea), region = 60  ;;  %s4453_s20 = sshll.u32 (!%p316_p9), %s7343_s18, 8 }
   0xf   : > { %s6328_s25 = scalar_lea.vmem (!%p316_p9), [#allocation2], %s4453_s20  ;;  %s4740_s30 = sshll.u32 (!%p316_p9), %s5916_s17, 12 }
  0x10   : > { %s4387_s11 = sshll.u32 (!%p316_p9), %s6328_s25, 4  ;;  %s7283_s18 = scalar_lea.hbm (!%p316_p9), %s7342_s10, %s4740_s30  ;;  %s7285_s11 = int_to_ptr.vmem [resolvable:$true] %s4387_s11 }
  0x11   : > { %s5837_s29 = smov (!%p316_p9), [#allocation2]  }
  0x13   : > { %v5470_v0 = vld [vmem:[%s7333_s1] sm:$0xff]   ;;  %vm447_vm0 = vcmask 523264   ;;  %s354_s27 = scalar_select %p353_p10, %s5916_s17, 1  ;;  %v5836_v1 = vmov 0   ;;  %v385_v2 = vld [vmem:[%s7334_s2 + $0x30] sm:$0xff]  ;;  %v386_v4 = vld [vmem:[%s7334_s2 + $0x38] sm:$0xff] }
  0x14   : > { %4989 = vmatprep.mubr.msk.bf16.mxu0 %vm447_vm0, %v5470_v0  ;;  %5468 = vset.pattern.permute.xlu0 %v5836_v1  ;;  %v383_v3 = vld [vmem:[%s7334_s2 + $0x20] sm:$0xff]  ;;  %v384_v10 = vld [vmem:[%s7334_s2 + $0x28] sm:$0xff]  ;;  %v381_v14 = vld [vmem:[%s7334_s2 + $0x10] sm:$0xff]  ;;  %vm970_vm1 = vcmask 130048   ;;  %s7346_s17 = sand.u32 1, %s5826_s14  }
  0x15   : > { %s4739_s28 = sshll.u32 %s354_s27, 6  ;;  %5469 = vset.pattern.permute.xlu1 %v5836_v1  ;;  %419 = vperm.xlu0 %5468, %v385_v2   ;;  %v382_v18 = vld [vmem:[%s7334_s2 + $0x18] sm:$0xff]  ;;  %v379_v19 = vld [vmem:[%s7334_s2] sm:$0xff]  ;;  %v380_v20 = vld [vmem:[%s7334_s2 + $0x8] sm:$0xff]  ;;  %s7292_s26 = scalar_lea.sflag [#allocation3], %s7346_s17 }
  0x16   : > { %s357_s21 = scalar_lea.vmem %s7332_s0, %s4739_s28  ;;  %409 = vperm.xlu1 %5469, %v383_v3   ;;  %v552_v22 = vld [vmem:[%s7336_s4 + $0x38] sm:$0xff]  ;;  %v551_v23 = vld [vmem:[%s7336_s4 + $0x30] sm:$0xff]  ;;  %v5471_v24 = vld [vmem:[%s7333_s1 + $0x8] sm:$0xff]   ;;  %s5774_s27 = scalar_lea.vmem %s7285_s11, 4096 }
  0x17   : > { %v365_v5 = vld [vmem:[%s357_s21 + $0x30] sm:$0xff]  ;;  %v366_v6 = vld [vmem:[%s357_s21 + $0x38] sm:$0xff]  ;;  %v363_v7 = vld [vmem:[%s357_s21 + $0x20] sm:$0xff]  ;;  %p5775_p11 = scmp.ne.s32.totalorder %s7285_s11, %s5774_s27 }
  0x18   : > { %v378_v8 = vpack.c.bf16 %v366_v6, %v365_v5  ;;  %v364_v9 = vld [vmem:[%s357_s21 + $0x28] sm:$0xff]  ;;  %v361_v12 = vld [vmem:[%s357_s21 + $0x10] sm:$0xff]  ;;  %v362_v13 = vld [vmem:[%s357_s21 + $0x18] sm:$0xff] }
  0x19   : > { %v377_v11 = vpack.c.bf16 %v364_v9, %v363_v7  ;;  %424 = vperm.xlu0 %5468, %v386_v4   ;;  %v376_v15 = vpack.c.bf16 %v362_v13, %v361_v12  ;;  %v359_v16 = vld [vmem:[%s357_s21] sm:$0xff]  ;;  %v360_v17 = vld [vmem:[%s357_s21 + $0x8] sm:$0xff]  ;;  %v5472_v25 = vld [vmem:[%s7333_s1 + $0x10] sm:$0xff]   ;;  %p5776_p12 = pnand %p5775_p11, %p5933_p5  ;;  %s5778_s21 = sshll.u32 %s5837_s29, 4  ;;  %s5779_s21 = int_to_ptr.vmem [resolvable:$false] %s5778_s21 }
  0x1a   : > { %4981 = vmatprep.subr.bf16.mxu0 %v378_v8  ;;  %414 = vperm.xlu1 %5469, %v384_v10   ;;  %v375_v21 = vpack.c.bf16 %v360_v17, %v359_v16  ;;  %v550_v26 = vld [vmem:[%s7336_s4 + $0x28] sm:$0xff]  ;;  %v549_v27 = vld [vmem:[%s7336_s4 + $0x20] sm:$0xff]  ;;  %v548_v28 = vld [vmem:[%s7336_s4 + $0x18] sm:$0xff]  ;;  %s5780_s28 = scalar_lea.vmem %s5779_s21, 8192  ;;  %p5781_p0 = scmp.lt.s32.totalorder %s7285_s11, %s5779_s21 }
  0x1b   : > { %4982 = vmatpush3.bf16.msra.mxu0 %v378_v8  ;;  %v547_v29 = vld [vmem:[%s7336_s4 + $0x10] sm:$0xff]  ;;  %v5473_v30 = vld [vmem:[%s7333_s1 + $0x18] sm:$0xff]   ;;  %v546_v31 = vld [vmem:[%s7336_s4 + $0x8] sm:$0xff]  ;;  %p5777_p13 = pneg %p5776_p12  ;;  %p5782_p1 = scmp.lt.s32.totalorder %s5780_s28, %s5774_s27 }
  0x1c   : > { %4983 = vmatprep.subr.bf16.mxu0 %v377_v11  ;;  %v545_v32 = vld [vmem:[%s7336_s4] sm:$0xff]  ;;  %v5475_v6 = vld [vmem:[%s7335_s3 + $0x8] sm:$0xff]   ;;  %v5476_v7 = vld [vmem:[%s7335_s3 + $0x10] sm:$0xff]  }
  0x1d   : > { %399 = vperm.xlu0 %5468, %v381_v14   ;;  %v5474_v33 = vld [vmem:[%s7335_s3] sm:$0xff]   ;;  %v5477_v8 = vld [vmem:[%s7335_s3 + $0x18] sm:$0xff]   ;;  %p5783_p2 = por %p5782_p1, %p5781_p0 }
  0x1e   : > { %404 = vperm.xlu1 %5469, %v382_v18   ;;  %5005 = vmatprep.mubr.msk.bf16.mxu1 %vm447_vm0, %v5474_v33  ;;  %v702_v9 = vld [vmem:[%s7337_s5] sm:$0xff] }
  0x1f   : > { %4984 = vmatpush3.bf16.msra.mxu0 %v377_v11  ;;  %p5784_p3 = pnand %p5783_p2, %p5777_p13 }
  0x20   : > { %4985 = vmatprep.subr.bf16.mxu0 %v376_v15 }
  0x21   : > { %389 = vperm.xlu0 %5468, %v379_v19  }
  0x22   : > { %394 = vperm.xlu1 %5469, %v380_v20  }
  0x23   : > { %4986 = vmatpush3.bf16.msra.mxu0 %v376_v15 }
  0x24   : > { %4987 = vmatprep.subr.bf16.mxu0 %v375_v21 }
  0x25   : > { %590 = vperm.xlu0 %5468, %v552_v22  }
  0x26   : > { %585 = vperm.xlu1 %5469, %v551_v23  }
  0x27   : > { %4988 = vmatpush3.bf16.msra.mxu0 %v375_v21 }
  0x29   : > { %580 = vperm.xlu0 %5468, %v550_v26  }
  0x2a   : > { %4990 = vmatmul.mubr.msk.bf16.vlgmr.msra.gmra.mxu0 %vm447_vm0, %v5471_v24  ;;  %575 = vperm.xlu1 %5469, %v549_v27  }
  0x2b   : > { %4993 = vmatprep.mubr.msk.bf16.mxu0 %vm447_vm0, %v5472_v25 }
  0x2d   : > { %570 = vperm.xlu0 %5468, %v548_v28  }
  0x2e   : > { %565 = vperm.xlu1 %5469, %v547_v29  }
  0x31   : > { %560 = vperm.xlu0 %5468, %v546_v31  }
  0x32   : > { %4994 = vmatmul.mubr.msk.bf16.gmra.mxu0 %vm447_vm0, %v5473_v30  ;;  %555 = vperm.xlu1 %5469, %v545_v32  }
  0x33   : > { %5029 = vmatprep.mubr.msk.f32.mxu0 %vm447_vm0, %v702_v9  ;;  %v5478_v9 = vld [vmem:[%s7338_s6] sm:$0xff]  }
  0x90   : > { %v420_v36 = vpop.permute.xlu0 %419 }
  0x91   : > { %v410_v34 = vpop.permute.xlu1 %409 }
  0x94   : > { %v425_v41 = vpop.permute.xlu0 %424 }
  0x95   : > { %v415_v39 = vpop.permute.xlu1 %414 }
  0x98   : > { %v400_v49 = vpop.permute.xlu0 %399 }
  0x99   : > { %v405_v45 = vpop.permute.xlu1 %404 }
  0x9c   : > { %v390_v63 = vpop.permute.xlu0 %389 }
  0x9d   : > { %v395_v59 = vpop.permute.xlu1 %394 }
  0xa0   : > { %v591_v10 = vpop.permute.xlu0 %590 }
  0xa1   : > { %v586_v12 = vpop.permute.xlu1 %585 }
  0xa4   : > { %v581_v15 = vpop.permute.xlu0 %580 }
  0xa5   : > { %v576_v17 = vpop.permute.xlu1 %575 }
  0xa8   : > { %v571_v21 = vpop.permute.xlu0 %570 }
  0xa9   : > { %v566_v25 = vpop.permute.xlu1 %565 }
  0xea   : > { %v4991_v35 = vpop.f32.mrf.mxu0 }
  0xeb   : > { %v503_v55 = vadd.f32 %v4991_v35, %v400_v49  ;;  %v561_v35 = vpop.permute.xlu0 %560 }
  0xec   : > { %v494_v37 = vpop.f32.mrf.mxu0 }
  0xed   : > { %v527_v0 = vmax.f32 %v503_v55, 0.0  ;;  %v495_v1 = vadd.f32 %v494_v37, %v390_v63 }
  0xee   : > { %v4992_v38 = vpop.f32.mrf.mxu0 }
  0xef   : > { %v506_v51 = vadd.f32 %v4992_v38, %v405_v45  ;;  %v525_v4 = vmax.f32 %v495_v1, 0.0 }
  0xf0   : > { %v497_v40 = vpop.f32.mrf.mxu0 }
  0xf1   : > { %v528_v60 = vmax.f32 %v506_v51, 0.0  ;;  %v498_v61 = vadd.f32 %v497_v40, %v395_v59 }
  0xf2   : > { %v4995_v42 = vpop.f32.mrf.mxu0 }
  0xf3   : > { %v519_v44 = vadd.f32 %v4995_v42, %v420_v36  ;;  %v542_v2 = vpack.c.bf16 %v528_v60, %v527_v0  ;;  %v526_v3 = vmax.f32 %v498_v61, 0.0 }
  0xf4   : > { %v510_v43 = vpop.f32.mrf.mxu0 }
  0xf5   : > { %v511_v47 = vadd.f32 %v510_v43, %v410_v34  ;;  %v531_v52 = vmax.f32 %v519_v44, 0.0  ;;  %v541_v5 = vpack.c.bf16 %v526_v3, %v525_v4 }
  0xf6   : > { %v4996_v46 = vpop.f32.mrf.mxu0 }
  0xf7   : > { %v522_v48 = vadd.f32 %v4996_v46, %v425_v41  ;;  %v529_v56 = vmax.f32 %v511_v47, 0.0  ;;  %v703_v46 = vld [vmem:[%s7337_s5 + $0x8] sm:$0xff] }
  0xf8   : > { %v513_v50 = vpop.f32.mrf.mxu0 }
  0xf9   : > { %v532_v53 = vmax.f32 %v522_v48, 0.0  ;;  %v514_v54 = vadd.f32 %v513_v50, %v415_v39  ;;  %v556_v39 = vpop.permute.xlu1 %555 }
  0xfb   : > { %v530_v57 = vmax.f32 %v514_v54, 0.0  ;;  %v544_v58 = vpack.c.bf16 %v532_v53, %v531_v52 }
  0xfd   : > { %v543_v62 = vpack.c.bf16 %v530_v57, %v529_v56  ;;  %4997 = vmatprep.subr.bf16.mxu1 %v544_v58 }
  0xfe   : > { %4998 = vmatpush3.bf16.msra.mxu1 %v544_v58 }
  0xff   : > { %4999 = vmatprep.subr.bf16.mxu1 %v543_v62 }
 0x102   : > { %5000 = vmatpush3.bf16.msra.mxu1 %v543_v62 }
 0x103   : > { %5001 = vmatprep.subr.bf16.mxu1 %v542_v2 }
 0x106   : > { %5002 = vmatpush3.bf16.msra.mxu1 %v542_v2 }
 0x107   : > { %5003 = vmatprep.subr.bf16.mxu1 %v541_v5 }
 0x10a   : > { %5004 = vmatpush3.bf16.msra.mxu1 %v541_v5 }
 0x10d   : > { %5006 = vmatmul.mubr.msk.bf16.vlgmr.msra.gmra.mxu1 %vm447_vm0, %v5475_v6 }
 0x10e   : > { %5009 = vmatprep.mubr.msk.bf16.mxu1 %vm447_vm0, %v5476_v7 }
 0x115   : > { %5010 = vmatmul.mubr.msk.bf16.gmra.mxu1 %vm447_vm0, %v5477_v8 }
 0x116   : > { %5040 = vmatprep.mubr.msk.bf16.mxu1 %vm447_vm0, %v5478_v9 }
 0x1cd   : > { %v5007_v11 = vpop.f32.mrf.mxu1 }
 0x1ce   : > { %v668_v31 = vadd.f32 %v5007_v11, %v566_v25  ;;  %v5479_v11 = vld [vmem:[%s7338_s6 + $0x8] sm:$0xff]  }
 0x1cf   : > { %v659_v13 = vpop.f32.mrf.mxu1 }
 0x1d0   : > { %v6050_v40 = vmax.f32 %v668_v31, 0.0  ;;  %v660_v41 = vadd.f32 %v659_v13, %v556_v39  ;;  %v5480_v13 = vld [vmem:[%s7338_s6 + $0x10] sm:$0xff]  }
 0x1d1   : > { %v5008_v14 = vpop.f32.mrf.mxu1 }
 0x1d2   : > { %v671_v27 = vadd.f32 %v5008_v14, %v571_v21  ;;  %v6060_v44 = vmax.f32 %v660_v41, 0.0 }
 0x1d3   : > { %v662_v16 = vpop.f32.mrf.mxu1 }
 0x1d4   : > { %v6044_v36 = vmax.f32 %v671_v27, 0.0  ;;  %v663_v37 = vadd.f32 %v662_v16, %v561_v35 }
 0x1d5   : > { %v5011_v18 = vpop.f32.mrf.mxu1 }
 0x1d6   : > { %v684_v20 = vadd.f32 %v5011_v18, %v586_v12  ;;  %v6054_v42 = vmax.f32 %v663_v37, 0.0  ;;  %v699_v43 = vpack.c.bf16 %v6044_v36, %v6050_v40 }
 0x1d7   : > { %v675_v19 = vpop.f32.mrf.mxu1 }
 0x1d8   : > { %v676_v23 = vadd.f32 %v675_v19, %v576_v17  ;;  %v6032_v28 = vmax.f32 %v684_v20, 0.0  ;;  %v698_v45 = vpack.c.bf16 %v6054_v42, %v6060_v44 }
 0x1d9   : > { %v5012_v22 = vpop.f32.mrf.mxu1 }
 0x1da   : > { %v687_v24 = vadd.f32 %v5012_v22, %v591_v10  ;;  %v6036_v32 = vmax.f32 %v676_v23, 0.0 }
 0x1db   : > { %v678_v26 = vpop.f32.mrf.mxu1 }
 0x1dc   : > { %v6034_v29 = vmax.f32 %v687_v24, 0.0  ;;  %v679_v30 = vadd.f32 %v678_v26, %v581_v15  ;;  %v5481_v15 = vld [vmem:[%s7338_s6 + $0x18] sm:$0xff]  }
 0x1de   : > { %v6038_v33 = vmax.f32 %v679_v30, 0.0  ;;  %5013 = vmatprep.subr.mxu0 %v6034_v29  ;;  %v701_v34 = vpack.c.bf16 %v6034_v29, %v6032_v28 }
 0x1df   : > { %5014 = vmatpush3.msra.mxu0 %v6034_v29 }
 0x1e0   : > { %5015 = vmatprep.subr.mxu0 %v6032_v28  ;;  %5032 = vmatprep.subr.bf16.mxu1 %v701_v34  ;;  %v700_v38 = vpack.c.bf16 %v6038_v33, %v6036_v32 }
 0x1e1   : > { %5016 = vmatpush3.msra.mxu0 %v6032_v28  ;;  %5033 = vmatpush3.bf16.msra.mxu1 %v701_v34 }
 0x1e2   : > { %5017 = vmatprep.subr.mxu0 %v6038_v33  ;;  %5034 = vmatprep.subr.bf16.mxu1 %v700_v38 }
 0x1e3   : > { %5018 = vmatpush3.msra.mxu0 %v6038_v33 }
 0x1e4   : > { %5019 = vmatprep.subr.mxu0 %v6036_v32 }
 0x1e5   : > { %5020 = vmatpush3.msra.mxu0 %v6036_v32  ;;  %5035 = vmatpush3.bf16.msra.mxu1 %v700_v38 }
 0x1e6   : > { %5021 = vmatprep.subr.mxu0 %v6044_v36  ;;  %5036 = vmatprep.subr.bf16.mxu1 %v699_v43 }
 0x1e7   : > { %5022 = vmatpush3.msra.mxu0 %v6044_v36 }
 0x1e8   : > { %5023 = vmatprep.subr.mxu0 %v6050_v40 }
 0x1e9   : > { %5024 = vmatpush3.msra.mxu0 %v6050_v40  ;;  %5037 = vmatpush3.bf16.msra.mxu1 %v699_v43 }
 0x1ea   : > { %5025 = vmatprep.subr.mxu0 %v6054_v42  ;;  %5038 = vmatprep.subr.bf16.mxu1 %v698_v45 }
 0x1eb   : > { %5026 = vmatpush3.msra.mxu0 %v6054_v42 }
 0x1ec   : > { %5027 = vmatprep.subr.mxu0 %v6060_v44 }
 0x1ed   : > { %5028 = vmatpush3.msra.mxu0 %v6060_v44  ;;  %5039 = vmatpush3.bf16.msra.mxu1 %v698_v45 }
 0x1ee   : > { %5030 = vmatmul.mubr.msk.f32.vlgmr.msra.gmra.mxu0 %vm447_vm0, %v703_v46 }
 0x1f0   : > { %5041 = vmatmul.mubr.msk.bf16.vlgmr.msra.gmra.mxu1 %vm447_vm0, %v5479_v11 }
 0x1f1   : > { %5044 = vmatprep.mubr.msk.bf16.mxu1 %vm447_vm0, %v5480_v13 }
 0x1f8   : > { %5045 = vmatmul.mubr.msk.bf16.gmra.mxu1 %vm447_vm0, %v5481_v15 }
 0x2ae   : > { %v5031_v47 = vpop.f32.mrf.mxu0 }
 0x2af   : > { %5048 = vmatprep.subr.mxu0 %v5031_v47 }
 0x2b0   : > { %v776_v48 = vpop.f32.mrf.mxu0  ;;  %5049 = vmatpush3.msra.mxu0 %v5031_v47 }
 0x2b1   : > { %938 = vxpose.xlu0.b32.start [1/2] (short) %v776_v48, 128  ;;  %5050 = vmatprep.subr.mxu0 %v776_v48 }
 0x2b2   : > { %5051 = vmatpush3.msra.mxu0 %v776_v48 }
 0x2b5   : > { %939 = vxpose.xlu0.b32.end [2/2] (short) %v5031_v47, 128 }
 0x32d   : > { %v954_v49 = vpop.trf.xlu0 }
 0x32e   : > { %5052 = vmatprep.mubr.msk.f32.mxu0 %vm970_vm1, %v954_v49 }
 0x331   : > { %v955_v50 = vpop.trf.xlu0 }
 0x332   : > { %5053 = vmatmul.mubr.msk.f32.vlgmr.msra.gmra.mxu0 %vm970_vm1, %v955_v50 }
 0x335   : > { %v956_v51 = vpop.trf.xlu0 }
 0x336   : > { %5055 = vmatprep.mubr.msk.f32.mxu0 %vm970_vm1, %v956_v51 }
 0x339   : > { %v957_v52 = vpop.trf.xlu0 }
 0x33a   : > { %5056 = vmatmul.mubr.msk.f32.gmra.mxu0 %vm970_vm1, %v957_v52 }
 0x33d   : > { %v958_v53 = vpop.trf.xlu0 }
 0x33e   : > { %5058 = vmatprep.mubr.msk.f32.mxu0 %vm970_vm1, %v958_v53 }
 0x341   : > { %v959_v54 = vpop.trf.xlu0 }
 0x342   : > { %5059 = vmatmul.mubr.msk.f32.gmra.mxu0 %vm970_vm1, %v959_v54 }
 0x345   : > { %v960_v55 = vpop.trf.xlu0 }
 0x346   : > { %5061 = vmatprep.mubr.msk.f32.mxu0 %vm970_vm1, %v960_v55 }
 0x349   : > { %v961_v56 = vpop.trf.xlu0 }
 0x34a   : > { %5062 = vmatmul.mubr.msk.f32.gmra.mxu0 %vm970_vm1, %v961_v56 }
 0x34d   : > { %v962_v57 = vpop.trf.xlu0 }
 0x34e   : > { %5064 = vmatprep.mubr.msk.f32.mxu0 %vm970_vm1, %v962_v57 }
 0x351   : > { %v963_v58 = vpop.trf.xlu0 }
 0x352   : > { %5065 = vmatmul.mubr.msk.f32.gmra.mxu0 %vm970_vm1, %v963_v58 }
 0x355   : > { %v964_v59 = vpop.trf.xlu0 }
 0x356   : > { %5067 = vmatprep.mubr.msk.f32.mxu0 %vm970_vm1, %v964_v59 }
 0x359   : > { %v965_v60 = vpop.trf.xlu0 }
 0x35a   : > { %5068 = vmatmul.mubr.msk.f32.gmra.mxu0 %vm970_vm1, %v965_v60 }
 0x35d   : > { %v966_v61 = vpop.trf.xlu0 }
 0x35e   : > { %5070 = vmatprep.mubr.msk.f32.mxu0 %vm970_vm1, %v966_v61 }
 0x361   : > { %v967_v62 = vpop.trf.xlu0 }
 0x362   : > { %5071 = vmatmul.mubr.msk.f32.gmra.mxu0 %vm970_vm1, %v967_v62 }
 0x365   : > { %v968_v63 = vpop.trf.xlu0 }
 0x366   : > { %5073 = vmatprep.mubr.msk.f32.mxu0 %vm970_vm1, %v968_v63 }
 0x369   : > { %v969_v0 = vpop.trf.xlu0 }
 0x36a   : > { %5074 = vmatmul.mubr.msk.f32.gmra.mxu0 %vm970_vm1, %v969_v0 }
 0x3f2   : > { %v5054_v1 = vpop.f32.mrf.mxu0 }
 0x3f3   : > { %1166 = vmax.xlane.f32.xlu0 %v5054_v1 }
 0x3f4   : > { %v1085_v2 = vpop.f32.mrf.mxu0 }
 0x3f5   : > { %1164 = vmax.xlane.f32.xlu1 %v1085_v2 }
 0x3fa   : > { %v5057_v3 = vpop.f32.mrf.mxu0 }
 0x3fb   : > { %1170 = vmax.xlane.f32.xlu1 %v5057_v3 }
 0x3fc   : > { %v1095_v4 = vpop.f32.mrf.mxu0 }
 0x3ff   : > { %1168 = vmax.xlane.f32.xlu1 %v1095_v4 }
 0x402   : > { %v5060_v5 = vpop.f32.mrf.mxu0 }
 0x403   : > { %1174 = vmax.xlane.f32.xlu1 %v5060_v5 }
 0x404   : > { %v1105_v6 = vpop.f32.mrf.mxu0 }
 0x407   : > { %1172 = vmax.xlane.f32.xlu1 %v1105_v6 }
 0x40a   : > { %v5063_v7 = vpop.f32.mrf.mxu0 }
 0x40b   : > { %1178 = vmax.xlane.f32.xlu1 %v5063_v7 }
 0x40c   : > { %v6092_v8 = vpop.f32.mrf.mxu0 }
 0x40f   : > { %1176 = vmax.xlane.f32.xlu1 %v6092_v8 }
 0x412   : > { %v6098_v10 = vpop.f32.mrf.mxu0 }
 0x413   : > { %1182 = vmax.xlane.f32.xlu1 %v6098_v10 }
 0x414   : > { %v6106_v12 = vpop.f32.mrf.mxu0 }
 0x417   : > { %1180 = vmax.xlane.f32.xlu1 %v6106_v12 }
 0x41a   : > { %v6112_v14 = vpop.f32.mrf.mxu0 }
 0x41b   : > { %1186 = vmax.xlane.f32.xlu1 %v6112_v14 }
 0x41c   : > { %v6120_v16 = vpop.f32.mrf.mxu0 }
 0x41f   : > { %1184 = vmax.xlane.f32.xlu1 %v6120_v16 }
 0x422   : > { %v6123_v17 = vpop.f32.mrf.mxu0 }
 0x423   : > { %1190 = vmax.xlane.f32.xlu1 %v6123_v17 }
 0x424   : > { %v6126_v18 = vpop.f32.mrf.mxu0 }
 0x427   : > { %1188 = vmax.xlane.f32.xlu1 %v6126_v18 }
 0x42a   : > { %v6129_v19 = vpop.f32.mrf.mxu0 }
 0x42c   : > { %v6131_v20 = vpop.f32.mrf.mxu0 }
 0x42d   : > { %1192 = vmax.xlane.f32.xlu1 %v6131_v20 }
 0x431   : > { %1194 = vmax.xlane.f32.xlu1 %v6129_v19 }
 0x47c   : > { %v1167_v21 = vpop.xlane.xlu0 %1166 }
 0x47d   : > { %v1197_v22 = vsub.f32 %v5054_v1, %v1167_v21 }
 0x47e   : > { %v1165_v23 = vpop.xlane.xlu1 %1164 }
 0x47f   : > { %v1214_v24 = vmul.f32 1.442695, %v1197_v22  ;;  %v1196_v25 = vsub.f32 %v1085_v2, %v1165_v23 }
 0x481   : > { %5510 = vpow2.f32 %v1214_v24  ;;  %v1212_v26 = vmul.f32 1.442695, %v1196_v25 }
 0x483   : > { %5512 = vpow2.f32 %v1212_v26 }
 0x484   : > { %v1171_v27 = vpop.xlane.xlu1 %1170 }
 0x485   : > { %v1199_v30 = vsub.f32 %v5057_v3, %v1171_v27 }
 0x487   : > { %v1218_v31 = vmul.f32 1.442695, %v1199_v30 }
 0x488   : > { %v1169_v34 = vpop.xlane.xlu1 %1168 }
 0x489   : > { %5514 = vpow2.f32 %v1218_v31  ;;  %v1198_v35 = vsub.f32 %v1095_v4, %v1169_v34  ;;  %v795_v34 = vld [vmem:[%s7339_s7 + $0x10] sm:$0xff] }
 0x48b   : > { %v1216_v37 = vmul.f32 1.442695, %v1198_v35  ;;  %v796_v35 = vld [vmem:[%s7339_s7 + $0x18] sm:$0xff] }
 0x48c   : > { %v1175_v38 = vpop.xlane.xlu1 %1174 }
 0x48d   : > { %5516 = vpow2.f32 %v1216_v37  ;;  %v1201_v39 = vsub.f32 %v5060_v5, %v1175_v38  ;;  %v794_v37 = vld [vmem:[%s7339_s7 + $0x8] sm:$0xff] }
 0x48e   : > { %v6135_v41 = vpop.eup %5510  ;;  %v798_v38 = vld [vmem:[%s7339_s7 + $0x28] sm:$0xff] }
 0x48f   : > { %v1222_v43 = vmul.f32 1.442695, %v1201_v39  ;;  %1246 = vadd.xlane.f32.xlu1 %v6135_v41  ;;  %v797_v39 = vld [vmem:[%s7339_s7 + $0x20] sm:$0xff] }
 0x490   : > { %v1173_v45 = vpop.xlane.xlu1 %1172  ;;  %v6138_v47 = vpop.eup %5512 }
 0x491   : > { %5518 = vpow2.f32 %v1222_v43  ;;  %v1200_v46 = vsub.f32 %v1105_v6, %v1173_v45  ;;  %v800_v43 = vld [vmem:[%s7339_s7 + $0x38] sm:$0xff]  ;;  %v799_v45 = vld [vmem:[%s7339_s7 + $0x30] sm:$0xff] }
 0x493   : > { %v1220_v48 = vmul.f32 1.442695, %v1200_v46  ;;  %1244 = vadd.xlane.f32.xlu1 %v6138_v47  ;;  %v1450_v46 = vld [vmem:[%s7341_s9 + $0x30] sm:$0xff] }
 0x494   : > { %v1179_v49 = vpop.xlane.xlu1 %1178 }
 0x495   : > { %5520 = vpow2.f32 %v1220_v48  ;;  %v1203_v50 = vsub.f32 %v5063_v7, %v1179_v49  ;;  %v1451_v48 = vld [vmem:[%s7341_s9 + $0x38] sm:$0xff]  ;;  %v1448_v49 = vld [vmem:[%s7341_s9 + $0x20] sm:$0xff] }
 0x496   : > { %v6141_v51 = vpop.eup %5514 }
 0x497   : > { %v1226_v52 = vmul.f32 1.442695, %v1203_v50  ;;  %1250 = vadd.xlane.f32.xlu1 %v6141_v51  ;;  %v1449_v50 = vld [vmem:[%s7341_s9 + $0x28] sm:$0xff] }
 0x498   : > { %v1177_v53 = vpop.xlane.xlu1 %1176 }
 0x499   : > { %5522 = vpow2.f32 %v1226_v52  ;;  %v1202_v54 = vsub.f32 %v6092_v8, %v1177_v53  ;;  %v1446_v52 = vld [vmem:[%s7341_s9 + $0x10] sm:$0xff]  ;;  %v1447_v53 = vld [vmem:[%s7341_s9 + $0x18] sm:$0xff] }
 0x49a   : > { %v6145_v55 = vpop.eup %5516 }
 0x49b   : > { %v1224_v56 = vmul.f32 1.442695, %v1202_v54  ;;  %1248 = vadd.xlane.f32.xlu1 %v6145_v55  ;;  %v1444_v54 = vld [vmem:[%s7341_s9] sm:$0xff] }
 0x49c   : > { %v1183_v57 = vpop.xlane.xlu1 %1182 }
 0x49d   : > { %5524 = vpow2.f32 %v1224_v56  ;;  %v1205_v58 = vsub.f32 %v6098_v10, %v1183_v57  ;;  %v1445_v56 = vld [vmem:[%s7341_s9 + $0x8] sm:$0xff] }
 0x49e   : > { %v6149_v59 = vpop.eup %5518 }
 0x49f   : > { %v1230_v60 = vmul.f32 1.442695, %v1205_v58  ;;  %1254 = vadd.xlane.f32.xlu1 %v6149_v59 }
 0x4a0   : > { %v1181_v61 = vpop.xlane.xlu1 %1180 }
 0x4a1   : > { %5526 = vpow2.f32 %v1230_v60  ;;  %v1204_v62 = vsub.f32 %v6106_v12, %v1181_v61 }
 0x4a2   : > { %v6153_v63 = vpop.eup %5520 }
 0x4a3   : > { %v1228_v0 = vmul.f32 1.442695, %v1204_v62  ;;  %1252 = vadd.xlane.f32.xlu1 %v6153_v63 }
 0x4a4   : > { %v1187_v1 = vpop.xlane.xlu1 %1186 }
 0x4a5   : > { %5528 = vpow2.f32 %v1228_v0  ;;  %v1207_v2 = vsub.f32 %v6112_v14, %v1187_v1 }
 0x4a6   : > { %v6157_v3 = vpop.eup %5522 }
 0x4a7   : > { %v1234_v4 = vmul.f32 1.442695, %v1207_v2  ;;  %1258 = vadd.xlane.f32.xlu1 %v6157_v3 }
 0x4a8   : > { %v1185_v5 = vpop.xlane.xlu1 %1184 }
 0x4a9   : > { %5530 = vpow2.f32 %v1234_v4  ;;  %v1206_v6 = vsub.f32 %v6120_v16, %v1185_v5 }
 0x4aa   : > { %v6161_v7 = vpop.eup %5524 }
 0x4ab   : > { %v1232_v8 = vmul.f32 1.442695, %v1206_v6  ;;  %1256 = vadd.xlane.f32.xlu1 %v6161_v7 }
 0x4ac   : > { %v1191_v9 = vpop.xlane.xlu1 %1190 }
 0x4ad   : > { %5532 = vpow2.f32 %v1232_v8  ;;  %v1209_v10 = vsub.f32 %v6123_v17, %v1191_v9 }
 0x4ae   : > { %v6165_v11 = vpop.eup %5526 }
 0x4af   : > { %v1238_v12 = vmul.f32 1.442695, %v1209_v10  ;;  %1262 = vadd.xlane.f32.xlu1 %v6165_v11 }
 0x4b0   : > { %v1189_v13 = vpop.xlane.xlu1 %1188 }
 0x4b1   : > { %5534 = vpow2.f32 %v1238_v12  ;;  %v1208_v14 = vsub.f32 %v6126_v18, %v1189_v13 }
 0x4b2   : > { %v6169_v15 = vpop.eup %5528 }
 0x4b3   : > { %v1236_v16 = vmul.f32 1.442695, %v1208_v14  ;;  %1260 = vadd.xlane.f32.xlu1 %v6169_v15 }
 0x4b5   : > { %5536 = vpow2.f32 %v1236_v16 }
 0x4b6   : > { %v6172_v21 = vpop.eup %5530  ;;  %v1193_v22 = vpop.xlane.xlu1 %1192 }
 0x4b7   : > { %v1210_v17 = vsub.f32 %v6131_v20, %v1193_v22  ;;  %1266 = vadd.xlane.f32.xlu0 %v6172_v21 }
 0x4b9   : > { %v1240_v23 = vmul.f32 1.442695, %v1210_v17 }
 0x4ba   : > { %v6176_v24 = vpop.eup %5532  ;;  %v1195_v25 = vpop.xlane.xlu1 %1194 }
 0x4bb   : > { %5538 = vpow2.f32 %v1240_v23  ;;  %v1211_v18 = vsub.f32 %v6129_v19, %v1195_v25  ;;  %1264 = vadd.xlane.f32.xlu1 %v6176_v24  ;;  %v793_v19 = vld [vmem:[%s7339_s7] sm:$0xff] }
 0x4bd   : > { %v1242_v26 = vmul.f32 1.442695, %v1211_v18 }
 0x4be   : > { %v6180_v27 = vpop.eup %5534 }
 0x4bf   : > { %5540 = vpow2.f32 %v1242_v26  ;;  %1270 = vadd.xlane.f32.xlu0 %v6180_v27 }
 0x4c2   : > { %v6183_v30 = vpop.eup %5536 }
 0x4c3   : > { %1268 = vadd.xlane.f32.xlu1 %v6183_v30 }
 0x4c8   : > { %v6186_v20 = vpop.eup %5538 }
 0x4c9   : > { %1272 = vadd.xlane.f32.xlu1 %v6186_v20 }
 0x4cc   : > { %v6189_v31 = vpop.eup %5540 }
 0x4cd   : > { %1274 = vadd.xlane.f32.xlu0 %v6189_v31 }
 0x4da   : > { %803 = vperm.xlu1 %5469, %v793_v19  }
 0x4de   : > { %813 = vperm.xlu1 %5469, %v795_v34  }
 0x4e2   : > { %818 = vperm.xlu1 %5469, %v796_v35  }
 0x4e3   : > { %808 = vperm.xlu0 %5468, %v794_v37  }
 0x4e6   : > { %828 = vperm.xlu1 %5469, %v798_v38  }
 0x4e7   : > { %823 = vperm.xlu0 %5468, %v797_v39  }
 0x4ea   : > { %838 = vperm.xlu1 %5469, %v800_v43  }
 0x4eb   : > { %833 = vperm.xlu0 %5468, %v799_v45  }
 0x4ee   : > { %1484 = vperm.xlu1 %5469, %v1450_v46  }
 0x4ef   : > { %1489 = vperm.xlu0 %5468, %v1451_v48  }
 0x4f2   : > { %1474 = vperm.xlu1 %5469, %v1448_v49  }
 0x4f3   : > { %1479 = vperm.xlu0 %5468, %v1449_v50   ;;  %v6273_v50 = vpop.f32.mrf.mxu1 }
 0x4f6   : > { %1464 = vperm.xlu1 %5469, %v1446_v52  }
 0x4f7   : > { %1469 = vperm.xlu0 %5468, %v1447_v53  }
 0x4fa   : > { %1454 = vperm.xlu1 %5469, %v1444_v54  }
 0x4fb   : > { %1459 = vperm.xlu0 %5468, %v1445_v56  }
 0x518   : > { %v1247_v57 = vpop.xlane.xlu1 %1246 }
 0x51c   : > { %v1245_v58 = vpop.xlane.xlu1 %1244 }
 0x51d   : > { %5542 = vrcp.f32 %v1245_v58 }
 0x51e   : > { %5544 = vrcp.f32 %v1247_v57  ;;  %v907_v57 = vpop.f32.mrf.mxu1 }
 0x520   : > { %v1251_v60 = vpop.xlane.xlu1 %1250 }
 0x524   : > { %v1249_v61 = vpop.xlane.xlu1 %1248 }
 0x525   : > { %5546 = vrcp.f32 %v1249_v61  ;;  %v6277_v61 = vpop.f32.mrf.mxu1 }
 0x526   : > { %5548 = vrcp.f32 %v1251_v60 }
 0x528   : > { %v1255_v62 = vpop.xlane.xlu1 %1254 }
 0x52a   : > { %v5543_v4 = vpop.eup %5542 }
 0x52b   : > { %v5545_v6 = vpop.eup %5544  ;;  %v6241_v9 = vmul.f32 %v5543_v4, %v6138_v47 }
 0x52c   : > { %v1253_v0 = vpop.xlane.xlu1 %1252  ;;  %v6244_v12 = vmul.f32 %v5545_v6, %v6135_v41 }
 0x52d   : > { %5550 = vrcp.f32 %v1253_v0 }
 0x52e   : > { %5552 = vrcp.f32 %v1255_v62  ;;  %v1308_v16 = vadd.f32 %v6244_v12, %v6241_v9 }
 0x530   : > { %v1259_v1 = vpop.xlane.xlu1 %1258 }
 0x532   : > { %v5547_v8 = vpop.eup %5546 }
 0x533   : > { %v6247_v13 = vmul.f32 %v5547_v8, %v6145_v55  ;;  %v5549_v14 = vpop.eup %5548 }
 0x534   : > { %v1257_v2 = vpop.xlane.xlu1 %1256  ;;  %v6253_v23 = vmul.f32 %v5549_v14, %v6141_v51 }
 0x535   : > { %5554 = vrcp.f32 %v1257_v2  ;;  %v1309_v17 = vadd.f32 %v1308_v16, %v6247_v13 }
 0x536   : > { %5556 = vrcp.f32 %v1259_v1 }
 0x537   : > { %v1310_v55 = vadd.f32 %v1309_v17, %v6253_v23 }
 0x538   : > { %v1263_v5 = vpop.xlane.xlu1 %1262 }
 0x53a   : > { %v5551_v22 = vpop.eup %5550 }
 0x53b   : > { %v6256_v47 = vmul.f32 %v5551_v22, %v6153_v63  ;;  %v5553_v25 = vpop.eup %5552 }
 0x53c   : > { %v1261_v10 = vpop.xlane.xlu1 %1260  ;;  %v6261_v34 = vmul.f32 %v5553_v25, %v6149_v59 }
 0x53d   : > { %5558 = vrcp.f32 %v1261_v10  ;;  %v1311_v26 = vadd.f32 %v1310_v55, %v6256_v47 }
 0x53e   : > { %5560 = vrcp.f32 %v1263_v5  ;;  %v910_v5 = vpop.f32.mrf.mxu1 }
 0x53f   : > { %v1312_v63 = vadd.f32 %v1311_v26, %v6261_v34 }
 0x540   : > { %v1267_v19 = vpop.xlane.xlu0 %1266 }
 0x542   : > { %v5555_v18 = vpop.eup %5554 }
 0x543   : > { %v6264_v35 = vmul.f32 %v5555_v18, %v6161_v7  ;;  %v5557_v51 = vpop.eup %5556 }
 0x544   : > { %v1265_v41 = vpop.xlane.xlu1 %1264  ;;  %v6269_v45 = vmul.f32 %v5557_v51, %v6157_v3 }
 0x545   : > { %5562 = vrcp.f32 %v1265_v41  ;;  %v1313_v39 = vadd.f32 %v1312_v63, %v6264_v35 }
 0x546   : > { %5564 = vrcp.f32 %v1267_v19 }
 0x547   : > { %v1314_v48 = vadd.f32 %v1313_v39, %v6269_v45 }
 0x548   : > { %v1271_v43 = vpop.xlane.xlu0 %1270 }
 0x54a   : > { %v5559_v37 = vpop.eup %5558 }
 0x54b   : > { %v1300_v46 = vmul.f32 %v5559_v37, %v6169_v15  ;;  %v5561_v59 = vpop.eup %5560 }
 0x54c   : > { %v1269_v38 = vpop.xlane.xlu1 %1268  ;;  %v1301_v53 = vmul.f32 %v5561_v59, %v6165_v11 }
 0x54d   : > { %5566 = vrcp.f32 %v1269_v38  ;;  %v1315_v52 = vadd.f32 %v1314_v48, %v1300_v46 }
 0x54e   : > { %5568 = vrcp.f32 %v1271_v43 }
 0x54f   : > { %v1316_v3 = vadd.f32 %v1315_v52, %v1301_v53 }
 0x552   : > { %v5563_v7 = vpop.eup %5562  ;;  %v1273_v49 = vpop.xlane.xlu1 %1272 }
 0x553   : > { %5570 = vrcp.f32 %v1273_v49  ;;  %v1302_v54 = vmul.f32 %v5563_v7, %v6176_v24  ;;  %v5565_v58 = vpop.eup %5564 }
 0x554   : > { %v1303_v62 = vmul.f32 %v5565_v58, %v6172_v21 }
 0x555   : > { %v1317_v15 = vadd.f32 %v1316_v3, %v1302_v54 }
 0x556   : > { %v1275_v56 = vpop.xlane.xlu0 %1274  ;;  %v804_v1 = vpop.permute.xlu1 %803 }
 0x557   : > { %5572 = vrcp.f32 %v1275_v56  ;;  %v1318_v2 = vadd.f32 %v1317_v15, %v1303_v62  ;;  %v908_v6 = vadd.f32 %v907_v57, %v804_v1  ;;  %v5046_v15 = vpop.f32.mrf.mxu1 }
 0x55a   : > { %v5567_v60 = vpop.eup %5566 }
 0x55b   : > { %v1304_v0 = vmul.f32 %v5567_v60, %v6183_v30  ;;  %v5569_v4 = vpop.eup %5568  ;;  %v814_v60 = vpop.permute.xlu1 %813 }
 0x55c   : > { %v1305_v16 = vmul.f32 %v5569_v4, %v6180_v27 }
 0x55d   : > { %v1319_v8 = vadd.f32 %v1318_v2, %v1304_v0 }
 0x55e   : > { %v809_v11 = vpop.permute.xlu0 %808 }
 0x55f   : > { %v911_v24 = vadd.f32 %v910_v5, %v809_v11  ;;  %v1320_v17 = vadd.f32 %v1319_v8, %v1305_v16 }
 0x560   : > { %v5571_v10 = vpop.eup %5570 }
 0x561   : > { %v1347_v14 = vpack.c.bf16 %v911_v24, %v908_v6  ;;  %v1306_v22 = vmul.f32 %v5571_v10, %v6186_v20  ;;  %v916_v10 = vadd.f32 %v6273_v50, %v814_v60 }
 0x563   : > { %5092 = vmatprep.mubr.bf16.mxu1 %v1347_v14  ;;  %v1321_v30 = vadd.f32 %v1320_v17, %v1306_v22 }
 0x564   : > { %v5573_v41 = vpop.eup %5572 }
 0x565   : > { %v1307_v21 = vmul.f32 %v5573_v41, %v6189_v31 }
 0x567   : > { %v1322_v25 = vadd.f32 %v1321_v30, %v1307_v21 }
 0x569   : > { %v1323_v55 = vrot.slane %v1322_v25, 4 }
 0x56b   : > { %v1324_v18 = vadd.f32 %v1323_v55, %v1322_v25 }
 0x56d   : > { %v1325_v26 = vrot.slane %v1324_v18, 2 }
 0x56f   : > { %v1326_v19 = vadd.f32 %v1325_v26, %v1324_v18 }
 0x571   : > { %v1327_v51 = vrot.slane %v1326_v19, 1 }
 0x573   : > { %v1328_v63 = vadd.f32 %v1327_v51, %v1326_v19 }
 0x575   : > { %v1329_v37 = vadd.f32 1e-09, %v1328_v63 }
 0x577   : > { %5574 = vrcp.f32 %v1329_v37 }
 0x584   : > { %v5575_v38 = vpop.eup %5574 }
 0x585   : > { %v1345_v39 = vmul.f32 %v5575_v38, %v1306_v22  ;;  %v1346_v27 = vmul.f32 %v5575_v38, %v1307_v21  ;;  %v1343_v43 = vmul.f32 %v5575_v38, %v1304_v0  ;;  %v1344_v20 = vmul.f32 %v5575_v38, %v1305_v16 }
 0x586   : > { %v1341_v7 = vmul.f32 %v5575_v38, %v1302_v54  ;;  %v1342_v31 = vmul.f32 %v5575_v38, %v1303_v62  ;;  %v1339_v52 = vmul.f32 %v5575_v38, %v1300_v46  ;;  %v1340_v56 = vmul.f32 %v5575_v38, %v1301_v53  ;;  %v923_v46 = vpop.f32.mrf.mxu1 }
 0x587   : > { %v1358_v59 = vpack.c.bf16 %v1346_v27, %v1345_v39  ;;  %v1357_v48 = vpack.c.bf16 %v1344_v20, %v1343_v43  ;;  %v1337_v3 = vmul.f32 %v5575_v38, %v6264_v35  ;;  %v1338_v58 = vmul.f32 %v5575_v38, %v6269_v45  ;;  %v819_v35 = vpop.permute.xlu1 %818 }
 0x588   : > { %v1356_v49 = vpack.c.bf16 %v1342_v31, %v1341_v7  ;;  %v1355_v57 = vpack.c.bf16 %v1340_v56, %v1339_v52  ;;  %v1335_v54 = vmul.f32 %v5575_v38, %v6256_v47  ;;  %v1336_v62 = vmul.f32 %v5575_v38, %v6261_v34  ;;  %v5047_v45 = vpop.f32.mrf.mxu1  ;;  %v824_v34 = vpop.permute.xlu0 %823  ;;  %v5484_v52 = vld [vmem:[%s7340_s8 + $0x10] sm:$0xff]   ;;  %v5485_v56 = vld [vmem:[%s7340_s8 + $0x18] sm:$0xff]  }
 0x589   : > { %5076 = vmatprep.subr.bf16.mxu1 %v1358_v59  ;;  %v1354_v0 = vpack.c.bf16 %v1338_v58, %v1337_v3  ;;  %v1333_v1 = vmul.f32 %v5575_v38, %v6247_v13  ;;  %v1334_v2 = vmul.f32 %v5575_v38, %v6253_v23  ;;  %v1331_v5 = vmul.f32 %v5575_v38, %v6241_v9 }
 0x58a   : > { %5077 = vmatpush3.bf16.msra.mxu1 %v1358_v59  ;;  %v1353_v53 = vpack.c.bf16 %v1336_v62, %v1335_v54  ;;  %v1332_v11 = vmul.f32 %v5575_v38, %v6244_v12  ;;  %v926_v47 = vpop.f32.mrf.mxu1  ;;  %v919_v13 = vadd.f32 %v6277_v61, %v819_v35  ;;  %v924_v23 = vadd.f32 %v923_v46, %v824_v34  ;;  %v5482_v61 = vld [vmem:[%s7340_s8] sm:$0xff]  }
 0x58b   : > { %5078 = vmatprep.subr.bf16.mxu1 %v1357_v48  ;;  %v1352_v4 = vpack.c.bf16 %v1334_v2, %v1333_v1  ;;  %v829_v6 = vpop.permute.xlu1 %828  ;;  %5108 = vmatprep.mubr.msk.bf16.mxu0 %vm447_vm0, %v5482_v61 }
 0x58c   : > { %v1351_v24 = vpack.c.bf16 %v1332_v11, %v1331_v5  ;;  %v927_v8 = vadd.f32 %v926_v47, %v829_v6  ;;  %v1348_v14 = vpack.c.bf16 %v919_v13, %v916_v10  ;;  %v834_v9 = vpop.permute.xlu0 %833 }
 0x58d   : > { %v932_v12 = vadd.f32 %v5046_v15, %v834_v9 }
 0x58e   : > { %5079 = vmatpush3.bf16.msra.mxu1 %v1357_v48  ;;  %v1349_v16 = vpack.c.bf16 %v927_v8, %v924_v23 }
 0x58f   : > { %5080 = vmatprep.subr.bf16.mxu1 %v1356_v49  ;;  %v839_v22 = vpop.permute.xlu1 %838 }
 0x590   : > { %v935_v17 = vadd.f32 %v5047_v45, %v839_v22  ;;  %v1490_v58 = vpop.permute.xlu0 %1489 }
 0x592   : > { %5081 = vmatpush3.bf16.msra.mxu1 %v1356_v49  ;;  %v1350_v41 = vpack.c.bf16 %v935_v17, %v932_v12  ;;  %v5483_v49 = vld [vmem:[%s7340_s8 + $0x8] sm:$0xff]  }
 0x593   : > { %5082 = vmatprep.subr.bf16.mxu1 %v1355_v57  ;;  %v1485_v3 = vpop.permute.xlu1 %1484 }
 0x594   : > { %v1480_v60 = vpop.permute.xlu0 %1479 }
 0x596   : > { %5083 = vmatpush3.bf16.msra.mxu1 %v1355_v57  ;;  %v4506_v57 = vld [vmem:[%s7337_s5 + $0x10] sm:$0xff] }
 0x597   : > { %5084 = vmatprep.subr.bf16.mxu1 %v1354_v0  ;;  %v1475_v15 = vpop.permute.xlu1 %1474 }
 0x598   : > { %v1470_v54 = vpop.permute.xlu0 %1469 }
 0x59a   : > { %5085 = vmatpush3.bf16.msra.mxu1 %v1354_v0 }
 0x59b   : > { %5086 = vmatprep.subr.bf16.mxu1 %v1353_v53  ;;  %v1465_v0 = vpop.permute.xlu1 %1464 }
 0x59c   : > { %v1460_v47 = vpop.permute.xlu0 %1459 }
 0x59e   : > { %5087 = vmatpush3.bf16.msra.mxu1 %v1353_v53 }
 0x59f   : > { %5088 = vmatprep.subr.bf16.mxu1 %v1352_v4  ;;  %v1455_v53 = vpop.permute.xlu1 %1454 }
 0x5a2   : > { %5089 = vmatpush3.bf16.msra.mxu1 %v1352_v4 }
 0x5a3   : > { %5090 = vmatprep.subr.bf16.mxu1 %v1351_v24 }
 0x5a6   : > { %5091 = vmatpush3.bf16.msra.mxu1 %v1351_v24 }
 0x5a9   : > { %5093 = vmatmul.mubr.bf16.vlgmr.msra.gmra.mxu1 %v1348_v14 }
 0x5aa   : > { %5096 = vmatprep.mubr.bf16.mxu1 %v1349_v16 }
 0x5b1   : > { %5097 = vmatmul.mubr.bf16.gmra.mxu1 %v1350_v41 }
 0x5b2   : > { %5132 = vmatprep.mubr.msk.f32.mxu1 %vm447_vm0, %v4506_v57 }
 0x669   : > { %v5094_v21 = vpop.f32.mrf.mxu1 }
 0x66a   : > { %v1434_v20 = vsub.f32 %v6050_v40, %v5094_v21 }
 0x66b   : > { %v1393_v30 = vpop.f32.mrf.mxu1 }
 0x66c   : > { %v1432_v7 = vsub.f32 %v6060_v44, %v1393_v30 }
 0x66d   : > { %v5095_v50 = vpop.f32.mrf.mxu1 }
 0x66e   : > { %v1435_v27 = vsub.f32 %v6044_v36, %v5095_v50 }
 0x66f   : > { %v1396_v25 = vpop.f32.mrf.mxu1 }
 0x670   : > { %v1441_v59 = vpack.c.bf16 %v1435_v27, %v1434_v20  ;;  %v1433_v48 = vsub.f32 %v6054_v42, %v1396_v25 }
 0x671   : > { %v5098_v55 = vpop.f32.mrf.mxu1 }
 0x672   : > { %v1438_v19 = vsub.f32 %v6032_v28, %v5098_v55  ;;  %v1440_v31 = vpack.c.bf16 %v1433_v48, %v1432_v7  ;;  %v4507_v55 = vld [vmem:[%s7337_s5 + $0x18] sm:$0xff] }
 0x673   : > { %v1409_v18 = vpop.f32.mrf.mxu1 }
 0x674   : > { %v1436_v37 = vsub.f32 %v6036_v32, %v1409_v18 }
 0x675   : > { %v5099_v26 = vpop.f32.mrf.mxu1 }
 0x676   : > { %v1439_v51 = vsub.f32 %v6034_v29, %v5099_v26 }
 0x677   : > { %v1412_v63 = vpop.f32.mrf.mxu1 }
 0x678   : > { %v1443_v38 = vpack.c.bf16 %v1439_v51, %v1438_v19  ;;  %v1437_v39 = vsub.f32 %v6038_v33, %v1412_v63 }
 0x67a   : > { %v1442_v43 = vpack.c.bf16 %v1437_v39, %v1436_v37  ;;  %5100 = vmatprep.subr.bf16.mxu0 %v1443_v38 }
 0x67b   : > { %5101 = vmatpush3.bf16.msra.mxu0 %v1443_v38 }
 0x67c   : > { %5102 = vmatprep.subr.bf16.mxu0 %v1442_v43 }
 0x67f   : > { %5103 = vmatpush3.bf16.msra.mxu0 %v1442_v43 }
 0x680   : > { %5104 = vmatprep.subr.bf16.mxu0 %v1441_v59 }
 0x683   : > { %5105 = vmatpush3.bf16.msra.mxu0 %v1441_v59 }
 0x684   : > { %5106 = vmatprep.subr.bf16.mxu0 %v1440_v31 }
 0x687   : > { %5107 = vmatpush3.bf16.msra.mxu0 %v1440_v31 }
 0x68a   : > { %5109 = vmatmul.mubr.msk.bf16.vlgmr.msra.gmra.mxu0 %vm447_vm0, %v5483_v49 }
 0x68b   : > { %5112 = vmatprep.mubr.msk.bf16.mxu0 %vm447_vm0, %v5484_v52 }
 0x692   : > { %5113 = vmatmul.mubr.msk.bf16.gmra.mxu0 %vm447_vm0, %v5485_v56 }
 0x74a   : > { %v5110_v62 = vpop.f32.mrf.mxu0 }
 0x74b   : > { %v1567_v46 = vadd.f32 %v5110_v62, %v1465_v0 }
 0x74c   : > { %v1558_v1 = vpop.f32.mrf.mxu0 }
 0x74d   : > { %v1591_v2 = vmax.f32 %v1567_v46, 0.0  ;;  %v1559_v35 = vadd.f32 %v1558_v1, %v1455_v53  ;;  %v5486_v53 = vld [vmem:[%s7338_s6 + $0x20] sm:$0xff]  }
 0x74e   : > { %v5111_v45 = vpop.f32.mrf.mxu0  ;;  %5143 = vmatprep.mubr.msk.bf16.mxu0 %vm447_vm0, %v5486_v53 }
 0x74f   : > { %v6326_v4 = vadd.f32 %v1591_v2, %v6050_v40  ;;  %v1589_v5 = vmax.f32 %v1559_v35, 0.0  ;;  %v1570_v11 = vadd.f32 %v5111_v45, %v1470_v54  ;;  %v5487_v2 = vld [vmem:[%s7338_s6 + $0x28] sm:$0xff]   ;;  %v5488_v45 = vld [vmem:[%s7338_s6 + $0x30] sm:$0xff]  }
 0x750   : > { %v1561_v34 = vpop.f32.mrf.mxu0 }
 0x751   : > { %1607 = vst [vmem:[%s6328_s25 + $0x10] sm:$0xff] %v6326_v4  ;;  %v6333_v6 = vadd.f32 %v1589_v5, %v6060_v44  ;;  %v1592_v24 = vmax.f32 %v1570_v11, 0.0  ;;  %v1562_v13 = vadd.f32 %v1561_v34, %v1460_v47  ;;  %v5489_v11 = vld [vmem:[%s7338_s6 + $0x38] sm:$0xff]  }
 0x752   : > { %v5114_v23 = vpop.f32.mrf.mxu0 }
 0x753   : > { %1605 = vst [vmem:[%s6328_s25] sm:$0xff] %v6333_v6  ;;  %v6338_v40 = vadd.f32 %v1592_v24, %v6044_v36  ;;  %v1590_v8 = vmax.f32 %v1562_v13, 0.0  ;;  %v1583_v10 = vadd.f32 %v5114_v23, %v1485_v3 }
 0x754   : > { %v1574_v14 = vpop.f32.mrf.mxu0 }
 0x755   : > { %1608 = vst [vmem:[%s6328_s25 + $0x18] sm:$0xff] %v6338_v40  ;;  %v6343_v16 = vadd.f32 %v1590_v8, %v6054_v42  ;;  %v1595_v44 = vmax.f32 %v1583_v10, 0.0  ;;  %v1575_v9 = vadd.f32 %v1574_v14, %v1475_v15 }
 0x756   : > { %v5115_v22 = vpop.f32.mrf.mxu0 }
 0x757   : > { %1606 = vst [vmem:[%s6328_s25 + $0x8] sm:$0xff] %v6343_v16  ;;  %v6348_v12 = vadd.f32 %v1595_v44, %v6032_v28  ;;  %v1593_v36 = vmax.f32 %v1575_v9, 0.0  ;;  %v1586_v17 = vadd.f32 %v5115_v22, %v1490_v58 }
 0x758   : > { %v1577_v41 = vpop.f32.mrf.mxu0 }
 0x759   : > { %1611 = vst [vmem:[%s6328_s25 + $0x30] sm:$0xff] %v6348_v12  ;;  %v6353_v61 = vadd.f32 %v1593_v36, %v6036_v32  ;;  %v1596_v42 = vmax.f32 %v1586_v17, 0.0  ;;  %v1578_v21 = vadd.f32 %v1577_v41, %v1480_v60  ;;  %v1614_v32 = vpack.c.bf16 %v6338_v40, %v6326_v4 }
 0x75b   : > { %1609 = vst [vmem:[%s6328_s25 + $0x20] sm:$0xff] %v6353_v61  ;;  %v6358_v30 = vadd.f32 %v1596_v42, %v6034_v29  ;;  %v1594_v50 = vmax.f32 %v1578_v21, 0.0 }
 0x75d   : > { %1612 = vst [vmem:[%s6328_s25 + $0x38] sm:$0xff] %v6358_v30  ;;  %v6363_v28 = vadd.f32 %v1594_v50, %v6038_v33  ;;  %5116 = vmatprep.subr.mxu1 %v6358_v30  ;;  %v1616_v25 = vpack.c.bf16 %v6358_v30, %v6348_v12  ;;  %v1613_v33 = vpack.c.bf16 %v6343_v16, %v6333_v6 }
 0x75e   : > { %5117 = vmatpush3.msra.mxu1 %v6358_v30 }
 0x75f   : > { %1610 = vst [vmem:[%s6328_s25 + $0x28] sm:$0xff] %v6363_v28  ;;  %5118 = vmatprep.subr.mxu1 %v6348_v12  ;;  %5135 = vmatprep.subr.bf16.mxu0 %v1616_v25  ;;  %v1615_v29 = vpack.c.bf16 %v6363_v28, %v6353_v61 }
 0x760   : > { %5119 = vmatpush3.msra.mxu1 %v6348_v12  ;;  %5136 = vmatpush3.bf16.msra.mxu0 %v1616_v25 }
 0x761   : > { %5120 = vmatprep.subr.mxu1 %v6363_v28  ;;  %5137 = vmatprep.subr.bf16.mxu0 %v1615_v29 }
 0x762   : > { %5121 = vmatpush3.msra.mxu1 %v6363_v28 }
 0x763   : > { %5122 = vmatprep.subr.mxu1 %v6353_v61 }
 0x764   : > { %5123 = vmatpush3.msra.mxu1 %v6353_v61  ;;  %5138 = vmatpush3.bf16.msra.mxu0 %v1615_v29 }
 0x765   : > { %5124 = vmatprep.subr.mxu1 %v6338_v40  ;;  %5139 = vmatprep.subr.bf16.mxu0 %v1614_v32 }
 0x766   : > { %5125 = vmatpush3.msra.mxu1 %v6338_v40 }
 0x767   : > { %5126 = vmatprep.subr.mxu1 %v6326_v4 }
 0x768   : > { %5127 = vmatpush3.msra.mxu1 %v6326_v4  ;;  %5140 = vmatpush3.bf16.msra.mxu0 %v1614_v32 }
 0x769   : > { %5128 = vmatprep.subr.mxu1 %v6343_v16  ;;  %5141 = vmatprep.subr.bf16.mxu0 %v1613_v33 }
 0x76a   : > { %5129 = vmatpush3.msra.mxu1 %v6343_v16 }
 0x76b   : > { %5130 = vmatprep.subr.mxu1 %v6333_v6 }
 0x76c   : > { %5131 = vmatpush3.msra.mxu1 %v6333_v6  ;;  %5142 = vmatpush3.bf16.msra.mxu0 %v1613_v33 }
 0x76d   : > { %5133 = vmatmul.mubr.msk.f32.vlgmr.msra.gmra.mxu1 %vm447_vm0, %v4507_v55 }
 0x76f   : > { %5144 = vmatmul.mubr.msk.bf16.vlgmr.msra.gmra.mxu0 %vm447_vm0, %v5487_v2 }
 0x770   : > { %5147 = vmatprep.mubr.msk.bf16.mxu0 %vm447_vm0, %v5488_v45 }
 0x777   : > { %5148 = vmatmul.mubr.msk.bf16.gmra.mxu0 %vm447_vm0, %v5489_v11 }
 0x82d   : > { %v5134_v18 = vpop.f32.mrf.mxu1 }
 0x82e   : > { %5151 = vmatprep.subr.mxu1 %v5134_v18 }
 0x82f   : > { %v1692_v26 = vpop.f32.mrf.mxu1  ;;  %5152 = vmatpush3.msra.mxu1 %v5134_v18 }
 0x830   : > { %1856 = vxpose.xlu0.b32.start [1/2] (short) %v1692_v26, 128  ;;  %5153 = vmatprep.subr.mxu1 %v1692_v26 }
 0x831   : > { %5154 = vmatpush3.msra.mxu1 %v1692_v26 }
 0x834   : > { %1857 = vxpose.xlu0.b32.end [2/2] (short) %v5134_v18, 128 }
 0x8ac   : > { %v1872_v19 = vpop.trf.xlu0 }
 0x8ad   : > { %5155 = vmatprep.mubr.msk.f32.mxu1 %vm970_vm1, %v1872_v19 }
 0x8b0   : > { %v1873_v51 = vpop.trf.xlu0 }
 0x8b1   : > { %5156 = vmatmul.mubr.msk.f32.vlgmr.msra.gmra.mxu1 %vm970_vm1, %v1873_v51 }
 0x8b4   : > { %v1874_v63 = vpop.trf.xlu0 }
 0x8b5   : > { %5158 = vmatprep.mubr.msk.f32.mxu1 %vm970_vm1, %v1874_v63 }
 0x8b8   : > { %v1875_v37 = vpop.trf.xlu0 }
 0x8b9   : > { %5159 = vmatmul.mubr.msk.f32.gmra.mxu1 %vm970_vm1, %v1875_v37 }
 0x8bc   : > { %v1876_v38 = vpop.trf.xlu0 }
 0x8bd   : > { %5161 = vmatprep.mubr.msk.f32.mxu1 %vm970_vm1, %v1876_v38 }
 0x8c0   : > { %v1877_v39 = vpop.trf.xlu0 }
 0x8c1   : > { %5162 = vmatmul.mubr.msk.f32.gmra.mxu1 %vm970_vm1, %v1877_v39 }
 0x8c4   : > { %v1878_v27 = vpop.trf.xlu0 }
 0x8c5   : > { %5164 = vmatprep.mubr.msk.f32.mxu1 %vm970_vm1, %v1878_v27 }
 0x8c8   : > { %v1879_v43 = vpop.trf.xlu0 }
 0x8c9   : > { %5165 = vmatmul.mubr.msk.f32.gmra.mxu1 %vm970_vm1, %v1879_v43 }
 0x8cc   : > { %v1880_v20 = vpop.trf.xlu0 }
 0x8cd   : > { %5167 = vmatprep.mubr.msk.f32.mxu1 %vm970_vm1, %v1880_v20 }
 0x8d0   : > { %v1881_v59 = vpop.trf.xlu0 }
 0x8d1   : > { %5168 = vmatmul.mubr.msk.f32.gmra.mxu1 %vm970_vm1, %v1881_v59 }
 0x8d4   : > { %v1882_v48 = vpop.trf.xlu0 }
 0x8d5   : > { %5170 = vmatprep.mubr.msk.f32.mxu1 %vm970_vm1, %v1882_v48 }
 0x8d8   : > { %v1883_v7 = vpop.trf.xlu0 }
 0x8d9   : > { %5171 = vmatmul.mubr.msk.f32.gmra.mxu1 %vm970_vm1, %v1883_v7 }
 0x8dc   : > { %v1884_v31 = vpop.trf.xlu0 }
 0x8dd   : > { %5173 = vmatprep.mubr.msk.f32.mxu1 %vm970_vm1, %v1884_v31 }
 0x8e0   : > { %v1885_v49 = vpop.trf.xlu0 }
 0x8e1   : > { %5174 = vmatmul.mubr.msk.f32.gmra.mxu1 %vm970_vm1, %v1885_v49 }
 0x8e4   : > { %v1886_v52 = vpop.trf.xlu0 }
 0x8e5   : > { %5176 = vmatprep.mubr.msk.f32.mxu1 %vm970_vm1, %v1886_v52 }
 0x8e8   : > { %v1887_v56 = vpop.trf.xlu0 }
 0x8e9   : > { %5177 = vmatmul.mubr.msk.f32.gmra.mxu1 %vm970_vm1, %v1887_v56 }
 0x971   : > { %v5157_v57 = vpop.f32.mrf.mxu1 }
 0x972   : > { %2083 = vmax.xlane.f32.xlu0 %v5157_v57 }
 0x973   : > { %v2002_v3 = vpop.f32.mrf.mxu1 }
 0x974   : > { %2081 = vmax.xlane.f32.xlu1 %v2002_v3 }
 0x979   : > { %v5160_v58 = vpop.f32.mrf.mxu1 }
 0x97a   : > { %2087 = vmax.xlane.f32.xlu1 %v5160_v58 }
 0x97b   : > { %v2012_v15 = vpop.f32.mrf.mxu1 }
 0x97e   : > { %2085 = vmax.xlane.f32.xlu1 %v2012_v15 }
 0x981   : > { %v5163_v60 = vpop.f32.mrf.mxu1 }
 0x982   : > { %2091 = vmax.xlane.f32.xlu1 %v5163_v60 }
 0x983   : > { %v2022_v0 = vpop.f32.mrf.mxu1 }
 0x986   : > { %2089 = vmax.xlane.f32.xlu1 %v2022_v0 }
 0x989   : > { %v5166_v54 = vpop.f32.mrf.mxu1 }
 0x98a   : > { %2095 = vmax.xlane.f32.xlu1 %v5166_v54 }
 0x98b   : > { %v6411_v62 = vpop.f32.mrf.mxu1 }
 0x98e   : > { %2093 = vmax.xlane.f32.xlu1 %v6411_v62 }
 0x991   : > { %v6414_v46 = vpop.f32.mrf.mxu1 }
 0x992   : > { %2099 = vmax.xlane.f32.xlu1 %v6414_v46 }
 0x993   : > { %v6420_v1 = vpop.f32.mrf.mxu1 }
 0x996   : > { %2097 = vmax.xlane.f32.xlu1 %v6420_v1 }
 0x999   : > { %v6428_v35 = vpop.f32.mrf.mxu1 }
 0x99a   : > { %2103 = vmax.xlane.f32.xlu1 %v6428_v35 }
 0x99b   : > { %v6434_v5 = vpop.f32.mrf.mxu1 }
 0x99e   : > { %2101 = vmax.xlane.f32.xlu1 %v6434_v5 }
 0x9a1   : > { %v6442_v47 = vpop.f32.mrf.mxu1 }
 0x9a2   : > { %2107 = vmax.xlane.f32.xlu1 %v6442_v47 }
 0x9a3   : > { %v6445_v34 = vpop.f32.mrf.mxu1 }
 0x9a6   : > { %2105 = vmax.xlane.f32.xlu1 %v6445_v34 }
 0x9a9   : > { %v6448_v24 = vpop.f32.mrf.mxu1 }
 0x9ab   : > { %v6450_v13 = vpop.f32.mrf.mxu1 }
 0x9ac   : > { %2109 = vmax.xlane.f32.xlu1 %v6450_v13 }
 0x9b0   : > { %2111 = vmax.xlane.f32.xlu1 %v6448_v24 }
 0x9fb   : > { %v2084_v23 = vpop.xlane.xlu0 %2083 }
 0x9fc   : > { %v2114_v8 = vsub.f32 %v5157_v57, %v2084_v23 }
 0x9fd   : > { %v2082_v10 = vpop.xlane.xlu1 %2081 }
 0x9fe   : > { %v2131_v14 = vmul.f32 1.442695, %v2114_v8  ;;  %v2113_v44 = vsub.f32 %v2002_v3, %v2082_v10 }
 0xa00   : > { %5576 = vpow2.f32 %v2131_v14  ;;  %v2129_v9 = vmul.f32 1.442695, %v2113_v44 }
 0xa02   : > { %5578 = vpow2.f32 %v2129_v9 }
 0xa03   : > { %v2088_v22 = vpop.xlane.xlu1 %2087 }
 0xa04   : > { %v2116_v36 = vsub.f32 %v5160_v58, %v2088_v22 }
 0xa06   : > { %v2135_v17 = vmul.f32 1.442695, %v2116_v36 }
 0xa07   : > { %v2086_v41 = vpop.xlane.xlu1 %2085 }
 0xa08   : > { %5580 = vpow2.f32 %v2135_v17  ;;  %v2115_v42 = vsub.f32 %v2012_v15, %v2086_v41  ;;  %v4520_v41 = vld [vmem:[%s7339_s7 + $0x50] sm:$0xff] }
 0xa0a   : > { %v2133_v21 = vmul.f32 1.442695, %v2115_v42  ;;  %v4521_v42 = vld [vmem:[%s7339_s7 + $0x58] sm:$0xff] }
 0xa0b   : > { %v2092_v50 = vpop.xlane.xlu1 %2091 }
 0xa0c   : > { %5582 = vpow2.f32 %v2133_v21  ;;  %v2118_v25 = vsub.f32 %v5163_v60, %v2092_v50  ;;  %v4519_v21 = vld [vmem:[%s7339_s7 + $0x48] sm:$0xff] }
 0xa0d   : > { %v6454_v29 = vpop.eup %5576  ;;  %v4523_v50 = vld [vmem:[%s7339_s7 + $0x68] sm:$0xff] }
 0xa0e   : > { %v2139_v32 = vmul.f32 1.442695, %v2118_v25  ;;  %2163 = vadd.xlane.f32.xlu1 %v6454_v29  ;;  %v4522_v25 = vld [vmem:[%s7339_s7 + $0x60] sm:$0xff] }
 0xa0f   : > { %v2090_v33 = vpop.xlane.xlu1 %2089  ;;  %v6457_v18 = vpop.eup %5578 }
 0xa10   : > { %5584 = vpow2.f32 %v2139_v32  ;;  %v2117_v55 = vsub.f32 %v2022_v0, %v2090_v33  ;;  %v4525_v32 = vld [vmem:[%s7339_s7 + $0x78] sm:$0xff]  ;;  %v4524_v33 = vld [vmem:[%s7339_s7 + $0x70] sm:$0xff] }
 0xa12   : > { %v2137_v26 = vmul.f32 1.442695, %v2117_v55  ;;  %2161 = vadd.xlane.f32.xlu1 %v6457_v18  ;;  %v4564_v55 = vld [vmem:[%s7341_s9 + $0x70] sm:$0xff] }
 0xa13   : > { %v2096_v19 = vpop.xlane.xlu1 %2095 }
 0xa14   : > { %5586 = vpow2.f32 %v2137_v26  ;;  %v2120_v51 = vsub.f32 %v5166_v54, %v2096_v19  ;;  %v4565_v26 = vld [vmem:[%s7341_s9 + $0x78] sm:$0xff]  ;;  %v4562_v19 = vld [vmem:[%s7341_s9 + $0x60] sm:$0xff] }
 0xa15   : > { %v6460_v63 = vpop.eup %5580 }
 0xa16   : > { %v2143_v37 = vmul.f32 1.442695, %v2120_v51  ;;  %2167 = vadd.xlane.f32.xlu1 %v6460_v63  ;;  %v4563_v51 = vld [vmem:[%s7341_s9 + $0x68] sm:$0xff] }
 0xa17   : > { %v2094_v38 = vpop.xlane.xlu1 %2093 }
 0xa18   : > { %5588 = vpow2.f32 %v2143_v37  ;;  %v2119_v39 = vsub.f32 %v6411_v62, %v2094_v38  ;;  %v4560_v37 = vld [vmem:[%s7341_s9 + $0x50] sm:$0xff]  ;;  %v4561_v38 = vld [vmem:[%s7341_s9 + $0x58] sm:$0xff] }
 0xa19   : > { %v6464_v27 = vpop.eup %5582 }
 0xa1a   : > { %v2141_v43 = vmul.f32 1.442695, %v2119_v39  ;;  %2165 = vadd.xlane.f32.xlu1 %v6464_v27  ;;  %v4558_v39 = vld [vmem:[%s7341_s9 + $0x40] sm:$0xff] }
 0xa1b   : > { %v2100_v20 = vpop.xlane.xlu1 %2099 }
 0xa1c   : > { %5590 = vpow2.f32 %v2141_v43  ;;  %v2122_v59 = vsub.f32 %v6414_v46, %v2100_v20  ;;  %v4559_v43 = vld [vmem:[%s7341_s9 + $0x48] sm:$0xff] }
 0xa1d   : > { %v6468_v48 = vpop.eup %5584 }
 0xa1e   : > { %v2147_v7 = vmul.f32 1.442695, %v2122_v59  ;;  %2171 = vadd.xlane.f32.xlu1 %v6468_v48 }
 0xa1f   : > { %v2098_v31 = vpop.xlane.xlu1 %2097 }
 0xa20   : > { %5592 = vpow2.f32 %v2147_v7  ;;  %v2121_v49 = vsub.f32 %v6420_v1, %v2098_v31 }
 0xa21   : > { %v6472_v52 = vpop.eup %5586 }
 0xa22   : > { %v2145_v56 = vmul.f32 1.442695, %v2121_v49  ;;  %2169 = vadd.xlane.f32.xlu1 %v6472_v52 }
 0xa23   : > { %v2104_v57 = vpop.xlane.xlu1 %2103 }
 0xa24   : > { %5594 = vpow2.f32 %v2145_v56  ;;  %v2124_v3 = vsub.f32 %v6428_v35, %v2104_v57 }
 0xa25   : > { %v6476_v58 = vpop.eup %5588 }
 0xa26   : > { %v2151_v15 = vmul.f32 1.442695, %v2124_v3  ;;  %2175 = vadd.xlane.f32.xlu1 %v6476_v58 }
 0xa27   : > { %v2102_v60 = vpop.xlane.xlu1 %2101 }
 0xa28   : > { %5596 = vpow2.f32 %v2151_v15  ;;  %v2123_v0 = vsub.f32 %v6434_v5, %v2102_v60 }
 0xa29   : > { %v6480_v54 = vpop.eup %5590 }
 0xa2a   : > { %v2149_v62 = vmul.f32 1.442695, %v2123_v0  ;;  %2173 = vadd.xlane.f32.xlu1 %v6480_v54 }
 0xa2b   : > { %v2108_v46 = vpop.xlane.xlu1 %2107 }
 0xa2c   : > { %5598 = vpow2.f32 %v2149_v62  ;;  %v2126_v53 = vsub.f32 %v6442_v47, %v2108_v46 }
 0xa2d   : > { %v6484_v1 = vpop.eup %5592 }
 0xa2e   : > { %v2155_v2 = vmul.f32 1.442695, %v2126_v53  ;;  %2179 = vadd.xlane.f32.xlu1 %v6484_v1 }
 0xa2f   : > { %v2106_v35 = vpop.xlane.xlu1 %2105 }
 0xa30   : > { %5600 = vpow2.f32 %v2155_v2  ;;  %v2125_v45 = vsub.f32 %v6445_v34, %v2106_v35 }
 0xa31   : > { %v6488_v11 = vpop.eup %5594 }
 0xa32   : > { %v2153_v5 = vmul.f32 1.442695, %v2125_v45  ;;  %2177 = vadd.xlane.f32.xlu1 %v6488_v11 }
 0xa34   : > { %5602 = vpow2.f32 %v2153_v5 }
 0xa35   : > { %v6491_v23 = vpop.eup %5596  ;;  %v2110_v8 = vpop.xlane.xlu1 %2109 }
 0xa36   : > { %v2127_v47 = vsub.f32 %v6450_v13, %v2110_v8  ;;  %2183 = vadd.xlane.f32.xlu0 %v6491_v23 }
 0xa38   : > { %v2157_v10 = vmul.f32 1.442695, %v2127_v47 }
 0xa39   : > { %v6495_v14 = vpop.eup %5598  ;;  %v2112_v44 = vpop.xlane.xlu1 %2111 }
 0xa3a   : > { %5604 = vpow2.f32 %v2157_v10  ;;  %v2128_v34 = vsub.f32 %v6448_v24, %v2112_v44  ;;  %2181 = vadd.xlane.f32.xlu1 %v6495_v14  ;;  %v4518_v24 = vld [vmem:[%s7339_s7 + $0x40] sm:$0xff] }
 0xa3c   : > { %v2159_v9 = vmul.f32 1.442695, %v2128_v34 }
 0xa3d   : > { %v6499_v22 = vpop.eup %5600 }
 0xa3e   : > { %5606 = vpow2.f32 %v2159_v9  ;;  %2187 = vadd.xlane.f32.xlu0 %v6499_v22 }
 0xa41   : > { %v6502_v36 = vpop.eup %5602 }
 0xa42   : > { %2185 = vadd.xlane.f32.xlu1 %v6502_v36 }
 0xa47   : > { %v6505_v13 = vpop.eup %5604 }
 0xa48   : > { %2189 = vadd.xlane.f32.xlu1 %v6505_v13 }
 0xa4b   : > { %v6508_v17 = vpop.eup %5606 }
 0xa4c   : > { %2191 = vadd.xlane.f32.xlu0 %v6508_v17 }
 0xa59   : > { %1721 = vperm.xlu1 %5469, %v4518_v24  }
 0xa5d   : > { %1731 = vperm.xlu1 %5469, %v4520_v41  }
 0xa61   : > { %1736 = vperm.xlu1 %5469, %v4521_v42  }
 0xa62   : > { %1726 = vperm.xlu0 %5468, %v4519_v21  }
 0xa65   : > { %1746 = vperm.xlu1 %5469, %v4523_v50  }
 0xa66   : > { %1741 = vperm.xlu0 %5468, %v4522_v25  }
 0xa69   : > { %1756 = vperm.xlu1 %5469, %v4525_v32  }
 0xa6a   : > { %1751 = vperm.xlu0 %5468, %v4524_v33  }
 0xa6d   : > { %2403 = vperm.xlu1 %5469, %v4564_v55  }
 0xa6e   : > { %2408 = vperm.xlu0 %5468, %v4565_v26  }
 0xa71   : > { %2393 = vperm.xlu1 %5469, %v4562_v19  }
 0xa72   : > { %2398 = vperm.xlu0 %5468, %v4563_v51   ;;  %v6592_v51 = vpop.f32.mrf.mxu0 }
 0xa75   : > { %2383 = vperm.xlu1 %5469, %v4560_v37  }
 0xa76   : > { %2388 = vperm.xlu0 %5468, %v4561_v38  }
 0xa79   : > { %2373 = vperm.xlu1 %5469, %v4558_v39  }
 0xa7a   : > { %2378 = vperm.xlu0 %5468, %v4559_v43  }
 0xa97   : > { %v2164_v20 = vpop.xlane.xlu1 %2163 }
 0xa9b   : > { %v2162_v59 = vpop.xlane.xlu1 %2161 }
 0xa9c   : > { %5608 = vrcp.f32 %v2162_v59 }
 0xa9d   : > { %5610 = vrcp.f32 %v2164_v20  ;;  %v1825_v20 = vpop.f32.mrf.mxu0 }
 0xa9f   : > { %v2168_v7 = vpop.xlane.xlu1 %2167 }
 0xaa3   : > { %v2166_v31 = vpop.xlane.xlu1 %2165 }
 0xaa4   : > { %5612 = vrcp.f32 %v2166_v31  ;;  %v6596_v31 = vpop.f32.mrf.mxu0 }
 0xaa5   : > { %5614 = vrcp.f32 %v2168_v7 }
 0xaa7   : > { %v2172_v49 = vpop.xlane.xlu1 %2171 }
 0xaa9   : > { %v5609_v15 = vpop.eup %5608 }
 0xaaa   : > { %v5611_v0 = vpop.eup %5610  ;;  %v6560_v46 = vmul.f32 %v5609_v15, %v6457_v18 }
 0xaab   : > { %v2170_v56 = vpop.xlane.xlu1 %2169  ;;  %v6563_v2 = vmul.f32 %v5611_v0, %v6454_v29 }
 0xaac   : > { %5616 = vrcp.f32 %v2170_v56 }
 0xaad   : > { %5618 = vrcp.f32 %v2172_v49  ;;  %v2225_v5 = vadd.f32 %v6563_v2, %v6560_v46 }
 0xaaf   : > { %v2176_v57 = vpop.xlane.xlu1 %2175 }
 0xab1   : > { %v5613_v62 = vpop.eup %5612 }
 0xab2   : > { %v6566_v35 = vmul.f32 %v5613_v62, %v6464_v27  ;;  %v5615_v45 = vpop.eup %5614 }
 0xab3   : > { %v2174_v3 = vpop.xlane.xlu1 %2173  ;;  %v6572_v10 = vmul.f32 %v5615_v45, %v6460_v63 }
 0xab4   : > { %5620 = vrcp.f32 %v2174_v3  ;;  %v2226_v47 = vadd.f32 %v2225_v5, %v6566_v35 }
 0xab5   : > { %5622 = vrcp.f32 %v2176_v57 }
 0xab6   : > { %v2227_v27 = vadd.f32 %v2226_v47, %v6572_v10 }
 0xab7   : > { %v2180_v60 = vpop.xlane.xlu1 %2179 }
 0xab9   : > { %v5617_v8 = vpop.eup %5616 }
 0xaba   : > { %v6575_v18 = vmul.f32 %v5617_v8, %v6472_v52  ;;  %v5619_v44 = vpop.eup %5618 }
 0xabb   : > { %v2178_v53 = vpop.xlane.xlu1 %2177  ;;  %v6580_v41 = vmul.f32 %v5619_v44, %v6468_v48 }
 0xabc   : > { %5624 = vrcp.f32 %v2178_v53  ;;  %v2228_v9 = vadd.f32 %v2227_v27, %v6575_v18 }
 0xabd   : > { %5626 = vrcp.f32 %v2180_v60  ;;  %v1828_v60 = vpop.f32.mrf.mxu0 }
 0xabe   : > { %v2229_v52 = vadd.f32 %v2228_v9, %v6580_v41 }
 0xabf   : > { %v2184_v24 = vpop.xlane.xlu0 %2183 }
 0xac1   : > { %v5621_v34 = vpop.eup %5620 }
 0xac2   : > { %v6583_v42 = vmul.f32 %v5621_v34, %v6480_v54  ;;  %v5623_v63 = vpop.eup %5622 }
 0xac3   : > { %v2182_v29 = vpop.xlane.xlu1 %2181  ;;  %v6588_v33 = vmul.f32 %v5623_v63, %v6476_v58 }
 0xac4   : > { %5628 = vrcp.f32 %v2182_v29  ;;  %v2230_v25 = vadd.f32 %v2229_v52, %v6583_v42 }
 0xac5   : > { %5630 = vrcp.f32 %v2184_v24 }
 0xac6   : > { %v2231_v26 = vadd.f32 %v2230_v25, %v6588_v33 }
 0xac7   : > { %v2188_v32 = vpop.xlane.xlu0 %2187 }
 0xac9   : > { %v5625_v21 = vpop.eup %5624 }
 0xaca   : > { %v2217_v55 = vmul.f32 %v5625_v21, %v6488_v11  ;;  %v5627_v48 = vpop.eup %5626 }
 0xacb   : > { %v2186_v50 = vpop.xlane.xlu1 %2185  ;;  %v2218_v38 = vmul.f32 %v5627_v48, %v6484_v1 }
 0xacc   : > { %5632 = vrcp.f32 %v2186_v50  ;;  %v2232_v37 = vadd.f32 %v2231_v26, %v2217_v55 }
 0xacd   : > { %5634 = vrcp.f32 %v2188_v32 }
 0xace   : > { %v2233_v58 = vadd.f32 %v2232_v37, %v2218_v38 }
 0xad1   : > { %v5629_v54 = vpop.eup %5628  ;;  %v2190_v19 = vpop.xlane.xlu1 %2189 }
 0xad2   : > { %5636 = vrcp.f32 %v2190_v19  ;;  %v2219_v39 = vmul.f32 %v5629_v54, %v6495_v14  ;;  %v5631_v59 = vpop.eup %5630 }
 0xad3   : > { %v2220_v49 = vmul.f32 %v5631_v59, %v6491_v23 }
 0xad4   : > { %v2234_v11 = vadd.f32 %v2233_v58, %v2219_v39 }
 0xad5   : > { %v2192_v43 = vpop.xlane.xlu0 %2191  ;;  %v1722_v57 = vpop.permute.xlu1 %1721 }
 0xad6   : > { %5638 = vrcp.f32 %v2192_v43  ;;  %v2235_v3 = vadd.f32 %v2234_v11, %v2220_v49  ;;  %v1826_v0 = vadd.f32 %v1825_v20, %v1722_v57  ;;  %v5149_v11 = vpop.f32.mrf.mxu0 }
 0xad9   : > { %v5633_v7 = vpop.eup %5632 }
 0xada   : > { %v2221_v56 = vmul.f32 %v5633_v7, %v6502_v36  ;;  %v5635_v15 = vpop.eup %5634  ;;  %v1732_v7 = vpop.permute.xlu1 %1731 }
 0xadb   : > { %v2222_v5 = vmul.f32 %v5635_v15, %v6499_v22 }
 0xadc   : > { %v2236_v62 = vadd.f32 %v2235_v3, %v2221_v56 }
 0xadd   : > { %v1727_v1 = vpop.permute.xlu0 %1726 }
 0xade   : > { %v1829_v14 = vadd.f32 %v1828_v60, %v1727_v1  ;;  %v2237_v47 = vadd.f32 %v2236_v62, %v2222_v5 }
 0xadf   : > { %v5637_v53 = vpop.eup %5636 }
 0xae0   : > { %v2264_v45 = vpack.c.bf16 %v1829_v14, %v1826_v0  ;;  %v2223_v8 = vmul.f32 %v5637_v53, %v6505_v13  ;;  %v1834_v53 = vadd.f32 %v6592_v51, %v1732_v7 }
 0xae2   : > { %5195 = vmatprep.mubr.bf16.mxu0 %v2264_v45  ;;  %v2238_v36 = vadd.f32 %v2237_v47, %v2223_v8 }
 0xae3   : > { %v5639_v29 = vpop.eup %5638 }
 0xae4   : > { %v2224_v23 = vmul.f32 %v5639_v29, %v6508_v17 }
 0xae6   : > { %v2239_v44 = vadd.f32 %v2238_v36, %v2224_v23 }
 0xae8   : > { %v2240_v27 = vrot.slane %v2239_v44, 4 }
 0xaea   : > { %v2241_v34 = vadd.f32 %v2240_v27, %v2239_v44 }
 0xaec   : > { %v2242_v9 = vrot.slane %v2241_v34, 2 }
 0xaee   : > { %v2243_v24 = vadd.f32 %v2242_v9, %v2241_v34 }
 0xaf0   : > { %v2244_v63 = vrot.slane %v2243_v24, 1 }
 0xaf2   : > { %v2245_v52 = vadd.f32 %v2244_v63, %v2243_v24 }
 0xaf4   : > { %v2246_v21 = vadd.f32 1e-09, %v2245_v52 }
 0xaf6   : > { %5640 = vrcp.f32 %v2246_v21 }
 0xb03   : > { %v5641_v50 = vpop.eup %5640 }
 0xb04   : > { %v2262_v25 = vmul.f32 %v5641_v50, %v2223_v8  ;;  %v2263_v22 = vmul.f32 %v5641_v50, %v2224_v23  ;;  %v2260_v32 = vmul.f32 %v5641_v50, %v2221_v56  ;;  %v2261_v13 = vmul.f32 %v5641_v50, %v2222_v5 }
 0xb05   : > { %v2258_v54 = vmul.f32 %v5641_v50, %v2219_v39  ;;  %v2259_v17 = vmul.f32 %v5641_v50, %v2220_v49  ;;  %v2256_v37 = vmul.f32 %v5641_v50, %v2217_v55  ;;  %v2257_v43 = vmul.f32 %v5641_v50, %v2218_v38  ;;  %v1841_v55 = vpop.f32.mrf.mxu0 }
 0xb06   : > { %v2275_v48 = vpack.c.bf16 %v2263_v22, %v2262_v25  ;;  %v2274_v26 = vpack.c.bf16 %v2261_v13, %v2260_v32  ;;  %v2254_v58 = vmul.f32 %v5641_v50, %v6583_v42  ;;  %v2255_v59 = vmul.f32 %v5641_v50, %v6588_v33  ;;  %v1737_v42 = vpop.permute.xlu1 %1736 }
 0xb07   : > { %v2273_v19 = vpack.c.bf16 %v2259_v17, %v2258_v54  ;;  %v2272_v20 = vpack.c.bf16 %v2257_v43, %v2256_v37  ;;  %v2252_v39 = vmul.f32 %v5641_v50, %v6575_v18  ;;  %v2253_v49 = vmul.f32 %v5641_v50, %v6580_v41  ;;  %v5150_v33 = vpop.f32.mrf.mxu0  ;;  %v1742_v41 = vpop.permute.xlu0 %1741  ;;  %v5492_v37 = vld [vmem:[%s7340_s8 + $0x30] sm:$0xff]   ;;  %v5493_v43 = vld [vmem:[%s7340_s8 + $0x38] sm:$0xff]  }
 0xb08   : > { %5179 = vmatprep.subr.bf16.mxu0 %v2275_v48  ;;  %v2271_v56 = vpack.c.bf16 %v2255_v59, %v2254_v58  ;;  %v2250_v57 = vmul.f32 %v5641_v50, %v6566_v35  ;;  %v2251_v3 = vmul.f32 %v5641_v50, %v6572_v10  ;;  %v2248_v60 = vmul.f32 %v5641_v50, %v6560_v46 }
 0xb09   : > { %5180 = vmatpush3.bf16.msra.mxu0 %v2275_v48  ;;  %v2270_v38 = vpack.c.bf16 %v2253_v49, %v2252_v39  ;;  %v2249_v1 = vmul.f32 %v5641_v50, %v6563_v2  ;;  %v1844_v18 = vpop.f32.mrf.mxu0  ;;  %v1837_v35 = vadd.f32 %v6596_v31, %v1737_v42  ;;  %v1842_v10 = vadd.f32 %v1841_v55, %v1742_v41  ;;  %v5490_v31 = vld [vmem:[%s7340_s8 + $0x20] sm:$0xff]  }
 0xb0a   : > { %5181 = vmatprep.subr.bf16.mxu0 %v2274_v26  ;;  %v2269_v15 = vpack.c.bf16 %v2251_v3, %v2250_v57  ;;  %v1747_v0 = vpop.permute.xlu1 %1746  ;;  %5211 = vmatprep.mubr.msk.bf16.mxu1 %vm447_vm0, %v5490_v31 }
 0xb0b   : > { %v2268_v14 = vpack.c.bf16 %v2249_v1, %v2248_v60  ;;  %v1845_v62 = vadd.f32 %v1844_v18, %v1747_v0  ;;  %v2265_v45 = vpack.c.bf16 %v1837_v35, %v1834_v53  ;;  %v1752_v46 = vpop.permute.xlu0 %1751 }
 0xb0c   : > { %v1850_v2 = vadd.f32 %v5149_v11, %v1752_v46 }
 0xb0d   : > { %5182 = vmatpush3.bf16.msra.mxu0 %v2274_v26  ;;  %v2266_v5 = vpack.c.bf16 %v1845_v62, %v1842_v10 }
 0xb0e   : > { %5183 = vmatprep.subr.bf16.mxu0 %v2273_v19  ;;  %v1757_v8 = vpop.permute.xlu1 %1756 }
 0xb0f   : > { %v1853_v47 = vadd.f32 %v5150_v33, %v1757_v8  ;;  %v2409_v59 = vpop.permute.xlu0 %2408 }
 0xb11   : > { %5184 = vmatpush3.bf16.msra.mxu0 %v2273_v19  ;;  %v2267_v29 = vpack.c.bf16 %v1853_v47, %v1850_v2  ;;  %v5491_v19 = vld [vmem:[%s7340_s8 + $0x28] sm:$0xff]  }
 0xb12   : > { %5185 = vmatprep.subr.bf16.mxu0 %v2272_v20  ;;  %v2404_v58 = vpop.permute.xlu1 %2403 }
 0xb13   : > { %v2399_v7 = vpop.permute.xlu0 %2398 }
 0xb15   : > { %5186 = vmatpush3.bf16.msra.mxu0 %v2272_v20  ;;  %v4582_v20 = vld [vmem:[%s7337_s5 + $0x20] sm:$0xff] }
 0xb16   : > { %5187 = vmatprep.subr.bf16.mxu0 %v2271_v56  ;;  %v2394_v11 = vpop.permute.xlu1 %2393 }
 0xb17   : > { %v2389_v39 = vpop.permute.xlu0 %2388 }
 0xb19   : > { %5188 = vmatpush3.bf16.msra.mxu0 %v2271_v56 }
 0xb1a   : > { %5189 = vmatprep.subr.bf16.mxu0 %v2270_v38  ;;  %v2384_v56 = vpop.permute.xlu1 %2383 }
 0xb1b   : > { %v2379_v18 = vpop.permute.xlu0 %2378 }
 0xb1d   : > { %5190 = vmatpush3.bf16.msra.mxu0 %v2270_v38 }
 0xb1e   : > { %5191 = vmatprep.subr.bf16.mxu0 %v2269_v15  ;;  %v2374_v38 = vpop.permute.xlu1 %2373 }
 0xb21   : > { %5192 = vmatpush3.bf16.msra.mxu0 %v2269_v15 }
 0xb22   : > { %5193 = vmatprep.subr.bf16.mxu0 %v2268_v14 }
 0xb25   : > { %5194 = vmatpush3.bf16.msra.mxu0 %v2268_v14 }
 0xb28   : > { %5196 = vmatmul.mubr.bf16.vlgmr.msra.gmra.mxu0 %v2265_v45 }
 0xb29   : > { %5199 = vmatprep.mubr.bf16.mxu0 %v2266_v5 }
 0xb30   : > { %5200 = vmatmul.mubr.bf16.gmra.mxu0 %v2267_v29 }
 0xb31   : > { %5235 = vmatprep.mubr.msk.f32.mxu0 %vm447_vm0, %v4582_v20 }
 0xbe8   : > { %v5197_v23 = vpop.f32.mrf.mxu0 }
 0xbe9   : > { %v2352_v13 = vsub.f32 %v6326_v4, %v5197_v23 }
 0xbea   : > { %v2310_v36 = vpop.f32.mrf.mxu0 }
 0xbeb   : > { %v2350_v54 = vsub.f32 %v6333_v6, %v2310_v36 }
 0xbec   : > { %v5198_v51 = vpop.f32.mrf.mxu0 }
 0xbed   : > { %v2353_v22 = vsub.f32 %v6338_v40, %v5198_v51 }
 0xbee   : > { %v2313_v44 = vpop.f32.mrf.mxu0 }
 0xbef   : > { %v2359_v48 = vpack.c.bf16 %v2353_v22, %v2352_v13  ;;  %v2351_v26 = vsub.f32 %v6343_v16, %v2313_v44 }
 0xbf0   : > { %v5201_v27 = vpop.f32.mrf.mxu0 }
 0xbf1   : > { %v2356_v24 = vsub.f32 %v6348_v12, %v5201_v27  ;;  %v2358_v17 = vpack.c.bf16 %v2351_v26, %v2350_v54  ;;  %v4583_v27 = vld [vmem:[%s7337_s5 + $0x28] sm:$0xff] }
 0xbf2   : > { %v2326_v34 = vpop.f32.mrf.mxu0 }
 0xbf3   : > { %v2354_v21 = vsub.f32 %v6353_v61, %v2326_v34 }
 0xbf4   : > { %v5202_v9 = vpop.f32.mrf.mxu0 }
 0xbf5   : > { %v2357_v63 = vsub.f32 %v6358_v30, %v5202_v9 }
 0xbf6   : > { %v2329_v52 = vpop.f32.mrf.mxu0 }
 0xbf7   : > { %v2361_v50 = vpack.c.bf16 %v2357_v63, %v2356_v24  ;;  %v2355_v25 = vsub.f32 %v6363_v28, %v2329_v52 }
 0xbf9   : > { %v2360_v32 = vpack.c.bf16 %v2355_v25, %v2354_v21  ;;  %5203 = vmatprep.subr.bf16.mxu1 %v2361_v50 }
 0xbfa   : > { %5204 = vmatpush3.bf16.msra.mxu1 %v2361_v50 }
 0xbfb   : > { %5205 = vmatprep.subr.bf16.mxu1 %v2360_v32 }
 0xbfe   : > { %5206 = vmatpush3.bf16.msra.mxu1 %v2360_v32 }
 0xbff   : > { %5207 = vmatprep.subr.bf16.mxu1 %v2359_v48 }
 0xc02   : > { %5208 = vmatpush3.bf16.msra.mxu1 %v2359_v48 }
 0xc03   : > { %5209 = vmatprep.subr.bf16.mxu1 %v2358_v17 }
 0xc06   : > { %5210 = vmatpush3.bf16.msra.mxu1 %v2358_v17 }
 0xc09   : > { %5212 = vmatmul.mubr.msk.bf16.vlgmr.msra.gmra.mxu1 %vm447_vm0, %v5491_v19 }
 0xc0a   : > { %5215 = vmatprep.mubr.msk.bf16.mxu1 %vm447_vm0, %v5492_v37 }
 0xc11   : > { %5216 = vmatmul.mubr.msk.bf16.gmra.mxu1 %vm447_vm0, %v5493_v43 }
 0xcc9   : > { %v5213_v49 = vpop.f32.mrf.mxu1 }
 0xcca   : > { %v2486_v55 = vadd.f32 %v5213_v49, %v2384_v56 }
 0xccb   : > { %v2477_v57 = vpop.f32.mrf.mxu1 }
 0xccc   : > { %v2510_v3 = vmax.f32 %v2486_v55, 0.0  ;;  %v2478_v42 = vadd.f32 %v2477_v57, %v2374_v38  ;;  %v5494_v38 = vld [vmem:[%s7338_s6 + $0x40] sm:$0xff]  }
 0xccd   : > { %v5214_v33 = vpop.f32.mrf.mxu1  ;;  %5246 = vmatprep.mubr.msk.bf16.mxu1 %vm447_vm0, %v5494_v38 }
 0xcce   : > { %v6642_v15 = vadd.f32 %v2510_v3, %v6326_v4  ;;  %v2508_v60 = vmax.f32 %v2478_v42, 0.0  ;;  %v2489_v1 = vadd.f32 %v5214_v33, %v2389_v39  ;;  %v5495_v3 = vld [vmem:[%s7338_s6 + $0x48] sm:$0xff]   ;;  %v5496_v33 = vld [vmem:[%s7338_s6 + $0x50] sm:$0xff]  }
 0xccf   : > { %v2480_v41 = vpop.f32.mrf.mxu1 }
 0xcd0   : > { %4576 = vst [vmem:[%s6328_s25 + $0x50] sm:$0xff] %v6642_v15  ;;  %v6647_v0 = vadd.f32 %v2508_v60, %v6333_v6  ;;  %v2511_v14 = vmax.f32 %v2489_v1, 0.0  ;;  %v2481_v35 = vadd.f32 %v2480_v41, %v2379_v18  ;;  %v5497_v1 = vld [vmem:[%s7338_s6 + $0x58] sm:$0xff]  }
 0xcd1   : > { %v5217_v10 = vpop.f32.mrf.mxu1 }
 0xcd2   : > { %4574 = vst [vmem:[%s6328_s25 + $0x40] sm:$0xff] %v6647_v0  ;;  %v6652_v62 = vadd.f32 %v2511_v14, %v6338_v40  ;;  %v2509_v4 = vmax.f32 %v2481_v35, 0.0  ;;  %v2502_v53 = vadd.f32 %v5217_v10, %v2404_v58 }
 0xcd3   : > { %v2493_v45 = vpop.f32.mrf.mxu1 }
 0xcd4   : > { %4577 = vst [vmem:[%s6328_s25 + $0x58] sm:$0xff] %v6652_v62  ;;  %v6657_v5 = vadd.f32 %v2509_v4, %v6343_v16  ;;  %v2514_v6 = vmax.f32 %v2502_v53, 0.0  ;;  %v2494_v46 = vadd.f32 %v2493_v45, %v2394_v11 }
 0xcd5   : > { %v5218_v8 = vpop.f32.mrf.mxu1 }
 0xcd6   : > { %4575 = vst [vmem:[%s6328_s25 + $0x48] sm:$0xff] %v6657_v5  ;;  %v6662_v2 = vadd.f32 %v2514_v6, %v6348_v12  ;;  %v2512_v40 = vmax.f32 %v2494_v46, 0.0  ;;  %v2505_v47 = vadd.f32 %v5218_v8, %v2409_v59 }
 0xcd7   : > { %v2496_v29 = vpop.f32.mrf.mxu1 }
 0xcd8   : > { %4580 = vst [vmem:[%s6328_s25 + $0x70] sm:$0xff] %v6662_v2  ;;  %v6667_v31 = vadd.f32 %v2512_v40, %v6353_v61  ;;  %v2515_v16 = vmax.f32 %v2505_v47, 0.0  ;;  %v2497_v23 = vadd.f32 %v2496_v29, %v2399_v7 }
 0xcda   : > { %4578 = vst [vmem:[%s6328_s25 + $0x60] sm:$0xff] %v6667_v31  ;;  %v6672_v36 = vadd.f32 %v2515_v16, %v6358_v30  ;;  %v2513_v51 = vmax.f32 %v2497_v23, 0.0  ;;  %v2534_v30 = vpack.c.bf16 %v6652_v62, %v6642_v15 }
 0xcdc   : > { %4581 = vst [vmem:[%s6328_s25 + $0x78] sm:$0xff] %v6672_v36  ;;  %v6677_v12 = vadd.f32 %v2513_v51, %v6363_v28  ;;  %5219 = vmatprep.subr.mxu0 %v6672_v36  ;;  %v2536_v44 = vpack.c.bf16 %v6672_v36, %v6662_v2  ;;  %v2533_v28 = vpack.c.bf16 %v6657_v5, %v6647_v0 }
 0xcdd   : > { %5220 = vmatpush3.msra.mxu0 %v6672_v36 }
 0xcde   : > { %4579 = vst [vmem:[%s6328_s25 + $0x68] sm:$0xff] %v6677_v12  ;;  %5221 = vmatprep.subr.mxu0 %v6662_v2  ;;  %5238 = vmatprep.subr.bf16.mxu1 %v2536_v44  ;;  %v2535_v61 = vpack.c.bf16 %v6677_v12, %v6667_v31 }
 0xcdf   : > { %5222 = vmatpush3.msra.mxu0 %v6662_v2  ;;  %5239 = vmatpush3.bf16.msra.mxu1 %v2536_v44 }
 0xce0   : > { %5223 = vmatprep.subr.mxu0 %v6677_v12  ;;  %5240 = vmatprep.subr.bf16.mxu1 %v2535_v61 }
 0xce1   : > { %5224 = vmatpush3.msra.mxu0 %v6677_v12 }
 0xce2   : > { %5225 = vmatprep.subr.mxu0 %v6667_v31 }
 0xce3   : > { %5226 = vmatpush3.msra.mxu0 %v6667_v31  ;;  %5241 = vmatpush3.bf16.msra.mxu1 %v2535_v61 }
 0xce4   : > { %5227 = vmatprep.subr.mxu0 %v6652_v62  ;;  %5242 = vmatprep.subr.bf16.mxu1 %v2534_v30 }
 0xce5   : > { %5228 = vmatpush3.msra.mxu0 %v6652_v62 }
 0xce6   : > { %5229 = vmatprep.subr.mxu0 %v6642_v15 }
 0xce7   : > { %5230 = vmatpush3.msra.mxu0 %v6642_v15  ;;  %5243 = vmatpush3.bf16.msra.mxu1 %v2534_v30 }
 0xce8   : > { %5231 = vmatprep.subr.mxu0 %v6657_v5  ;;  %5244 = vmatprep.subr.bf16.mxu1 %v2533_v28 }
 0xce9   : > { %5232 = vmatpush3.msra.mxu0 %v6657_v5 }
 0xcea   : > { %5233 = vmatprep.subr.mxu0 %v6647_v0 }
 0xceb   : > { %5234 = vmatpush3.msra.mxu0 %v6647_v0  ;;  %5245 = vmatpush3.bf16.msra.mxu1 %v2533_v28 }
 0xcec   : > { %5236 = vmatmul.mubr.msk.f32.vlgmr.msra.gmra.mxu0 %vm447_vm0, %v4583_v27 }
 0xcee   : > { %5247 = vmatmul.mubr.msk.bf16.vlgmr.msra.gmra.mxu1 %vm447_vm0, %v5495_v3 }
 0xcef   : > { %5250 = vmatprep.mubr.msk.bf16.mxu1 %vm447_vm0, %v5496_v33 }
 0xcf6   : > { %5251 = vmatmul.mubr.msk.bf16.gmra.mxu1 %vm447_vm0, %v5497_v1 }
 0xdac   : > { %v5237_v34 = vpop.f32.mrf.mxu0 }
 0xdad   : > { %5254 = vmatprep.subr.mxu0 %v5237_v34 }
 0xdae   : > { %v2612_v9 = vpop.f32.mrf.mxu0  ;;  %5255 = vmatpush3.msra.mxu0 %v5237_v34 }
 0xdaf   : > { %2776 = vxpose.xlu0.b32.start [1/2] (short) %v2612_v9, 128  ;;  %5256 = vmatprep.subr.mxu0 %v2612_v9 }
 0xdb0   : > { %5257 = vmatpush3.msra.mxu0 %v2612_v9 }
 0xdb3   : > { %2777 = vxpose.xlu0.b32.end [2/2] (short) %v5237_v34, 128 }
 0xe2b   : > { %v2792_v24 = vpop.trf.xlu0 }
 0xe2c   : > { %5258 = vmatprep.mubr.msk.f32.mxu0 %vm970_vm1, %v2792_v24 }
 0xe2f   : > { %v2793_v63 = vpop.trf.xlu0 }
 0xe30   : > { %5259 = vmatmul.mubr.msk.f32.vlgmr.msra.gmra.mxu0 %vm970_vm1, %v2793_v63 }
 0xe33   : > { %v2794_v52 = vpop.trf.xlu0 }
 0xe34   : > { %5261 = vmatprep.mubr.msk.f32.mxu0 %vm970_vm1, %v2794_v52 }
 0xe37   : > { %v2795_v21 = vpop.trf.xlu0 }
 0xe38   : > { %5262 = vmatmul.mubr.msk.f32.gmra.mxu0 %vm970_vm1, %v2795_v21 }
 0xe3b   : > { %v2796_v50 = vpop.trf.xlu0 }
 0xe3c   : > { %5264 = vmatprep.mubr.msk.f32.mxu0 %vm970_vm1, %v2796_v50 }
 0xe3f   : > { %v2797_v25 = vpop.trf.xlu0 }
 0xe40   : > { %5265 = vmatmul.mubr.msk.f32.gmra.mxu0 %vm970_vm1, %v2797_v25 }
 0xe43   : > { %v2798_v22 = vpop.trf.xlu0 }
 0xe44   : > { %5267 = vmatprep.mubr.msk.f32.mxu0 %vm970_vm1, %v2798_v22 }
 0xe47   : > { %v2799_v32 = vpop.trf.xlu0 }
 0xe48   : > { %5268 = vmatmul.mubr.msk.f32.gmra.mxu0 %vm970_vm1, %v2799_v32 }
 0xe4b   : > { %v2800_v13 = vpop.trf.xlu0 }
 0xe4c   : > { %5270 = vmatprep.mubr.msk.f32.mxu0 %vm970_vm1, %v2800_v13 }
 0xe4f   : > { %v2801_v48 = vpop.trf.xlu0 }
 0xe50   : > { %5271 = vmatmul.mubr.msk.f32.gmra.mxu0 %vm970_vm1, %v2801_v48 }
 0xe53   : > { %v2802_v26 = vpop.trf.xlu0 }
 0xe54   : > { %5273 = vmatprep.mubr.msk.f32.mxu0 %vm970_vm1, %v2802_v26 }
 0xe57   : > { %v2803_v54 = vpop.trf.xlu0 }
 0xe58   : > { %5274 = vmatmul.mubr.msk.f32.gmra.mxu0 %vm970_vm1, %v2803_v54 }
 0xe5b   : > { %v2804_v17 = vpop.trf.xlu0 }
 0xe5c   : > { %5276 = vmatprep.mubr.msk.f32.mxu0 %vm970_vm1, %v2804_v17 }
 0xe5f   : > { %v2805_v19 = vpop.trf.xlu0 }
 0xe60   : > { %5277 = vmatmul.mubr.msk.f32.gmra.mxu0 %vm970_vm1, %v2805_v19 }
 0xe63   : > { %v2806_v37 = vpop.trf.xlu0 }
 0xe64   : > { %5279 = vmatprep.mubr.msk.f32.mxu0 %vm970_vm1, %v2806_v37 }
 0xe67   : > { %v2807_v43 = vpop.trf.xlu0 }
 0xe68   : > { %5280 = vmatmul.mubr.msk.f32.gmra.mxu0 %vm970_vm1, %v2807_v43 }
 0xef0   : > { %v5260_v20 = vpop.f32.mrf.mxu0 }
 0xef1   : > { %3003 = vmax.xlane.f32.xlu0 %v5260_v20 }
 0xef2   : > { %v2922_v58 = vpop.f32.mrf.mxu0 }
 0xef3   : > { %3001 = vmax.xlane.f32.xlu1 %v2922_v58 }
 0xef8   : > { %v5263_v59 = vpop.f32.mrf.mxu0 }
 0xef9   : > { %3007 = vmax.xlane.f32.xlu1 %v5263_v59 }
 0xefa   : > { %v2932_v11 = vpop.f32.mrf.mxu0 }
 0xefd   : > { %3005 = vmax.xlane.f32.xlu1 %v2932_v11 }
 0xf00   : > { %v5266_v7 = vpop.f32.mrf.mxu0 }
 0xf01   : > { %3011 = vmax.xlane.f32.xlu1 %v5266_v7 }
 0xf02   : > { %v2942_v56 = vpop.f32.mrf.mxu0 }
 0xf05   : > { %3009 = vmax.xlane.f32.xlu1 %v2942_v56 }
 0xf08   : > { %v5269_v39 = vpop.f32.mrf.mxu0 }
 0xf09   : > { %3015 = vmax.xlane.f32.xlu1 %v5269_v39 }
 0xf0a   : > { %v6725_v49 = vpop.f32.mrf.mxu0 }
 0xf0d   : > { %3013 = vmax.xlane.f32.xlu1 %v6725_v49 }
 0xf10   : > { %v6728_v55 = vpop.f32.mrf.mxu0 }
 0xf11   : > { %3019 = vmax.xlane.f32.xlu1 %v6728_v55 }
 0xf12   : > { %v6734_v57 = vpop.f32.mrf.mxu0 }
 0xf15   : > { %3017 = vmax.xlane.f32.xlu1 %v6734_v57 }
 0xf18   : > { %v6742_v42 = vpop.f32.mrf.mxu0 }
 0xf19   : > { %3023 = vmax.xlane.f32.xlu1 %v6742_v42 }
 0xf1a   : > { %v6748_v60 = vpop.f32.mrf.mxu0 }
 0xf1d   : > { %3021 = vmax.xlane.f32.xlu1 %v6748_v60 }
 0xf20   : > { %v6756_v18 = vpop.f32.mrf.mxu0 }
 0xf21   : > { %3027 = vmax.xlane.f32.xlu1 %v6756_v18 }
 0xf22   : > { %v6759_v41 = vpop.f32.mrf.mxu0 }
 0xf25   : > { %3025 = vmax.xlane.f32.xlu1 %v6759_v41 }
 0xf28   : > { %v6762_v14 = vpop.f32.mrf.mxu0 }
 0xf2a   : > { %v6764_v35 = vpop.f32.mrf.mxu0 }
 0xf2b   : > { %3029 = vmax.xlane.f32.xlu1 %v6764_v35 }
 0xf2f   : > { %3031 = vmax.xlane.f32.xlu1 %v6762_v14 }
 0xf7a   : > { %v3004_v10 = vpop.xlane.xlu0 %3003 }
 0xf7b   : > { %v3034_v4 = vsub.f32 %v5260_v20, %v3004_v10 }
 0xf7c   : > { %v3002_v53 = vpop.xlane.xlu1 %3001 }
 0xf7d   : > { %v3051_v45 = vmul.f32 1.442695, %v3034_v4  ;;  %v3033_v6 = vsub.f32 %v2922_v58, %v3002_v53 }
 0xf7f   : > { %5642 = vpow2.f32 %v3051_v45  ;;  %v3049_v46 = vmul.f32 1.442695, %v3033_v6 }
 0xf81   : > { %5644 = vpow2.f32 %v3049_v46 }
 0xf82   : > { %v3008_v8 = vpop.xlane.xlu1 %3007 }
 0xf83   : > { %v3036_v40 = vsub.f32 %v5263_v59, %v3008_v8 }
 0xf85   : > { %v3055_v47 = vmul.f32 1.442695, %v3036_v40 }
 0xf86   : > { %v3006_v29 = vpop.xlane.xlu1 %3005 }
 0xf87   : > { %5646 = vpow2.f32 %v3055_v47  ;;  %v3035_v16 = vsub.f32 %v2932_v11, %v3006_v29  ;;  %v4596_v29 = vld [vmem:[%s7339_s7 + $0x90] sm:$0xff] }
 0xf89   : > { %v3053_v23 = vmul.f32 1.442695, %v3035_v16  ;;  %v4597_v16 = vld [vmem:[%s7339_s7 + $0x98] sm:$0xff] }
 0xf8a   : > { %v3012_v51 = vpop.xlane.xlu1 %3011 }
 0xf8b   : > { %5648 = vpow2.f32 %v3053_v23  ;;  %v3038_v44 = vsub.f32 %v5266_v7, %v3012_v51  ;;  %v4595_v23 = vld [vmem:[%s7339_s7 + $0x88] sm:$0xff] }
 0xf8c   : > { %v6768_v61 = vpop.eup %5642  ;;  %v4599_v51 = vld [vmem:[%s7339_s7 + $0xa8] sm:$0xff] }
 0xf8d   : > { %v3059_v30 = vmul.f32 1.442695, %v3038_v44  ;;  %3083 = vadd.xlane.f32.xlu1 %v6768_v61  ;;  %v4598_v44 = vld [vmem:[%s7339_s7 + $0xa0] sm:$0xff] }
 0xf8e   : > { %v3010_v28 = vpop.xlane.xlu1 %3009  ;;  %v6771_v34 = vpop.eup %5644 }
 0xf8f   : > { %5650 = vpow2.f32 %v3059_v30  ;;  %v3037_v27 = vsub.f32 %v2942_v56, %v3010_v28  ;;  %v4601_v30 = vld [vmem:[%s7339_s7 + $0xb8] sm:$0xff]  ;;  %v4600_v28 = vld [vmem:[%s7339_s7 + $0xb0] sm:$0xff] }
 0xf91   : > { %v3057_v9 = vmul.f32 1.442695, %v3037_v27  ;;  %3081 = vadd.xlane.f32.xlu1 %v6771_v34  ;;  %v4640_v27 = vld [vmem:[%s7341_s9 + $0xb0] sm:$0xff] }
 0xf92   : > { %v3016_v24 = vpop.xlane.xlu1 %3015 }
 0xf93   : > { %5652 = vpow2.f32 %v3057_v9  ;;  %v3040_v63 = vsub.f32 %v5269_v39, %v3016_v24  ;;  %v4641_v9 = vld [vmem:[%s7341_s9 + $0xb8] sm:$0xff]  ;;  %v4638_v24 = vld [vmem:[%s7341_s9 + $0xa0] sm:$0xff] }
 0xf94   : > { %v6774_v52 = vpop.eup %5646 }
 0xf95   : > { %v3063_v21 = vmul.f32 1.442695, %v3040_v63  ;;  %3087 = vadd.xlane.f32.xlu1 %v6774_v52  ;;  %v4639_v63 = vld [vmem:[%s7341_s9 + $0xa8] sm:$0xff] }
 0xf96   : > { %v3014_v50 = vpop.xlane.xlu1 %3013 }
 0xf97   : > { %5654 = vpow2.f32 %v3063_v21  ;;  %v3039_v25 = vsub.f32 %v6725_v49, %v3014_v50  ;;  %v4636_v21 = vld [vmem:[%s7341_s9 + $0x90] sm:$0xff]  ;;  %v4637_v50 = vld [vmem:[%s7341_s9 + $0x98] sm:$0xff] }
 0xf98   : > { %v6778_v22 = vpop.eup %5648 }
 0xf99   : > { %v3061_v32 = vmul.f32 1.442695, %v3039_v25  ;;  %3085 = vadd.xlane.f32.xlu1 %v6778_v22  ;;  %v4634_v25 = vld [vmem:[%s7341_s9 + $0x80] sm:$0xff] }
 0xf9a   : > { %v3020_v13 = vpop.xlane.xlu1 %3019 }
 0xf9b   : > { %5656 = vpow2.f32 %v3061_v32  ;;  %v3042_v48 = vsub.f32 %v6728_v55, %v3020_v13  ;;  %v4635_v32 = vld [vmem:[%s7341_s9 + $0x88] sm:$0xff] }
 0xf9c   : > { %v6782_v26 = vpop.eup %5650 }
 0xf9d   : > { %v3067_v54 = vmul.f32 1.442695, %v3042_v48  ;;  %3091 = vadd.xlane.f32.xlu1 %v6782_v26 }
 0xf9e   : > { %v3018_v17 = vpop.xlane.xlu1 %3017 }
 0xf9f   : > { %5658 = vpow2.f32 %v3067_v54  ;;  %v3041_v19 = vsub.f32 %v6734_v57, %v3018_v17 }
 0xfa0   : > { %v6786_v37 = vpop.eup %5652 }
 0xfa1   : > { %v3065_v43 = vmul.f32 1.442695, %v3041_v19  ;;  %3089 = vadd.xlane.f32.xlu1 %v6786_v37 }
 0xfa2   : > { %v3024_v20 = vpop.xlane.xlu1 %3023 }
 0xfa3   : > { %5660 = vpow2.f32 %v3065_v43  ;;  %v3044_v58 = vsub.f32 %v6742_v42, %v3024_v20 }
 0xfa4   : > { %v6790_v59 = vpop.eup %5654 }
 0xfa5   : > { %v3071_v11 = vmul.f32 1.442695, %v3044_v58  ;;  %3095 = vadd.xlane.f32.xlu1 %v6790_v59 }
 0xfa6   : > { %v3022_v7 = vpop.xlane.xlu1 %3021 }
 0xfa7   : > { %5662 = vpow2.f32 %v3071_v11  ;;  %v3043_v56 = vsub.f32 %v6748_v60, %v3022_v7 }
 0xfa8   : > { %v6794_v39 = vpop.eup %5656 }
 0xfa9   : > { %v3069_v49 = vmul.f32 1.442695, %v3043_v56  ;;  %3093 = vadd.xlane.f32.xlu1 %v6794_v39 }
 0xfaa   : > { %v3028_v55 = vpop.xlane.xlu1 %3027 }
 0xfab   : > { %5664 = vpow2.f32 %v3069_v49  ;;  %v3046_v38 = vsub.f32 %v6756_v18, %v3028_v55 }
 0xfac   : > { %v6798_v57 = vpop.eup %5658 }
 0xfad   : > { %v3075_v3 = vmul.f32 1.442695, %v3046_v38  ;;  %3099 = vadd.xlane.f32.xlu1 %v6798_v57 }
 0xfae   : > { %v3026_v42 = vpop.xlane.xlu1 %3025 }
 0xfaf   : > { %5666 = vpow2.f32 %v3075_v3  ;;  %v3045_v33 = vsub.f32 %v6759_v41, %v3026_v42 }
 0xfb0   : > { %v6802_v1 = vpop.eup %5660 }
 0xfb1   : > { %v3073_v60 = vmul.f32 1.442695, %v3045_v33  ;;  %3097 = vadd.xlane.f32.xlu1 %v6802_v1 }
 0xfb3   : > { %5668 = vpow2.f32 %v3073_v60 }
 0xfb4   : > { %v6805_v10 = vpop.eup %5662  ;;  %v3030_v4 = vpop.xlane.xlu1 %3029 }
 0xfb5   : > { %v3047_v18 = vsub.f32 %v6764_v35, %v3030_v4  ;;  %3103 = vadd.xlane.f32.xlu0 %v6805_v10 }
 0xfb7   : > { %v3077_v53 = vmul.f32 1.442695, %v3047_v18 }
 0xfb8   : > { %v6809_v45 = vpop.eup %5664  ;;  %v3032_v6 = vpop.xlane.xlu1 %3031 }
 0xfb9   : > { %5670 = vpow2.f32 %v3077_v53  ;;  %v3048_v41 = vsub.f32 %v6762_v14, %v3032_v6  ;;  %3101 = vadd.xlane.f32.xlu1 %v6809_v45  ;;  %v4594_v14 = vld [vmem:[%s7339_s7 + $0x80] sm:$0xff] }
 0xfbb   : > { %v3079_v46 = vmul.f32 1.442695, %v3048_v41 }
 0xfbc   : > { %v6813_v8 = vpop.eup %5666 }
 0xfbd   : > { %5672 = vpow2.f32 %v3079_v46  ;;  %3107 = vadd.xlane.f32.xlu0 %v6813_v8 }
 0xfc0   : > { %v6816_v40 = vpop.eup %5668 }
 0xfc1   : > { %3105 = vadd.xlane.f32.xlu1 %v6816_v40 }
 0xfc6   : > { %v6819_v35 = vpop.eup %5670 }
 0xfc7   : > { %3109 = vadd.xlane.f32.xlu1 %v6819_v35 }
 0xfca   : > { %v6822_v47 = vpop.eup %5672 }
 0xfcb   : > { %3111 = vadd.xlane.f32.xlu0 %v6822_v47 }
 0xfd8   : > { %2641 = vperm.xlu1 %5469, %v4594_v14  }
 0xfdc   : > { %2651 = vperm.xlu1 %5469, %v4596_v29  }
 0xfe0   : > { %2656 = vperm.xlu1 %5469, %v4597_v16  }
 0xfe1   : > { %2646 = vperm.xlu0 %5468, %v4595_v23  }
 0xfe4   : > { %2666 = vperm.xlu1 %5469, %v4599_v51  }
 0xfe5   : > { %2661 = vperm.xlu0 %5468, %v4598_v44  }
 0xfe8   : > { %2676 = vperm.xlu1 %5469, %v4601_v30  }
 0xfe9   : > { %2671 = vperm.xlu0 %5468, %v4600_v28  }
 0xfec   : > { %3323 = vperm.xlu1 %5469, %v4640_v27  }
 0xfed   : > { %3328 = vperm.xlu0 %5468, %v4641_v9  }
 0xff0   : > { %3313 = vperm.xlu1 %5469, %v4638_v24  }
 0xff1   : > { %3318 = vperm.xlu0 %5468, %v4639_v63   ;;  %v6906_v63 = vpop.f32.mrf.mxu1 }
 0xff4   : > { %3303 = vperm.xlu1 %5469, %v4636_v21  }
 0xff5   : > { %3308 = vperm.xlu0 %5468, %v4637_v50  }
 0xff8   : > { %3293 = vperm.xlu1 %5469, %v4634_v25  }
 0xff9   : > { %3298 = vperm.xlu0 %5468, %v4635_v32  }
0x1016   : > { %v3084_v13 = vpop.xlane.xlu1 %3083 }
0x101a   : > { %v3082_v48 = vpop.xlane.xlu1 %3081 }
0x101b   : > { %5674 = vrcp.f32 %v3082_v48 }
0x101c   : > { %5676 = vrcp.f32 %v3084_v13  ;;  %v2745_v13 = vpop.f32.mrf.mxu1 }
0x101e   : > { %v3088_v54 = vpop.xlane.xlu1 %3087 }
0x1022   : > { %v3086_v17 = vpop.xlane.xlu1 %3085 }
0x1023   : > { %5678 = vrcp.f32 %v3086_v17  ;;  %v6910_v17 = vpop.f32.mrf.mxu1 }
0x1024   : > { %5680 = vrcp.f32 %v3088_v54 }
0x1026   : > { %v3092_v19 = vpop.xlane.xlu1 %3091 }
0x1028   : > { %v5675_v11 = vpop.eup %5674 }
0x1029   : > { %v5677_v56 = vpop.eup %5676  ;;  %v6874_v55 = vmul.f32 %v5675_v11, %v6771_v34 }
0x102a   : > { %v3090_v43 = vpop.xlane.xlu1 %3089  ;;  %v6877_v3 = vmul.f32 %v5677_v56, %v6768_v61 }
0x102b   : > { %5682 = vrcp.f32 %v3090_v43 }
0x102c   : > { %5684 = vrcp.f32 %v3092_v19  ;;  %v3145_v60 = vadd.f32 %v6877_v3, %v6874_v55 }
0x102e   : > { %v3096_v20 = vpop.xlane.xlu1 %3095 }
0x1030   : > { %v5679_v49 = vpop.eup %5678 }
0x1031   : > { %v6880_v42 = vmul.f32 %v5679_v49, %v6778_v22  ;;  %v5681_v33 = vpop.eup %5680 }
0x1032   : > { %v3094_v58 = vpop.xlane.xlu1 %3093  ;;  %v6886_v53 = vmul.f32 %v5681_v33, %v6774_v52 }
0x1033   : > { %5686 = vrcp.f32 %v3094_v58  ;;  %v3146_v18 = vadd.f32 %v3145_v60, %v6880_v42 }
0x1034   : > { %5688 = vrcp.f32 %v3096_v20 }
0x1035   : > { %v3147_v22 = vadd.f32 %v3146_v18, %v6886_v53 }
0x1036   : > { %v3100_v7 = vpop.xlane.xlu1 %3099 }
0x1038   : > { %v5683_v4 = vpop.eup %5682 }
0x1039   : > { %v6889_v34 = vmul.f32 %v5683_v4, %v6786_v37  ;;  %v5685_v6 = vpop.eup %5684 }
0x103a   : > { %v3098_v38 = vpop.xlane.xlu1 %3097  ;;  %v6894_v29 = vmul.f32 %v5685_v6, %v6782_v26 }
0x103b   : > { %5690 = vrcp.f32 %v3098_v38  ;;  %v3148_v46 = vadd.f32 %v3147_v22, %v6889_v34 }
0x103c   : > { %5692 = vrcp.f32 %v3100_v7  ;;  %v2748_v7 = vpop.f32.mrf.mxu1 }
0x103d   : > { %v3149_v37 = vadd.f32 %v3148_v46, %v6894_v29 }
0x103e   : > { %v3104_v14 = vpop.xlane.xlu0 %3103 }
0x1040   : > { %v5687_v41 = vpop.eup %5686 }
0x1041   : > { %v6897_v16 = vmul.f32 %v5687_v41, %v6794_v39  ;;  %v5689_v52 = vpop.eup %5688 }
0x1042   : > { %v3102_v61 = vpop.xlane.xlu1 %3101  ;;  %v6902_v28 = vmul.f32 %v5689_v52, %v6790_v59 }
0x1043   : > { %5694 = vrcp.f32 %v3102_v61  ;;  %v3150_v44 = vadd.f32 %v3149_v37, %v6897_v16 }
0x1044   : > { %5696 = vrcp.f32 %v3104_v14 }
0x1045   : > { %v3151_v9 = vadd.f32 %v3150_v44, %v6902_v28 }
0x1046   : > { %v3108_v30 = vpop.xlane.xlu0 %3107 }
0x1048   : > { %v5691_v23 = vpop.eup %5690 }
0x1049   : > { %v3137_v27 = vmul.f32 %v5691_v23, %v6802_v1  ;;  %v5693_v26 = vpop.eup %5692 }
0x104a   : > { %v3106_v51 = vpop.xlane.xlu1 %3105  ;;  %v3138_v50 = vmul.f32 %v5693_v26, %v6798_v57 }
0x104b   : > { %5698 = vrcp.f32 %v3106_v51  ;;  %v3152_v21 = vadd.f32 %v3151_v9, %v3137_v27 }
0x104c   : > { %5700 = vrcp.f32 %v3108_v30 }
0x104d   : > { %v3153_v59 = vadd.f32 %v3152_v21, %v3138_v50 }
0x1050   : > { %v5695_v39 = vpop.eup %5694  ;;  %v3110_v24 = vpop.xlane.xlu1 %3109 }
0x1051   : > { %5702 = vrcp.f32 %v3110_v24  ;;  %v3139_v25 = vmul.f32 %v5695_v39, %v6809_v45  ;;  %v5697_v48 = vpop.eup %5696 }
0x1052   : > { %v3140_v19 = vmul.f32 %v5697_v48, %v6805_v10 }
0x1053   : > { %v3154_v1 = vadd.f32 %v3153_v59, %v3139_v25 }
0x1054   : > { %v3112_v32 = vpop.xlane.xlu0 %3111  ;;  %v2642_v20 = vpop.permute.xlu1 %2641 }
0x1055   : > { %5704 = vrcp.f32 %v3112_v32  ;;  %v3155_v58 = vadd.f32 %v3154_v1, %v3140_v19  ;;  %v2746_v56 = vadd.f32 %v2745_v13, %v2642_v20  ;;  %v5252_v1 = vpop.f32.mrf.mxu1 }
0x1058   : > { %v5699_v54 = vpop.eup %5698 }
0x1059   : > { %v3141_v43 = vmul.f32 %v5699_v54, %v6816_v40  ;;  %v5701_v11 = vpop.eup %5700  ;;  %v2652_v54 = vpop.permute.xlu1 %2651 }
0x105a   : > { %v3142_v60 = vmul.f32 %v5701_v11, %v6813_v8 }
0x105b   : > { %v3156_v49 = vadd.f32 %v3155_v58, %v3141_v43 }
0x105c   : > { %v2647_v57 = vpop.permute.xlu0 %2646 }
0x105d   : > { %v2749_v45 = vadd.f32 %v2748_v7, %v2647_v57  ;;  %v3157_v18 = vadd.f32 %v3156_v49, %v3142_v60 }
0x105e   : > { %v5703_v38 = vpop.eup %5702 }
0x105f   : > { %v3184_v33 = vpack.c.bf16 %v2749_v45, %v2746_v56  ;;  %v3143_v4 = vmul.f32 %v5703_v38, %v6819_v35  ;;  %v2754_v38 = vadd.f32 %v6906_v63, %v2652_v54 }
0x1061   : > { %5298 = vmatprep.mubr.bf16.mxu1 %v3184_v33  ;;  %v3158_v40 = vadd.f32 %v3157_v18, %v3143_v4 }
0x1062   : > { %v5705_v61 = vpop.eup %5704 }
0x1063   : > { %v3144_v10 = vmul.f32 %v5705_v61, %v6822_v47 }
0x1065   : > { %v3159_v6 = vadd.f32 %v3158_v40, %v3144_v10 }
0x1067   : > { %v3160_v22 = vrot.slane %v3159_v6, 4 }
0x1069   : > { %v3161_v41 = vadd.f32 %v3160_v22, %v3159_v6 }
0x106b   : > { %v3162_v46 = vrot.slane %v3161_v41, 2 }
0x106d   : > { %v3163_v14 = vadd.f32 %v3162_v46, %v3161_v41 }
0x106f   : > { %v3164_v52 = vrot.slane %v3163_v14, 1 }
0x1071   : > { %v3165_v37 = vadd.f32 %v3164_v52, %v3163_v14 }
0x1073   : > { %v3166_v23 = vadd.f32 1e-09, %v3165_v37 }
0x1075   : > { %5706 = vrcp.f32 %v3166_v23 }
0x1082   : > { %v5707_v51 = vpop.eup %5706 }
0x1083   : > { %v3182_v44 = vmul.f32 %v5707_v51, %v3143_v4  ;;  %v3183_v8 = vmul.f32 %v5707_v51, %v3144_v10  ;;  %v3180_v30 = vmul.f32 %v5707_v51, %v3141_v43  ;;  %v3181_v35 = vmul.f32 %v5707_v51, %v3142_v60 }
0x1084   : > { %v3178_v39 = vmul.f32 %v5707_v51, %v3139_v25  ;;  %v3179_v47 = vmul.f32 %v5707_v51, %v3140_v19  ;;  %v3176_v21 = vmul.f32 %v5707_v51, %v3137_v27  ;;  %v3177_v32 = vmul.f32 %v5707_v51, %v3138_v50  ;;  %v2761_v27 = vpop.f32.mrf.mxu1 }
0x1085   : > { %v3195_v26 = vpack.c.bf16 %v3183_v8, %v3182_v44  ;;  %v3194_v9 = vpack.c.bf16 %v3181_v35, %v3180_v30  ;;  %v3174_v59 = vmul.f32 %v5707_v51, %v6897_v16  ;;  %v3175_v48 = vmul.f32 %v5707_v51, %v6902_v28  ;;  %v2657_v16 = vpop.permute.xlu1 %2656 }
0x1086   : > { %v3193_v24 = vpack.c.bf16 %v3179_v47, %v3178_v39  ;;  %v3192_v13 = vpack.c.bf16 %v3177_v32, %v3176_v21  ;;  %v3172_v25 = vmul.f32 %v5707_v51, %v6889_v34  ;;  %v3173_v19 = vmul.f32 %v5707_v51, %v6894_v29  ;;  %v5253_v28 = vpop.f32.mrf.mxu1  ;;  %v2662_v29 = vpop.permute.xlu0 %2661  ;;  %v5500_v21 = vld [vmem:[%s7340_s8 + $0x50] sm:$0xff]   ;;  %v5501_v32 = vld [vmem:[%s7340_s8 + $0x58] sm:$0xff]  }
0x1087   : > { %5282 = vmatprep.subr.bf16.mxu1 %v3195_v26  ;;  %v3191_v43 = vpack.c.bf16 %v3175_v48, %v3174_v59  ;;  %v3170_v20 = vmul.f32 %v5707_v51, %v6880_v42  ;;  %v3171_v58 = vmul.f32 %v5707_v51, %v6886_v53  ;;  %v3168_v7 = vmul.f32 %v5707_v51, %v6874_v55 }
0x1088   : > { %5283 = vmatpush3.bf16.msra.mxu1 %v3195_v26  ;;  %v3190_v50 = vpack.c.bf16 %v3173_v19, %v3172_v25  ;;  %v3169_v57 = vmul.f32 %v5707_v51, %v6877_v3  ;;  %v2764_v34 = vpop.f32.mrf.mxu1  ;;  %v2757_v42 = vadd.f32 %v6910_v17, %v2657_v16  ;;  %v2762_v53 = vadd.f32 %v2761_v27, %v2662_v29  ;;  %v5498_v17 = vld [vmem:[%s7340_s8 + $0x40] sm:$0xff]  }
0x1089   : > { %5284 = vmatprep.subr.bf16.mxu1 %v3194_v9  ;;  %v3189_v11 = vpack.c.bf16 %v3171_v58, %v3170_v20  ;;  %v2667_v56 = vpop.permute.xlu1 %2666  ;;  %5314 = vmatprep.mubr.msk.bf16.mxu0 %vm447_vm0, %v5498_v17 }
0x108a   : > { %v3188_v45 = vpack.c.bf16 %v3169_v57, %v3168_v7  ;;  %v2765_v49 = vadd.f32 %v2764_v34, %v2667_v56  ;;  %v3185_v33 = vpack.c.bf16 %v2757_v42, %v2754_v38  ;;  %v2672_v55 = vpop.permute.xlu0 %2671 }
0x108b   : > { %v2770_v3 = vadd.f32 %v5252_v1, %v2672_v55 }
0x108c   : > { %5285 = vmatpush3.bf16.msra.mxu1 %v3194_v9  ;;  %v3186_v60 = vpack.c.bf16 %v2765_v49, %v2762_v53 }
0x108d   : > { %5286 = vmatprep.subr.bf16.mxu1 %v3193_v24  ;;  %v2677_v4 = vpop.permute.xlu1 %2676 }
0x108e   : > { %v2773_v18 = vadd.f32 %v5253_v28, %v2677_v4  ;;  %v3329_v48 = vpop.permute.xlu0 %3328 }
0x1090   : > { %5287 = vmatpush3.bf16.msra.mxu1 %v3193_v24  ;;  %v3187_v61 = vpack.c.bf16 %v2773_v18, %v2770_v3  ;;  %v5499_v24 = vld [vmem:[%s7340_s8 + $0x48] sm:$0xff]  }
0x1091   : > { %5288 = vmatprep.subr.bf16.mxu1 %v3192_v13  ;;  %v3324_v59 = vpop.permute.xlu1 %3323 }
0x1092   : > { %v3319_v54 = vpop.permute.xlu0 %3318 }
0x1094   : > { %5289 = vmatpush3.bf16.msra.mxu1 %v3192_v13  ;;  %v4658_v13 = vld [vmem:[%s7337_s5 + $0x30] sm:$0xff] }
0x1095   : > { %5290 = vmatprep.subr.bf16.mxu1 %v3191_v43  ;;  %v3314_v1 = vpop.permute.xlu1 %3313 }
0x1096   : > { %v3309_v25 = vpop.permute.xlu0 %3308 }
0x1098   : > { %5291 = vmatpush3.bf16.msra.mxu1 %v3191_v43 }
0x1099   : > { %5292 = vmatprep.subr.bf16.mxu1 %v3190_v50  ;;  %v3304_v43 = vpop.permute.xlu1 %3303 }
0x109a   : > { %v3299_v34 = vpop.permute.xlu0 %3298 }
0x109c   : > { %5293 = vmatpush3.bf16.msra.mxu1 %v3190_v50 }
0x109d   : > { %5294 = vmatprep.subr.bf16.mxu1 %v3189_v11  ;;  %v3294_v50 = vpop.permute.xlu1 %3293 }
0x10a0   : > { %5295 = vmatpush3.bf16.msra.mxu1 %v3189_v11 }
0x10a1   : > { %5296 = vmatprep.subr.bf16.mxu1 %v3188_v45 }
0x10a4   : > { %5297 = vmatpush3.bf16.msra.mxu1 %v3188_v45 }
0x10a7   : > { %5299 = vmatmul.mubr.bf16.vlgmr.msra.gmra.mxu1 %v3185_v33 }
0x10a8   : > { %5302 = vmatprep.mubr.bf16.mxu1 %v3186_v60 }
0x10af   : > { %5303 = vmatmul.mubr.bf16.gmra.mxu1 %v3187_v61 }
0x10b0   : > { %5338 = vmatprep.mubr.msk.f32.mxu1 %vm447_vm0, %v4658_v13 }
0x1167   : > { %v5300_v10 = vpop.f32.mrf.mxu1 }
0x1168   : > { %v3272_v35 = vsub.f32 %v6642_v15, %v5300_v10 }
0x1169   : > { %v3230_v40 = vpop.f32.mrf.mxu1 }
0x116a   : > { %v3270_v39 = vsub.f32 %v6647_v0, %v3230_v40 }
0x116b   : > { %v5301_v63 = vpop.f32.mrf.mxu1 }
0x116c   : > { %v3273_v8 = vsub.f32 %v6652_v62, %v5301_v63 }
0x116d   : > { %v3233_v6 = vpop.f32.mrf.mxu1 }
0x116e   : > { %v3279_v26 = vpack.c.bf16 %v3273_v8, %v3272_v35  ;;  %v3271_v9 = vsub.f32 %v6657_v5, %v3233_v6 }
0x116f   : > { %v5304_v22 = vpop.f32.mrf.mxu1 }
0x1170   : > { %v3276_v14 = vsub.f32 %v6662_v2, %v5304_v22  ;;  %v3278_v47 = vpack.c.bf16 %v3271_v9, %v3270_v39  ;;  %v4659_v22 = vld [vmem:[%s7337_s5 + $0x38] sm:$0xff] }
0x1171   : > { %v3246_v41 = vpop.f32.mrf.mxu1 }
0x1172   : > { %v3274_v23 = vsub.f32 %v6667_v31, %v3246_v41 }
0x1173   : > { %v5305_v46 = vpop.f32.mrf.mxu1 }
0x1174   : > { %v3277_v52 = vsub.f32 %v6672_v36, %v5305_v46 }
0x1175   : > { %v3249_v37 = vpop.f32.mrf.mxu1 }
0x1176   : > { %v3281_v51 = vpack.c.bf16 %v3277_v52, %v3276_v14  ;;  %v3275_v44 = vsub.f32 %v6677_v12, %v3249_v37 }
0x1178   : > { %v3280_v30 = vpack.c.bf16 %v3275_v44, %v3274_v23  ;;  %5306 = vmatprep.subr.bf16.mxu0 %v3281_v51 }
0x1179   : > { %5307 = vmatpush3.bf16.msra.mxu0 %v3281_v51 }
0x117a   : > { %5308 = vmatprep.subr.bf16.mxu0 %v3280_v30 }
0x117d   : > { %5309 = vmatpush3.bf16.msra.mxu0 %v3280_v30 }
0x117e   : > { %5310 = vmatprep.subr.bf16.mxu0 %v3279_v26 }
0x1181   : > { %5311 = vmatpush3.bf16.msra.mxu0 %v3279_v26 }
0x1182   : > { %5312 = vmatprep.subr.bf16.mxu0 %v3278_v47 }
0x1185   : > { %5313 = vmatpush3.bf16.msra.mxu0 %v3278_v47 }
0x1188   : > { %5315 = vmatmul.mubr.msk.bf16.vlgmr.msra.gmra.mxu0 %vm447_vm0, %v5499_v24 }
0x1189   : > { %5318 = vmatprep.mubr.msk.bf16.mxu0 %vm447_vm0, %v5500_v21 }
0x1190   : > { %5319 = vmatmul.mubr.msk.bf16.gmra.mxu0 %vm447_vm0, %v5501_v32 }
0x1248   : > { %v5316_v19 = vpop.f32.mrf.mxu0 }
0x1249   : > { %v3406_v27 = vadd.f32 %v5316_v19, %v3304_v43 }
0x124a   : > { %v3397_v20 = vpop.f32.mrf.mxu0 }
0x124b   : > { %v3430_v58 = vmax.f32 %v3406_v27, 0.0  ;;  %v3398_v16 = vadd.f32 %v3397_v20, %v3294_v50  ;;  %v5502_v50 = vld [vmem:[%s7338_s6 + $0x60] sm:$0xff]  }
0x124c   : > { %v5317_v28 = vpop.f32.mrf.mxu0  ;;  %5349 = vmatprep.mubr.msk.bf16.mxu0 %vm447_vm0, %v5502_v50 }
0x124d   : > { %v6956_v11 = vadd.f32 %v3430_v58, %v6642_v15  ;;  %v3428_v7 = vmax.f32 %v3398_v16, 0.0  ;;  %v3409_v57 = vadd.f32 %v5317_v28, %v3309_v25  ;;  %v5503_v58 = vld [vmem:[%s7338_s6 + $0x68] sm:$0xff]   ;;  %v5504_v28 = vld [vmem:[%s7338_s6 + $0x70] sm:$0xff]  }
0x124e   : > { %v3400_v29 = vpop.f32.mrf.mxu0 }
0x124f   : > { %4652 = vst [vmem:[%s6328_s25 + $0x90] sm:$0xff] %v6956_v11  ;;  %v6961_v56 = vadd.f32 %v3428_v7, %v6647_v0  ;;  %v3431_v45 = vmax.f32 %v3409_v57, 0.0  ;;  %v3401_v42 = vadd.f32 %v3400_v29, %v3299_v34  ;;  %v5505_v57 = vld [vmem:[%s7338_s6 + $0x78] sm:$0xff]  }
0x1250   : > { %v5320_v53 = vpop.f32.mrf.mxu0 }
0x1251   : > { %4650 = vst [vmem:[%s6328_s25 + $0x80] sm:$0xff] %v6961_v56  ;;  %v6966_v49 = vadd.f32 %v3431_v45, %v6652_v62  ;;  %v3429_v15 = vmax.f32 %v3401_v42, 0.0  ;;  %v3422_v38 = vadd.f32 %v5320_v53, %v3324_v59 }
0x1252   : > { %v3413_v33 = vpop.f32.mrf.mxu0 }
0x1253   : > { %4653 = vst [vmem:[%s6328_s25 + $0x98] sm:$0xff] %v6966_v49  ;;  %v6971_v60 = vadd.f32 %v3429_v15, %v6657_v5  ;;  %v3434_v0 = vmax.f32 %v3422_v38, 0.0  ;;  %v3414_v55 = vadd.f32 %v3413_v33, %v3314_v1 }
0x1254   : > { %v5321_v4 = vpop.f32.mrf.mxu0 }
0x1255   : > { %4651 = vst [vmem:[%s6328_s25 + $0x88] sm:$0xff] %v6971_v60  ;;  %v6976_v3 = vadd.f32 %v3434_v0, %v6662_v2  ;;  %v3432_v62 = vmax.f32 %v3414_v55, 0.0  ;;  %v3425_v18 = vadd.f32 %v5321_v4, %v3329_v48 }
0x1256   : > { %v3416_v61 = vpop.f32.mrf.mxu0 }
0x1257   : > { %4656 = vst [vmem:[%s6328_s25 + $0xb0] sm:$0xff] %v6976_v3  ;;  %v6981_v17 = vadd.f32 %v3432_v62, %v6667_v31  ;;  %v3435_v5 = vmax.f32 %v3425_v18, 0.0  ;;  %v3417_v10 = vadd.f32 %v3416_v61, %v3319_v54 }
0x1259   : > { %4654 = vst [vmem:[%s6328_s25 + $0xa0] sm:$0xff] %v6981_v17  ;;  %v6986_v40 = vadd.f32 %v3435_v5, %v6672_v36  ;;  %v3433_v63 = vmax.f32 %v3417_v10, 0.0  ;;  %v3454_v36 = vpack.c.bf16 %v6966_v49, %v6956_v11 }
0x125b   : > { %4657 = vst [vmem:[%s6328_s25 + $0xb8] sm:$0xff] %v6986_v40  ;;  %v6991_v2 = vadd.f32 %v3433_v63, %v6677_v12  ;;  %5322 = vmatprep.subr.mxu1 %v6986_v40  ;;  %v3456_v6 = vpack.c.bf16 %v6986_v40, %v6976_v3  ;;  %v3453_v12 = vpack.c.bf16 %v6971_v60, %v6961_v56 }
0x125c   : > { %5323 = vmatpush3.msra.mxu1 %v6986_v40 }
0x125d   : > { %4655 = vst [vmem:[%s6328_s25 + $0xa8] sm:$0xff] %v6991_v2  ;;  %5324 = vmatprep.subr.mxu1 %v6976_v3  ;;  %5341 = vmatprep.subr.bf16.mxu0 %v3456_v6  ;;  %v3455_v31 = vpack.c.bf16 %v6991_v2, %v6981_v17 }
0x125e   : > { %5325 = vmatpush3.msra.mxu1 %v6976_v3  ;;  %5342 = vmatpush3.bf16.msra.mxu0 %v3456_v6 }
0x125f   : > { %5326 = vmatprep.subr.mxu1 %v6991_v2  ;;  %5343 = vmatprep.subr.bf16.mxu0 %v3455_v31 }
0x1260   : > { %5327 = vmatpush3.msra.mxu1 %v6991_v2 }
0x1261   : > { %5328 = vmatprep.subr.mxu1 %v6981_v17 }
0x1262   : > { %5329 = vmatpush3.msra.mxu1 %v6981_v17  ;;  %5344 = vmatpush3.bf16.msra.mxu0 %v3455_v31 }
0x1263   : > { %5330 = vmatprep.subr.mxu1 %v6966_v49  ;;  %5345 = vmatprep.subr.bf16.mxu0 %v3454_v36 }
0x1264   : > { %5331 = vmatpush3.msra.mxu1 %v6966_v49 }
0x1265   : > { %5332 = vmatprep.subr.mxu1 %v6956_v11 }
0x1266   : > { %5333 = vmatpush3.msra.mxu1 %v6956_v11  ;;  %5346 = vmatpush3.bf16.msra.mxu0 %v3454_v36 }
0x1267   : > { %5334 = vmatprep.subr.mxu1 %v6971_v60  ;;  %5347 = vmatprep.subr.bf16.mxu0 %v3453_v12 }
0x1268   : > { %5335 = vmatpush3.msra.mxu1 %v6971_v60 }
0x1269   : > { %5336 = vmatprep.subr.mxu1 %v6961_v56 }
0x126a   : > { %5337 = vmatpush3.msra.mxu1 %v6961_v56  ;;  %5348 = vmatpush3.bf16.msra.mxu0 %v3453_v12 }
0x126b   : > { %5339 = vmatmul.mubr.msk.f32.vlgmr.msra.gmra.mxu1 %vm447_vm0, %v4659_v22 }
0x126d   : > { %5350 = vmatmul.mubr.msk.bf16.vlgmr.msra.gmra.mxu0 %vm447_vm0, %v5503_v58 }
0x126e   : > { %5353 = vmatprep.mubr.msk.bf16.mxu0 %vm447_vm0, %v5504_v28 }
0x1275   : > { %5354 = vmatmul.mubr.msk.bf16.gmra.mxu0 %vm447_vm0, %v5505_v57 }
0x132b   : > { %v5340_v41 = vpop.f32.mrf.mxu1 }
0x132c   : > { %5357 = vmatprep.subr.mxu1 %v5340_v41 }
0x132d   : > { %v3532_v46 = vpop.f32.mrf.mxu1  ;;  %5358 = vmatpush3.msra.mxu1 %v5340_v41 }
0x132e   : > { %3696 = vxpose.xlu0.b32.start [1/2] (short) %v3532_v46, 128  ;;  %5359 = vmatprep.subr.mxu1 %v3532_v46 }
0x132f   : > { %5360 = vmatpush3.msra.mxu1 %v3532_v46 }
0x1332   : > { %3697 = vxpose.xlu0.b32.end [2/2] (short) %v5340_v41, 128 }
0x13aa   : > { %v3712_v14 = vpop.trf.xlu0 }
0x13ab   : > { %5361 = vmatprep.mubr.msk.f32.mxu1 %vm970_vm1, %v3712_v14 }
0x13ae   : > { %v3713_v52 = vpop.trf.xlu0 }
0x13af   : > { %5362 = vmatmul.mubr.msk.f32.vlgmr.msra.gmra.mxu1 %vm970_vm1, %v3713_v52 }
0x13b2   : > { %v3714_v37 = vpop.trf.xlu0 }
0x13b3   : > { %5364 = vmatprep.mubr.msk.f32.mxu1 %vm970_vm1, %v3714_v37 }
0x13b6   : > { %v3715_v23 = vpop.trf.xlu0 }
0x13b7   : > { %5365 = vmatmul.mubr.msk.f32.gmra.mxu1 %vm970_vm1, %v3715_v23 }
0x13ba   : > { %v3716_v51 = vpop.trf.xlu0 }
0x13bb   : > { %5367 = vmatprep.mubr.msk.f32.mxu1 %vm970_vm1, %v3716_v51 }
0x13be   : > { %v3717_v44 = vpop.trf.xlu0 }
0x13bf   : > { %5368 = vmatmul.mubr.msk.f32.gmra.mxu1 %vm970_vm1, %v3717_v44 }
0x13c2   : > { %v3718_v8 = vpop.trf.xlu0 }
0x13c3   : > { %5370 = vmatprep.mubr.msk.f32.mxu1 %vm970_vm1, %v3718_v8 }
0x13c6   : > { %v3719_v30 = vpop.trf.xlu0 }
0x13c7   : > { %5371 = vmatmul.mubr.msk.f32.gmra.mxu1 %vm970_vm1, %v3719_v30 }
0x13ca   : > { %v3720_v35 = vpop.trf.xlu0 }
0x13cb   : > { %5373 = vmatprep.mubr.msk.f32.mxu1 %vm970_vm1, %v3720_v35 }
0x13ce   : > { %v3721_v26 = vpop.trf.xlu0 }
0x13cf   : > { %5374 = vmatmul.mubr.msk.f32.gmra.mxu1 %vm970_vm1, %v3721_v26 }
0x13d2   : > { %v3722_v9 = vpop.trf.xlu0 }
0x13d3   : > { %5376 = vmatprep.mubr.msk.f32.mxu1 %vm970_vm1, %v3722_v9 }
0x13d6   : > { %v3723_v39 = vpop.trf.xlu0 }
0x13d7   : > { %5377 = vmatmul.mubr.msk.f32.gmra.mxu1 %vm970_vm1, %v3723_v39 }
0x13da   : > { %v3724_v47 = vpop.trf.xlu0 }
0x13db   : > { %5379 = vmatprep.mubr.msk.f32.mxu1 %vm970_vm1, %v3724_v47 }
0x13de   : > { %v3725_v24 = vpop.trf.xlu0 }
0x13df   : > { %5380 = vmatmul.mubr.msk.f32.gmra.mxu1 %vm970_vm1, %v3725_v24 }
0x13e2   : > { %v3726_v21 = vpop.trf.xlu0 }
0x13e3   : > { %5382 = vmatprep.mubr.msk.f32.mxu1 %vm970_vm1, %v3726_v21 }
0x13e6   : > { %v3727_v32 = vpop.trf.xlu0 }
0x13e7   : > { %5383 = vmatmul.mubr.msk.f32.gmra.mxu1 %vm970_vm1, %v3727_v32 }
0x146f   : > { %v5363_v13 = vpop.f32.mrf.mxu1 }
0x1470   : > { %3923 = vmax.xlane.f32.xlu0 %v5363_v13 }
0x1471   : > { %v3842_v59 = vpop.f32.mrf.mxu1 }
0x1472   : > { %3921 = vmax.xlane.f32.xlu1 %v3842_v59 }
0x1477   : > { %v5366_v48 = vpop.f32.mrf.mxu1 }
0x1478   : > { %3927 = vmax.xlane.f32.xlu1 %v5366_v48 }
0x1479   : > { %v3852_v1 = vpop.f32.mrf.mxu1 }
0x147c   : > { %3925 = vmax.xlane.f32.xlu1 %v3852_v1 }
0x147f   : > { %v5369_v54 = vpop.f32.mrf.mxu1 }
0x1480   : > { %3931 = vmax.xlane.f32.xlu1 %v5369_v54 }
0x1481   : > { %v3862_v43 = vpop.f32.mrf.mxu1 }
0x1484   : > { %3929 = vmax.xlane.f32.xlu1 %v3862_v43 }
0x1487   : > { %v5372_v25 = vpop.f32.mrf.mxu1 }
0x1488   : > { %3935 = vmax.xlane.f32.xlu1 %v5372_v25 }
0x1489   : > { %v7039_v19 = vpop.f32.mrf.mxu1 }
0x148c   : > { %3933 = vmax.xlane.f32.xlu1 %v7039_v19 }
0x148f   : > { %v7042_v27 = vpop.f32.mrf.mxu1 }
0x1490   : > { %3939 = vmax.xlane.f32.xlu1 %v7042_v27 }
0x1491   : > { %v7048_v20 = vpop.f32.mrf.mxu1 }
0x1494   : > { %3937 = vmax.xlane.f32.xlu1 %v7048_v20 }
0x1497   : > { %v7056_v16 = vpop.f32.mrf.mxu1 }
0x1498   : > { %3943 = vmax.xlane.f32.xlu1 %v7056_v16 }
0x1499   : > { %v7062_v7 = vpop.f32.mrf.mxu1 }
0x149c   : > { %3941 = vmax.xlane.f32.xlu1 %v7062_v7 }
0x149f   : > { %v7070_v34 = vpop.f32.mrf.mxu1 }
0x14a0   : > { %3947 = vmax.xlane.f32.xlu1 %v7070_v34 }
0x14a1   : > { %v7073_v29 = vpop.f32.mrf.mxu1 }
0x14a4   : > { %3945 = vmax.xlane.f32.xlu1 %v7073_v29 }
0x14a7   : > { %v7076_v45 = vpop.f32.mrf.mxu1 }
0x14a9   : > { %v7078_v42 = vpop.f32.mrf.mxu1 }
0x14aa   : > { %3949 = vmax.xlane.f32.xlu1 %v7078_v42 }
0x14ae   : > { %3951 = vmax.xlane.f32.xlu1 %v7076_v45 }
0x14f9   : > { %v3924_v53 = vpop.xlane.xlu0 %3923 }
0x14fa   : > { %v3954_v15 = vsub.f32 %v5363_v13, %v3924_v53 }
0x14fb   : > { %v3922_v38 = vpop.xlane.xlu1 %3921 }
0x14fc   : > { %v3971_v33 = vmul.f32 1.442695, %v3954_v15  ;;  %v3953_v0 = vsub.f32 %v3842_v59, %v3922_v38 }
0x14fe   : > { %5708 = vpow2.f32 %v3971_v33  ;;  %v3969_v55 = vmul.f32 1.442695, %v3953_v0 }
0x1500   : > { %5710 = vpow2.f32 %v3969_v55 }
0x1501   : > { %v3928_v4 = vpop.xlane.xlu1 %3927 }
0x1502   : > { %v3956_v62 = vsub.f32 %v5366_v48, %v3928_v4 }
0x1504   : > { %v3975_v18 = vmul.f32 1.442695, %v3956_v62 }
0x1505   : > { %v3926_v61 = vpop.xlane.xlu1 %3925 }
0x1506   : > { %5712 = vpow2.f32 %v3975_v18  ;;  %v3955_v5 = vsub.f32 %v3852_v1, %v3926_v61  ;;  %v4672_v61 = vld [vmem:[%s7339_s7 + $0xd0] sm:$0xff] }
0x1508   : > { %v3973_v10 = vmul.f32 1.442695, %v3955_v5  ;;  %v4673_v5 = vld [vmem:[%s7339_s7 + $0xd8] sm:$0xff] }
0x1509   : > { %v3932_v63 = vpop.xlane.xlu1 %3931 }
0x150a   : > { %5714 = vpow2.f32 %v3973_v10  ;;  %v3958_v6 = vsub.f32 %v5369_v54, %v3932_v63  ;;  %v4671_v10 = vld [vmem:[%s7339_s7 + $0xc8] sm:$0xff] }
0x150b   : > { %v7082_v31 = vpop.eup %5708  ;;  %v4675_v63 = vld [vmem:[%s7339_s7 + $0xe8] sm:$0xff] }
0x150c   : > { %v3979_v36 = vmul.f32 1.442695, %v3958_v6  ;;  %4003 = vadd.xlane.f32.xlu1 %v7082_v31  ;;  %v4674_v6 = vld [vmem:[%s7339_s7 + $0xe0] sm:$0xff] }
0x150d   : > { %v3930_v12 = vpop.xlane.xlu1 %3929  ;;  %v7085_v41 = vpop.eup %5710 }
0x150e   : > { %5716 = vpow2.f32 %v3979_v36  ;;  %v3957_v22 = vsub.f32 %v3862_v43, %v3930_v12  ;;  %v4677_v36 = vld [vmem:[%s7339_s7 + $0xf8] sm:$0xff]  ;;  %v4676_v12 = vld [vmem:[%s7339_s7 + $0xf0] sm:$0xff] }
0x1510   : > { %v3977_v46 = vmul.f32 1.442695, %v3957_v22  ;;  %4001 = vadd.xlane.f32.xlu1 %v7085_v41  ;;  %v4711_v22 = vld [vmem:[%s7341_s9 + $0xc8] sm:$0xff] }
0x1511   : > { %v3936_v14 = vpop.xlane.xlu1 %3935 }
0x1512   : > { %5718 = vpow2.f32 %v3977_v46  ;;  %v3960_v52 = vsub.f32 %v5372_v25, %v3936_v14  ;;  %v4710_v46 = vld [vmem:[%s7341_s9 + $0xc0] sm:$0xff]  ;;  %v4713_v14 = vld [vmem:[%s7341_s9 + $0xd8] sm:$0xff] }
0x1513   : > { %v7088_v37 = vpop.eup %5712 }
0x1514   : > { %v3983_v23 = vmul.f32 1.442695, %v3960_v52  ;;  %4007 = vadd.xlane.f32.xlu1 %v7088_v37  ;;  %v4712_v52 = vld [vmem:[%s7341_s9 + $0xd0] sm:$0xff] }
0x1515   : > { %v3934_v51 = vpop.xlane.xlu1 %3933 }
0x1516   : > { %5720 = vpow2.f32 %v3983_v23  ;;  %v3959_v44 = vsub.f32 %v7039_v19, %v3934_v51  ;;  %v4715_v23 = vld [vmem:[%s7341_s9 + $0xe8] sm:$0xff]  ;;  %v4714_v51 = vld [vmem:[%s7341_s9 + $0xe0] sm:$0xff] }
0x1517   : > { %v7092_v8 = vpop.eup %5714 }
0x1518   : > { %v3981_v30 = vmul.f32 1.442695, %v3959_v44  ;;  %4005 = vadd.xlane.f32.xlu1 %v7092_v8  ;;  %v4717_v44 = vld [vmem:[%s7341_s9 + $0xf8] sm:$0xff] }
0x1519   : > { %v3940_v35 = vpop.xlane.xlu1 %3939 }
0x151a   : > { %5722 = vpow2.f32 %v3981_v30  ;;  %v3962_v26 = vsub.f32 %v7042_v27, %v3940_v35  ;;  %v4716_v30 = vld [vmem:[%s7341_s9 + $0xf0] sm:$0xff] }
0x151b   : > { %v7096_v9 = vpop.eup %5716 }
0x151c   : > { %v3987_v39 = vmul.f32 1.442695, %v3962_v26  ;;  %4011 = vadd.xlane.f32.xlu1 %v7096_v9 }
0x151d   : > { %v3938_v47 = vpop.xlane.xlu1 %3937 }
0x151e   : > { %5724 = vpow2.f32 %v3987_v39  ;;  %v3961_v24 = vsub.f32 %v7048_v20, %v3938_v47 }
0x151f   : > { %v7100_v21 = vpop.eup %5718 }
0x1520   : > { %v3985_v32 = vmul.f32 1.442695, %v3961_v24  ;;  %4009 = vadd.xlane.f32.xlu1 %v7100_v21 }
0x1521   : > { %v3944_v13 = vpop.xlane.xlu1 %3943 }
0x1522   : > { %5726 = vpow2.f32 %v3985_v32  ;;  %v3964_v59 = vsub.f32 %v7056_v16, %v3944_v13 }
0x1523   : > { %v7104_v48 = vpop.eup %5720 }
0x1524   : > { %v3991_v1 = vmul.f32 1.442695, %v3964_v59  ;;  %4015 = vadd.xlane.f32.xlu1 %v7104_v48 }
0x1525   : > { %v3942_v54 = vpop.xlane.xlu1 %3941 }
0x1526   : > { %5728 = vpow2.f32 %v3991_v1  ;;  %v3963_v43 = vsub.f32 %v7062_v7, %v3942_v54 }
0x1527   : > { %v7108_v25 = vpop.eup %5722 }
0x1528   : > { %v3989_v19 = vmul.f32 1.442695, %v3963_v43  ;;  %4013 = vadd.xlane.f32.xlu1 %v7108_v25 }
0x1529   : > { %v3948_v27 = vpop.xlane.xlu1 %3947 }
0x152a   : > { %5730 = vpow2.f32 %v3989_v19  ;;  %v3966_v50 = vsub.f32 %v7070_v34, %v3948_v27 }
0x152b   : > { %v7112_v20 = vpop.eup %5724 }
0x152c   : > { %v3995_v58 = vmul.f32 1.442695, %v3966_v50  ;;  %4019 = vadd.xlane.f32.xlu1 %v7112_v20 }
0x152d   : > { %v3946_v16 = vpop.xlane.xlu1 %3945 }
0x152e   : > { %5732 = vpow2.f32 %v3995_v58  ;;  %v3965_v28 = vsub.f32 %v7073_v29, %v3946_v16 }
0x152f   : > { %v7116_v57 = vpop.eup %5726 }
0x1530   : > { %v3993_v7 = vmul.f32 1.442695, %v3965_v28  ;;  %4017 = vadd.xlane.f32.xlu1 %v7116_v57 }
0x1532   : > { %5734 = vpow2.f32 %v3993_v7 }
0x1533   : > { %v7119_v53 = vpop.eup %5728  ;;  %v3950_v15 = vpop.xlane.xlu1 %3949 }
0x1534   : > { %v3967_v34 = vsub.f32 %v7078_v42, %v3950_v15  ;;  %4023 = vadd.xlane.f32.xlu0 %v7119_v53 }
0x1536   : > { %v3997_v38 = vmul.f32 1.442695, %v3967_v34 }
0x1537   : > { %v7123_v33 = vpop.eup %5730  ;;  %v3952_v0 = vpop.xlane.xlu1 %3951 }
0x1538   : > { %5736 = vpow2.f32 %v3997_v38  ;;  %v3968_v29 = vsub.f32 %v7076_v45, %v3952_v0  ;;  %4021 = vadd.xlane.f32.xlu1 %v7123_v33  ;;  %v4670_v45 = vld [vmem:[%s7339_s7 + $0xc0] sm:$0xff] }
0x153a   : > { %v3999_v55 = vmul.f32 1.442695, %v3968_v29 }
0x153b   : > { %v7127_v4 = vpop.eup %5732 }
0x153c   : > { %5738 = vpow2.f32 %v3999_v55  ;;  %4027 = vadd.xlane.f32.xlu0 %v7127_v4 }
0x153f   : > { %v7130_v62 = vpop.eup %5734 }
0x1540   : > { %4025 = vadd.xlane.f32.xlu1 %v7130_v62 }
0x1545   : > { %v7133_v42 = vpop.eup %5736 }
0x1546   : > { %4029 = vadd.xlane.f32.xlu1 %v7133_v42 }
0x1549   : > { %v7136_v18 = vpop.eup %5738 }
0x154a   : > { %4031 = vadd.xlane.f32.xlu0 %v7136_v18 }
0x1557   : > { %3561 = vperm.xlu1 %5469, %v4670_v45  }
0x155b   : > { %3571 = vperm.xlu1 %5469, %v4672_v61  }
0x155f   : > { %3576 = vperm.xlu1 %5469, %v4673_v5  }
0x1560   : > { %3566 = vperm.xlu0 %5468, %v4671_v10  }
0x1563   : > { %3586 = vperm.xlu1 %5469, %v4675_v63  }
0x1564   : > { %3581 = vperm.xlu0 %5468, %v4674_v6  }
0x1567   : > { %3596 = vperm.xlu1 %5469, %v4677_v36  }
0x1568   : > { %3591 = vperm.xlu0 %5468, %v4676_v12  }
0x156b   : > { %4218 = vperm.xlu1 %5469, %v4711_v22  }
0x156c   : > { %4213 = vperm.xlu0 %5468, %v4710_v46  }
0x156f   : > { %4228 = vperm.xlu1 %5469, %v4713_v14  }
0x1570   : > { %4223 = vperm.xlu0 %5468, %v4712_v52   ;;  %v7220_v52 = vpop.f32.mrf.mxu0 }
0x1573   : > { %4238 = vperm.xlu1 %5469, %v4715_v23  }
0x1574   : > { %4233 = vperm.xlu0 %5468, %v4714_v51  }
0x1577   : > { %4248 = vperm.xlu1 %5469, %v4717_v44  }
0x1578   : > { %4243 = vperm.xlu0 %5468, %v4716_v30  }
0x1595   : > { %v4004_v35 = vpop.xlane.xlu1 %4003 }
0x1599   : > { %v4002_v26 = vpop.xlane.xlu1 %4001 }
0x159a   : > { %5740 = vrcp.f32 %v4002_v26 }
0x159b   : > { %5742 = vrcp.f32 %v4004_v35  ;;  %v3665_v35 = vpop.f32.mrf.mxu0 }
0x159d   : > { %v4008_v39 = vpop.xlane.xlu1 %4007 }
0x15a1   : > { %v4006_v47 = vpop.xlane.xlu1 %4005 }
0x15a2   : > { %5744 = vrcp.f32 %v4006_v47  ;;  %v7224_v47 = vpop.f32.mrf.mxu0 }
0x15a3   : > { %5746 = vrcp.f32 %v4008_v39 }
0x15a5   : > { %v4012_v24 = vpop.xlane.xlu1 %4011 }
0x15a7   : > { %v5741_v1 = vpop.eup %5740 }
0x15a8   : > { %v5743_v43 = vpop.eup %5742  ;;  %v7188_v27 = vmul.f32 %v5741_v1, %v7085_v41 }
0x15a9   : > { %v4010_v32 = vpop.xlane.xlu1 %4009  ;;  %v7191_v58 = vmul.f32 %v5743_v43, %v7082_v31 }
0x15aa   : > { %5748 = vrcp.f32 %v4010_v32 }
0x15ab   : > { %5750 = vrcp.f32 %v4012_v24  ;;  %v4065_v7 = vadd.f32 %v7191_v58, %v7188_v27 }
0x15ad   : > { %v4016_v13 = vpop.xlane.xlu1 %4015 }
0x15af   : > { %v5745_v19 = vpop.eup %5744 }
0x15b0   : > { %v7194_v16 = vmul.f32 %v5745_v19, %v7092_v8  ;;  %v5747_v28 = vpop.eup %5746 }
0x15b1   : > { %v4014_v59 = vpop.xlane.xlu1 %4013  ;;  %v7200_v38 = vmul.f32 %v5747_v28, %v7088_v37 }
0x15b2   : > { %5752 = vrcp.f32 %v4014_v59  ;;  %v4066_v34 = vadd.f32 %v4065_v7, %v7194_v16 }
0x15b3   : > { %5754 = vrcp.f32 %v4016_v13 }
0x15b4   : > { %v4067_v8 = vadd.f32 %v4066_v34, %v7200_v38 }
0x15b5   : > { %v4020_v54 = vpop.xlane.xlu1 %4019 }
0x15b7   : > { %v5749_v15 = vpop.eup %5748 }
0x15b8   : > { %v7203_v41 = vmul.f32 %v5749_v15, %v7100_v21  ;;  %v5751_v0 = vpop.eup %5750 }
0x15b9   : > { %v4018_v50 = vpop.xlane.xlu1 %4017  ;;  %v7208_v61 = vmul.f32 %v5751_v0, %v7096_v9 }
0x15ba   : > { %5756 = vrcp.f32 %v4018_v50  ;;  %v4068_v55 = vadd.f32 %v4067_v8, %v7203_v41 }
0x15bb   : > { %5758 = vrcp.f32 %v4020_v54  ;;  %v3668_v54 = vpop.f32.mrf.mxu0 }
0x15bc   : > { %v4069_v21 = vadd.f32 %v4068_v55, %v7208_v61 }
0x15bd   : > { %v4024_v45 = vpop.xlane.xlu0 %4023 }
0x15bf   : > { %v5753_v29 = vpop.eup %5752 }
0x15c0   : > { %v7211_v5 = vmul.f32 %v5753_v29, %v7108_v25  ;;  %v5755_v37 = vpop.eup %5754 }
0x15c1   : > { %v4022_v31 = vpop.xlane.xlu1 %4021  ;;  %v7216_v12 = vmul.f32 %v5755_v37, %v7104_v48 }
0x15c2   : > { %5760 = vrcp.f32 %v4022_v31  ;;  %v4070_v6 = vadd.f32 %v4069_v21, %v7211_v5 }
0x15c3   : > { %5762 = vrcp.f32 %v4024_v45 }
0x15c4   : > { %v4071_v46 = vadd.f32 %v4070_v6, %v7216_v12 }
0x15c5   : > { %v4028_v36 = vpop.xlane.xlu0 %4027 }
0x15c7   : > { %v5757_v10 = vpop.eup %5756 }
0x15c8   : > { %v4057_v22 = vmul.f32 %v5757_v10, %v7116_v57  ;;  %v5759_v9 = vpop.eup %5758 }
0x15c9   : > { %v4026_v63 = vpop.xlane.xlu1 %4025  ;;  %v4058_v51 = vmul.f32 %v5759_v9, %v7112_v20 }
0x15ca   : > { %5764 = vrcp.f32 %v4026_v63  ;;  %v4072_v23 = vadd.f32 %v4071_v46, %v4057_v22 }
0x15cb   : > { %5766 = vrcp.f32 %v4028_v36 }
0x15cc   : > { %v4073_v48 = vadd.f32 %v4072_v23, %v4058_v51 }
0x15cf   : > { %v5761_v25 = vpop.eup %5760  ;;  %v4030_v14 = vpop.xlane.xlu1 %4029 }
0x15d0   : > { %5768 = vrcp.f32 %v4030_v14  ;;  %v4059_v44 = vmul.f32 %v5761_v25, %v7123_v33  ;;  %v5763_v26 = vpop.eup %5762 }
0x15d1   : > { %v4060_v24 = vmul.f32 %v5763_v26, %v7119_v53 }
0x15d2   : > { %v4074_v57 = vadd.f32 %v4073_v48, %v4059_v44 }
0x15d3   : > { %v4032_v30 = vpop.xlane.xlu0 %4031  ;;  %v3562_v13 = vpop.permute.xlu1 %3561 }
0x15d4   : > { %5770 = vrcp.f32 %v4032_v30  ;;  %v4075_v59 = vadd.f32 %v4074_v57, %v4060_v24  ;;  %v3666_v43 = vadd.f32 %v3665_v35, %v3562_v13  ;;  %v5355_v57 = vpop.f32.mrf.mxu0 }
0x15d7   : > { %v5765_v39 = vpop.eup %5764 }
0x15d8   : > { %v4061_v32 = vmul.f32 %v5765_v39, %v7130_v62  ;;  %v5767_v1 = vpop.eup %5766  ;;  %v3572_v39 = vpop.permute.xlu1 %3571 }
0x15d9   : > { %v4062_v7 = vmul.f32 %v5767_v1, %v7127_v4 }
0x15da   : > { %v4076_v19 = vadd.f32 %v4075_v59, %v4061_v32 }
0x15db   : > { %v3567_v20 = vpop.permute.xlu0 %3566 }
0x15dc   : > { %v3669_v33 = vadd.f32 %v3668_v54, %v3567_v20  ;;  %v4077_v34 = vadd.f32 %v4076_v19, %v4062_v7 }
0x15dd   : > { %v5769_v50 = vpop.eup %5768 }
0x15de   : > { %v4104_v28 = vpack.c.bf16 %v3669_v33, %v3666_v43  ;;  %v4063_v15 = vmul.f32 %v5769_v50, %v7133_v42  ;;  %v3674_v50 = vadd.f32 %v7220_v52, %v3572_v39 }
0x15e0   : > { %5401 = vmatprep.mubr.bf16.mxu0 %v4104_v28  ;;  %v4078_v62 = vadd.f32 %v4077_v34, %v4063_v15 }
0x15e1   : > { %v5771_v31 = vpop.eup %5770 }
0x15e2   : > { %v4064_v53 = vmul.f32 %v5771_v31, %v7136_v18 }
0x15e4   : > { %v4079_v0 = vadd.f32 %v4078_v62, %v4064_v53 }
0x15e6   : > { %v4080_v8 = vrot.slane %v4079_v0, 4 }
0x15e8   : > { %v4081_v29 = vadd.f32 %v4080_v8, %v4079_v0 }
0x15ea   : > { %v4082_v55 = vrot.slane %v4081_v29, 2 }
0x15ec   : > { %v4083_v45 = vadd.f32 %v4082_v55, %v4081_v29 }
0x15ee   : > { %v4084_v37 = vrot.slane %v4083_v45, 1 }
0x15f0   : > { %v4085_v21 = vadd.f32 %v4084_v37, %v4083_v45 }
0x15f2   : > { %v4086_v10 = vadd.f32 1e-09, %v4085_v21 }
0x15f4   : > { %5772 = vrcp.f32 %v4086_v10 }
0x1601   : > { %v5773_v63 = vpop.eup %5772 }
0x1602   : > { %v4102_v6 = vmul.f32 %v5773_v63, %v4063_v15  ;;  %v4103_v4 = vmul.f32 %v5773_v63, %v4064_v53  ;;  %v4100_v36 = vmul.f32 %v5773_v63, %v4061_v32  ;;  %v4101_v42 = vmul.f32 %v5773_v63, %v4062_v7 }
0x1603   : > { %v4098_v25 = vmul.f32 %v5773_v63, %v4059_v44  ;;  %v4099_v18 = vmul.f32 %v5773_v63, %v4060_v24  ;;  %v4096_v23 = vmul.f32 %v5773_v63, %v4057_v22  ;;  %v4097_v30 = vmul.f32 %v5773_v63, %v4058_v51  ;;  %v3681_v22 = vpop.f32.mrf.mxu0 }
0x1604   : > { %v4115_v9 = vpack.c.bf16 %v4103_v4, %v4102_v6  ;;  %v4114_v46 = vpack.c.bf16 %v4101_v42, %v4100_v36  ;;  %v4094_v48 = vmul.f32 %v5773_v63, %v7211_v5  ;;  %v4095_v26 = vmul.f32 %v5773_v63, %v7216_v12  ;;  %v3577_v5 = vpop.permute.xlu1 %3576 }
0x1605   : > { %v4113_v14 = vpack.c.bf16 %v4099_v18, %v4098_v25  ;;  %v4112_v35 = vpack.c.bf16 %v4097_v30, %v4096_v23  ;;  %v4092_v44 = vmul.f32 %v5773_v63, %v7203_v41  ;;  %v4093_v24 = vmul.f32 %v5773_v63, %v7208_v61  ;;  %v5356_v12 = vpop.f32.mrf.mxu0  ;;  %v3582_v61 = vpop.permute.xlu0 %3581  ;;  %v5508_v23 = vld [vmem:[%s7340_s8 + $0x70] sm:$0xff]   ;;  %v5509_v30 = vld [vmem:[%s7340_s8 + $0x78] sm:$0xff]  }
0x1606   : > { %5385 = vmatprep.subr.bf16.mxu0 %v4115_v9  ;;  %v4111_v32 = vpack.c.bf16 %v4095_v26, %v4094_v48  ;;  %v4090_v13 = vmul.f32 %v5773_v63, %v7194_v16  ;;  %v4091_v59 = vmul.f32 %v5773_v63, %v7200_v38  ;;  %v4088_v54 = vmul.f32 %v5773_v63, %v7188_v27 }
0x1607   : > { %5386 = vmatpush3.bf16.msra.mxu0 %v4115_v9  ;;  %v4110_v51 = vpack.c.bf16 %v4093_v24, %v4092_v44  ;;  %v4089_v20 = vmul.f32 %v5773_v63, %v7191_v58  ;;  %v3684_v41 = vpop.f32.mrf.mxu0  ;;  %v3677_v16 = vadd.f32 %v7224_v47, %v3577_v5  ;;  %v3682_v38 = vadd.f32 %v3681_v22, %v3582_v61  ;;  %v5506_v47 = vld [vmem:[%s7340_s8 + $0x60] sm:$0xff]  }
0x1608   : > { %5387 = vmatprep.subr.bf16.mxu0 %v4114_v46  ;;  %v4109_v1 = vpack.c.bf16 %v4091_v59, %v4090_v13  ;;  %v3587_v43 = vpop.permute.xlu1 %3586  ;;  %5417 = vmatprep.mubr.msk.bf16.mxu1 %vm447_vm0, %v5506_v47 }
0x1609   : > { %v4108_v33 = vpack.c.bf16 %v4089_v20, %v4088_v54  ;;  %v3685_v19 = vadd.f32 %v3684_v41, %v3587_v43  ;;  %v4105_v28 = vpack.c.bf16 %v3677_v16, %v3674_v50  ;;  %v3592_v27 = vpop.permute.xlu0 %3591 }
0x160a   : > { %v3690_v58 = vadd.f32 %v5355_v57, %v3592_v27 }
0x160b   : > { %5388 = vmatpush3.bf16.msra.mxu0 %v4114_v46  ;;  %v4106_v7 = vpack.c.bf16 %v3685_v19, %v3682_v38 }
0x160c   : > { %5389 = vmatprep.subr.bf16.mxu0 %v4113_v14  ;;  %v3597_v15 = vpop.permute.xlu1 %3596 }
0x160d   : > { %v3693_v34 = vadd.f32 %v5356_v12, %v3597_v15 }
0x160f   : > { %5390 = vmatpush3.bf16.msra.mxu0 %v4113_v14  ;;  %v4107_v31 = vpack.c.bf16 %v3693_v34, %v3690_v58  ;;  %v5507_v14 = vld [vmem:[%s7340_s8 + $0x68] sm:$0xff]  }
0x1610   : > { %5391 = vmatprep.subr.bf16.mxu0 %v4112_v35  ;;  %v4219_v48 = vpop.permute.xlu1 %4218 }
0x1613   : > { %5392 = vmatpush3.bf16.msra.mxu0 %v4112_v35  ;;  %v4214_v35 = vpop.permute.xlu0 %4213 }
0x1614   : > { %5393 = vmatprep.subr.bf16.mxu0 %v4111_v32  ;;  %v4229_v57 = vpop.permute.xlu1 %4228 }
0x1617   : > { %5394 = vmatpush3.bf16.msra.mxu0 %v4111_v32  ;;  %v4224_v26 = vpop.permute.xlu0 %4223 }
0x1618   : > { %5395 = vmatprep.subr.bf16.mxu0 %v4110_v51 }
0x161b   : > { %5396 = vmatpush3.bf16.msra.mxu0 %v4110_v51  ;;  %v4234_v44 = vpop.permute.xlu0 %4233 }
0x161c   : > { %5397 = vmatprep.subr.bf16.mxu0 %v4109_v1 }
0x161f   : > { %5398 = vmatpush3.bf16.msra.mxu0 %v4109_v1  ;;  %v4239_v1 = vpop.permute.xlu1 %4238  ;;  %v4244_v43 = vpop.permute.xlu0 %4243 }
0x1620   : > { %5399 = vmatprep.subr.bf16.mxu0 %v4108_v33 }
0x1623   : > { %5400 = vmatpush3.bf16.msra.mxu0 %v4108_v33 }
0x1626   : > { %5402 = vmatmul.mubr.bf16.vlgmr.msra.gmra.mxu0 %v4105_v28 }
0x1627   : > { %5405 = vmatprep.mubr.bf16.mxu0 %v4106_v7  ;;  %v4249_v7 = vpop.permute.xlu1 %4248 }
0x162e   : > { %5406 = vmatmul.mubr.bf16.gmra.mxu0 %v4107_v31 }
0x16e6   : > { %v5403_v53 = vpop.f32.mrf.mxu0 }
0x16e7   : > { %v4192_v42 = vsub.f32 %v6956_v11, %v5403_v53 }
0x16e8   : > { %v4150_v62 = vpop.f32.mrf.mxu0 }
0x16e9   : > { %v4190_v25 = vsub.f32 %v6961_v56, %v4150_v62 }
0x16ea   : > { %v5404_v52 = vpop.f32.mrf.mxu0 }
0x16eb   : > { %v4193_v4 = vsub.f32 %v6966_v49, %v5404_v52 }
0x16ec   : > { %v4153_v0 = vpop.f32.mrf.mxu0 }
0x16ed   : > { %v4199_v9 = vpack.c.bf16 %v4193_v4, %v4192_v42  ;;  %v4191_v46 = vsub.f32 %v6971_v60, %v4153_v0 }
0x16ee   : > { %v5407_v8 = vpop.f32.mrf.mxu0 }
0x16ef   : > { %v4196_v45 = vsub.f32 %v6976_v3, %v5407_v8  ;;  %v4198_v18 = vpack.c.bf16 %v4191_v46, %v4190_v25 }
0x16f0   : > { %v4166_v29 = vpop.f32.mrf.mxu0 }
0x16f1   : > { %v4194_v10 = vsub.f32 %v6981_v17, %v4166_v29 }
0x16f2   : > { %v5408_v55 = vpop.f32.mrf.mxu0 }
0x16f3   : > { %v4197_v37 = vsub.f32 %v6986_v40, %v5408_v55 }
0x16f4   : > { %v4169_v21 = vpop.f32.mrf.mxu0 }
0x16f5   : > { %v4201_v63 = vpack.c.bf16 %v4197_v37, %v4196_v45  ;;  %v4195_v6 = vsub.f32 %v6991_v2, %v4169_v21 }
0x16f7   : > { %v4200_v36 = vpack.c.bf16 %v4195_v6, %v4194_v10  ;;  %5409 = vmatprep.subr.bf16.mxu1 %v4201_v63 }
0x16f8   : > { %5410 = vmatpush3.bf16.msra.mxu1 %v4201_v63 }
0x16f9   : > { %5411 = vmatprep.subr.bf16.mxu1 %v4200_v36 }
0x16fc   : > { %5412 = vmatpush3.bf16.msra.mxu1 %v4200_v36 }
0x16fd   : > { %5413 = vmatprep.subr.bf16.mxu1 %v4199_v9 }
0x1700   : > { %5414 = vmatpush3.bf16.msra.mxu1 %v4199_v9 }
0x1701   : > { %5415 = vmatprep.subr.bf16.mxu1 %v4198_v18 }
0x1704   : > { %5416 = vmatpush3.bf16.msra.mxu1 %v4198_v18 }
0x1707   : > { %5418 = vmatmul.mubr.msk.bf16.vlgmr.msra.gmra.mxu1 %vm447_vm0, %v5507_v14 }
0x1708   : > { %5421 = vmatprep.mubr.msk.bf16.mxu1 %vm447_vm0, %v5508_v23 }
0x170f   : > { %5422 = vmatmul.mubr.msk.bf16.gmra.mxu1 %vm447_vm0, %v5509_v30 }
0x17c7   : > { %v5419_v39 = vpop.f32.mrf.mxu1 }
0x17c8   : > { %v4326_v32 = vadd.f32 %v5419_v39, %v4224_v26 }
0x17c9   : > { %v4317_v24 = vpop.f32.mrf.mxu1 }
0x17ca   : > { %v4350_v22 = vmax.f32 %v4326_v32, 0.0  ;;  %v4318_v51 = vadd.f32 %v4317_v24, %v4214_v35 }
0x17cb   : > { %v5420_v13 = vpop.f32.mrf.mxu1 }
0x17cc   : > { %v4358_v59 = vadd.f32 %v4350_v22, %v6956_v11  ;;  %v4348_v5 = vmax.f32 %v4318_v51, 0.0  ;;  %v4329_v12 = vadd.f32 %v5420_v13, %v4229_v57 }
0x17cd   : > { %v4320_v54 = vpop.f32.mrf.mxu1 }
0x17ce   : > { %4728 = vst [vmem:[%s6328_s25 + $0xd0] sm:$0xff] %v4358_v59  ;;  %v4356_v20 = vadd.f32 %v4348_v5, %v6961_v56  ;;  %v4351_v41 = vmax.f32 %v4329_v12, 0.0  ;;  %v4321_v61 = vadd.f32 %v4320_v54, %v4219_v48 }
0x17cf   : > { %v5423_v33 = vpop.f32.mrf.mxu1 }
0x17d0   : > { %4726 = vst [vmem:[%s6328_s25 + $0xc0] sm:$0xff] %v4356_v20  ;;  %v4359_v16 = vadd.f32 %v4351_v41, %v6966_v49  ;;  %v4349_v38 = vmax.f32 %v4321_v61, 0.0  ;;  %v4342_v19 = vadd.f32 %v5423_v33, %v4244_v43 }
0x17d1   : > { %v4333_v11 = vpop.f32.mrf.mxu1 }
0x17d2   : > { %4729 = vst [vmem:[%s6328_s25 + $0xd8] sm:$0xff] %v4359_v16  ;;  %v4357_v50 = vadd.f32 %v4349_v38, %v6971_v60  ;;  %v4354_v28 = vmax.f32 %v4342_v19, 0.0  ;;  %v4334_v56 = vadd.f32 %v4333_v11, %v4234_v44 }
0x17d3   : > { %v5424_v27 = vpop.f32.mrf.mxu1 }
0x17d4   : > { %4727 = vst [vmem:[%s6328_s25 + $0xc8] sm:$0xff] %v4357_v50  ;;  %v4362_v15 = vadd.f32 %v4354_v28, %v6976_v3  ;;  %v4352_v58 = vmax.f32 %v4334_v56, 0.0  ;;  %v4345_v49 = vadd.f32 %v5424_v27, %v4249_v7 }
0x17d5   : > { %v4336_v34 = vpop.f32.mrf.mxu1 }
0x17d6   : > { %4732 = vst [vmem:[%s6328_s25 + $0xf0] sm:$0xff] %v4362_v15  ;;  %v4360_v31 = vadd.f32 %v4352_v58, %v6981_v17  ;;  %v4355_v47 = vmax.f32 %v4345_v49, 0.0  ;;  %v4337_v60 = vadd.f32 %v4336_v34, %v4239_v1 }
0x17d8   : > { %4730 = vst [vmem:[%s6328_s25 + $0xe0] sm:$0xff] %v4360_v31  ;;  %v4363_v53 = vadd.f32 %v4355_v47, %v6986_v40  ;;  %v4353_v62 = vmax.f32 %v4337_v60, 0.0 }
0x17da   : > { %4733 = vst [vmem:[%s6328_s25 + $0xf8] sm:$0xff] %v4363_v53  ;;  %v4361_v3 = vadd.f32 %v4353_v62, %v6991_v2 }
0x17dc   : > { %4731 = vst [vmem:[%s6328_s25 + $0xe8] sm:$0xff] %v4361_v3 }
0x17dd   : > { %5787 = shalt.err (!%p5784_p3)
}
0x17de   : > { %s5788_s25 = scalar_lea.hbm %s7283_s18, 4096  ;;  %s5792_s20 = scalar_lea.hbm %s7342_s10, 8192 }
0x17df   : > { %p5789_p4 = scmp.ne.s32.totalorder %s7283_s18, %s5788_s25  ;;  %p5793_p9 = scmp.lt.s32.totalorder %s7283_s18, %s7342_s10 }
0x17e0   : > { %p5794_p10 = scmp.lt.s32.totalorder %s5792_s20, %s5788_s25 }
0x17e1   : > { %p5790_p7 = pnand %p5789_p4, %p5933_p5 }
0x17e2   : > { %p5795_p11 = por %p5794_p10, %p5793_p9 }
0x17e3   : > { %p5791_p8 = pneg %p5790_p7 }
0x17e5   : > { %p5796_p12 = pnand %p5795_p11, %p5791_p8 }
0x17e7   : > { %5799 = shalt.err (!%p5796_p12)
}
0x17e8   : > { %s5838_s27 = smov 128   ;;  %s5839_s21 = smov 8  }
0x17e9   : > { %5425 = dma.vmem_to_hbm [thread:$0]  (%p5933_p5), %s7285_s11, 4096, %s7283_s18, %s7292_s26, %s5838_s27, %s5838_s27, %s5839_s21  }
0x17ea PF: > { %p5431_p13 = scmp.ge.s32.totalorder %s5834_s16, 2  ;;  %s4402_s28 = sand.u32 1, %s5822_s13  }
0x17eb   : > { %s4403_s25 = scalar_lea.sflag [#allocation3], %s4402_s28 }
0x17ec   : > { %p5428_p0 = pnand %p5431_p13, %p5937_p6 }
0x17ee   : > { %p5429_p1 = pneg %p5428_p0 }
0x17f0   : > { %5817 = dma.done.wait (%p5429_p1), %s4403_s25, 4096  }
0x17f1   : > { %5819 = vsyncadd (%p5429_p1), %s4403_s25, 4294963200  ;;  %p20_p2 = scmp.ge.s32.totalorder %s5920_s19, 4   ;;  %s7347_s13 = smov %s5826_s14 }
0x17f2   : > { %s7348_s14 = smov %s5830_s15  ;;  %s7349_s15 = smov %s5931_s22 }
0x17f3   : > { %s7350_s16 = smov %s5920_s19  ;;  %22 = sbr.rel (!%p20_p2) target bundleno = 3 (0x3), region = 113 }
0x17f8   :  { %4408 = vsyncpa [#allocation3], 1 }
0x17f9   :  { %4410 = vsyncpa [#allocation3 + $0x1], 1 }

</bundles_post_ra>
